<compile_context>
chip_gen: v7x
topology: tpu7x:2x2x1
jax: 0.10.0
libtpu: 0.0.40
codegen_flags: <defaults>
</compile_context>

<pallas_src>
import functools

import jax
import jax.numpy as jnp
from jax.experimental import pallas as pl
from jax.experimental.pallas import tpu as pltpu

LN_EPS = 1e-5
_LAYER_NAMES = ("layer1", "layer2", "layer3", "layer4")


def _round_up(x, m):
    return (x + m - 1) // m * m


def _pad_cols(w, n):
    if w.shape[1] == n:
        return w
    return jnp.pad(w, ((0, 0), (0, n - w.shape[1])))


# ----------------------------------------------------------------------------
# Kernel
# ----------------------------------------------------------------------------
def _layernorm(y, gamma, beta):
    # Two-pass statistics (no E[y^2]-mu^2 cancellation); same reduction count.
    mu = jnp.mean(y, axis=-1, keepdims=True)
    d = y - mu
    var = jnp.mean(d * d, axis=-1, keepdims=True)
    return d * jax.lax.rsqrt(var + LN_EPS) * gamma + beta


def _make_fused_kernel(has_proj):
    """Build the fused kernel body for a given projection-shortcut pattern."""

    def kernel(*refs):
        x_ref = refs[0]
        o_ref = refs[-1]
        idx = 1

        h = x_ref[...].astype(jnp.float32)

        for proj in has_proj:
            if proj:
                w1s_ref, w2_ref, v1_ref, v2_ref, vs_ref = refs[idx:idx + 5]
                idx += 5
            else:
                w1_ref, w2_ref, v1_ref, v2_ref = refs[idx:idx + 4]
                idx += 4

            d_out = w2_ref.shape[0]
            hb = h.astype(jnp.bfloat16)  # single bf16 cast of h per block

            if proj:
                # Fused main-path + shortcut matmul: w1s = [w1 | pad | ws | pad],
                # each half padded to a 128-lane boundary.  One MXU issue, one
                # cast of h, better N-fill.
                half = w1s_ref.shape[1] // 2
                fused = jnp.dot(hb, w1s_ref[...],
                                preferred_element_type=jnp.float32)
                y = fused[:, :d_out] + v1_ref[0:1, :]
                sc = fused[:, half:half + d_out] + vs_ref[0:1, :]
                sc = _layernorm(sc, vs_ref[1:2, :], vs_ref[2:3, :])
            else:
                y = jnp.dot(hb, w1_ref[...],
                            preferred_element_type=jnp.float32) + v1_ref[0:1, :]
                sc = h

            y = jnp.maximum(_layernorm(y, v1_ref[1:2, :], v1_ref[2:3, :]), 0.0)
            # dropout(p=0.2): identity in eval mode.
            y = jnp.dot(y.astype(jnp.bfloat16), w2_ref[...],
                        preferred_element_type=jnp.float32) + v2_ref[0:1, :]
            y = _layernorm(y, v2_ref[1:2, :], v2_ref[2:3, :])

            h = jnp.maximum(y + sc, 0.0)

        # Head: fc1 (512 -> 64, padded to 128 lanes) then fc2 (128 -> out_pad).
        wh1_ref, bh1_ref, wh2_ref, bh2_ref = refs[idx:idx + 4]
        z = jnp.dot(h.astype(jnp.bfloat16), wh1_ref[...],
                    preferred_element_type=jnp.float32) + bh1_ref[...]
        z = jnp.dot(z.astype(jnp.bfloat16), wh2_ref[...],
                    preferred_element_type=jnp.float32) + bh2_ref[...]
        o_ref[...] = z.astype(o_ref.dtype)

    return kernel


# ----------------------------------------------------------------------------
# Fused pallas_call wrapper
# ----------------------------------------------------------------------------
@functools.partial(
    jax.jit, static_argnames=("has_proj", "output_dim", "out_pad", "tb"))
def _resnet_forward_impl(x, args, *, has_proj, output_dim, out_pad, tb):
    batch, in_dim = x.shape

    # Batch tiling: keep >= 2 grid steps whenever batch > 8 so both v7x
    # TensorCores get work; cap the tile at `tb` rows.
    if batch > 8:
        tile = min(tb, _round_up((batch + 1) // 2, 8))
    else:
        tile = _round_up(max(batch, 1), 8)
    padded_batch = _round_up(batch, tile)
    if padded_batch != batch:
        x = jnp.pad(x, ((0, padded_batch - batch), (0, 0)))
    grid = (padded_batch // tile,)

    # Activations are tiled along the batch axis; weights / packed vectors use
    # a constant index_map so they stay resident in VMEM across grid steps.
    in_specs = [pl.BlockSpec((tile, in_dim), lambda i: (i, 0))]
    for a in args:
        in_specs.append(pl.BlockSpec(a.shape, lambda i: (0, 0)))
    out_specs = pl.BlockSpec((tile, out_pad), lambda i: (i, 0))

    kernel = _make_fused_kernel(has_proj)

    out = pl.pallas_call(
        kernel,
        out_shape=jax.ShapeDtypeStruct((padded_batch, out_pad), jnp.float32),
        grid_spec=pltpu.PrefetchScalarGridSpec(
            num_scalar_prefetch=0,
            grid=grid,
            in_specs=in_specs,
            out_specs=out_specs,
        ),
        compiler_params=pltpu.CompilerParams(
            dimension_semantics=("parallel",),  # megacore sharding on v7x
            vmem_limit_bytes=48 * 1024 * 1024,  # headroom for large batch tiles
        ),
    )(x, *args)

    return out[:batch, :output_dim]


def resnet_forward(x, fused, *, tb=512):
    return _resnet_forward_impl(
        x, fused["args"],
        has_proj=fused["has_proj"],
        output_dim=fused["output_dim"],
        out_pad=fused["out_pad"],
        tb=tb,
    )


# ----------------------------------------------------------------------------
# Parameter construction (deterministic, synthetic) + fused-arg packing
# ----------------------------------------------------------------------------
def _linear_params(key, in_dim, out_dim):
    kw, kb = jax.random.split(key)
    bound = 1.0 / (in_dim ** 0.5)
    w = jax.random.uniform(kw, (in_dim, out_dim), jnp.float32, -bound, bound)
    b = jax.random.uniform(kb, (1, out_dim), jnp.float32, -bound, bound)
    return w, b


def _make_resblock_params(key, in_dim, out_dim):
    keys = jax.random.split(key, 3)
    w1, b1 = _linear_params(keys[0], in_dim, out_dim)
    w2, b2 = _linear_params(keys[1], out_dim, out_dim)
    p = {
        "w1": w1, "b1": b1,
        "g1": jnp.ones((1, out_dim), jnp.float32),
        "be1": jnp.zeros((1, out_dim), jnp.float32),
        "w2": w2, "b2": b2,
        "g2": jnp.ones((1, out_dim), jnp.float32),
        "be2": jnp.zeros((1, out_dim), jnp.float32),
    }
    if in_dim != out_dim:
        ws, bs = _linear_params(keys[2], in_dim, out_dim)
        p.update({
            "ws": ws, "bs": bs,
            "gs": jnp.ones((1, out_dim), jnp.float32),
            "bes": jnp.zeros((1, out_dim), jnp.float32),
        })
    return p


def make_resnet_params(key, input_dim, output_dim):
    keys = jax.random.split(key, 6)
    params = {
        "layer1": _make_resblock_params(keys[0], input_dim, 64),
        "layer2": _make_resblock_params(keys[1], 64, 128),
        "layer3": _make_resblock_params(keys[2], 128, 256),
        "layer4": _make_resblock_params(keys[3], 256, 512),
    }
    w1, b1 = _linear_params(keys[4], 512, 64)
    w2, b2 = _linear_params(keys[5], 64, output_dim)
    params["head"] = {"w1": w1, "b1": b1, "w2": w2, "b2": b2}
    return params


def prepare_fused_params(params, output_dim):
    """Cast matmul weights to bf16, fuse w1/ws along N (128-lane-padded halves),
    pack (bias, gamma, beta) per linear into one (3, dim) array, and pad the
    head intermediate/output to 128-lane boundaries."""
    has_proj = tuple("ws" in params[n] for n in _LAYER_NAMES)
    args = []
    for name in _LAYER_NAMES:
        p = params[name]
        d_out = p["w2"].shape[0]
        if "ws" in p:
            half = _round_up(d_out, 128)
            w1p = _pad_cols(p["w1"], half)
            wsp = _pad_cols(p["ws"], half)
            args.append(jnp.concatenate([w1p, wsp], axis=1).astype(jnp.bfloat16))
        else:
            args.append(p["w1"].astype(jnp.bfloat16))
        args.append(p["w2"].astype(jnp.bfloat16))
        args.append(jnp.concatenate([p["b1"], p["g1"], p["be1"]], axis=0))
        args.append(jnp.concatenate([p["b2"], p["g2"], p["be2"]], axis=0))
        if "ws" in p:
            args.append(jnp.concatenate([p["bs"], p["gs"], p["bes"]], axis=0))

    hp = params["head"]
    hid = hp["w1"].shape[1]                       # 64
    hid_pad = _round_up(hid, 128)                 # 128 (lane-dense intermediate)
    out_pad = _round_up(max(output_dim, 1), 128)
    wh1 = _pad_cols(hp["w1"], hid_pad)
    bh1 = _pad_cols(hp["b1"], hid_pad)
    wh2 = jnp.zeros((hid_pad, out_pad), jnp.float32)
    wh2 = wh2.at[:hid, :output_dim].set(hp["w2"])
    bh2 = jnp.zeros((1, out_pad), jnp.float32)
    bh2 = bh2.at[:, :output_dim].set(hp["b2"])
    args.extend([
        wh1.astype(jnp.bfloat16),
        bh1,
        wh2.astype(jnp.bfloat16),
        bh2,
    ])
    return {
        "args": tuple(args),
        "has_proj": has_proj,
        "output_dim": int(output_dim),
        "out_pad": int(out_pad),
    }


# ----------------------------------------------------------------------------
# Pure-JAX reference (mirrors the kernel's bf16-weight / f32-accumulate math)
# ----------------------------------------------------------------------------
def _ref_ln(y, g, b):
    mu = jnp.mean(y, axis=-1, keepdims=True)
    d = y - mu
    var = jnp.mean(d * d, axis=-1, keepdims=True)
    return d * jax.lax.rsqrt(var + LN_EPS) * g + b


def _ref_dot(x, w):
    return jnp.dot(x.astype(jnp.bfloat16), w.astype(jnp.bfloat16),
                   preferred_element_type=jnp.float32)


def _ref_block(x, p):
    h = _ref_dot(x, p["w1"]) + p["b1"]
    h = jnp.maximum(_ref_ln(h, p["g1"], p["be1"]), 0.0)
    h = _ref_dot(h, p["w2"]) + p["b2"]
    h = _ref_ln(h, p["g2"], p["be2"])
    if "ws" in p:
        sc = _ref_dot(x, p["ws"]) + p["bs"]
        sc = _ref_ln(sc, p["gs"], p["bes"])
    else:
        sc = x
    return jnp.maximum(h + sc, 0.0)


def resnet_ref(x, params):
    out = x
    for name in _LAYER_NAMES:
        out = _ref_block(out, params[name])
    hp = params["head"]
    out = _ref_dot(out, hp["w1"]) + hp["b1"]
    out = _ref_dot(out, hp["w2"]) + hp["b2"]
    return out


if __name__ == "__main__":
    key = jax.random.PRNGKey(0)
    k_x, k_p = jax.random.split(key)

    batch, input_dim, output_dim = 8, 16, 10
    x = jax.random.normal(k_x, (batch, input_dim), jnp.float32)
    params = make_resnet_params(k_p, input_dim, output_dim)
    fused = prepare_fused_params(params, output_dim)

    out = resnet_forward(x, fused)
    out = jax.block_until_ready(out)

    ref = resnet_ref(x, params)
    assert out.shape == (batch, output_dim), out.shape
    err = float(jnp.max(jnp.abs(out - ref)))
    assert jnp.allclose(out, ref, atol=1e-2, rtol=1e-2), err

    print("KERNEL_OK")
</pallas_src>

<mosaic_0001>
module attributes {stable_mosaic.version = 11 : i64} {
  func.func @kernel(%arg0: i32, %arg1: memref<8x16xf32, #tpu.memory_space<vmem>>, %arg2: memref<16x256xbf16, #tpu.memory_space<vmem>>, %arg3: memref<64x64xbf16, #tpu.memory_space<vmem>>, %arg4: memref<3x64xf32, #tpu.memory_space<vmem>>, %arg5: memref<3x64xf32, #tpu.memory_space<vmem>>, %arg6: memref<3x64xf32, #tpu.memory_space<vmem>>, %arg7: memref<64x256xbf16, #tpu.memory_space<vmem>>, %arg8: memref<128x128xbf16, #tpu.memory_space<vmem>>, %arg9: memref<3x128xf32, #tpu.memory_space<vmem>>, %arg10: memref<3x128xf32, #tpu.memory_space<vmem>>, %arg11: memref<3x128xf32, #tpu.memory_space<vmem>>, %arg12: memref<128x512xbf16, #tpu.memory_space<vmem>>, %arg13: memref<256x256xbf16, #tpu.memory_space<vmem>>, %arg14: memref<3x256xf32, #tpu.memory_space<vmem>>, %arg15: memref<3x256xf32, #tpu.memory_space<vmem>>, %arg16: memref<3x256xf32, #tpu.memory_space<vmem>>, %arg17: memref<256x1024xbf16, #tpu.memory_space<vmem>>, %arg18: memref<512x512xbf16, #tpu.memory_space<vmem>>, %arg19: memref<3x512xf32, #tpu.memory_space<vmem>>, %arg20: memref<3x512xf32, #tpu.memory_space<vmem>>, %arg21: memref<3x512xf32, #tpu.memory_space<vmem>>, %arg22: memref<512x128xbf16, #tpu.memory_space<vmem>>, %arg23: memref<1x128xf32, #tpu.memory_space<vmem>>, %arg24: memref<128x128xbf16, #tpu.memory_space<vmem>>, %arg25: memref<1x128xf32, #tpu.memory_space<vmem>>, %arg26: memref<8x128xf32, #tpu.memory_space<vmem>>) attributes {dimension_semantics = [#tpu.dimension_semantics<parallel>], iteration_bounds = array<i64: 1>, scalar_prefetch = 0 : i64, scratch_operands = 0 : i64, tpu.core_type = #tpu.core_type<tc>, window_params = [{transform_indices = @transform_0, window_bounds = array<i64: 8, 16>}, {pipeline_mode = #tpu.pipeline_mode<synchronous>, transform_indices = @transform_1, window_bounds = array<i64: 16, 256>}, {pipeline_mode = #tpu.pipeline_mode<synchronous>, transform_indices = @transform_2, window_bounds = array<i64: 64, 64>}, {pipeline_mode = #tpu.pipeline_mode<synchronous>, transform_indices = @transform_3, window_bounds = array<i64: 3, 64>}, {pipeline_mode = #tpu.pipeline_mode<synchronous>, transform_indices = @transform_4, window_bounds = array<i64: 3, 64>}, {pipeline_mode = #tpu.pipeline_mode<synchronous>, transform_indices = @transform_5, window_bounds = array<i64: 3, 64>}, {pipeline_mode = #tpu.pipeline_mode<synchronous>, transform_indices = @transform_6, window_bounds = array<i64: 64, 256>}, {pipeline_mode = #tpu.pipeline_mode<synchronous>, transform_indices = @transform_7, window_bounds = array<i64: 128, 128>}, {pipeline_mode = #tpu.pipeline_mode<synchronous>, transform_indices = @transform_8, window_bounds = array<i64: 3, 128>}, {pipeline_mode = #tpu.pipeline_mode<synchronous>, transform_indices = @transform_9, window_bounds = array<i64: 3, 128>}, {pipeline_mode = #tpu.pipeline_mode<synchronous>, transform_indices = @transform_10, window_bounds = array<i64: 3, 128>}, {pipeline_mode = #tpu.pipeline_mode<synchronous>, transform_indices = @transform_11, window_bounds = array<i64: 128, 512>}, {pipeline_mode = #tpu.pipeline_mode<synchronous>, transform_indices = @transform_12, window_bounds = array<i64: 256, 256>}, {pipeline_mode = #tpu.pipeline_mode<synchronous>, transform_indices = @transform_13, window_bounds = array<i64: 3, 256>}, {pipeline_mode = #tpu.pipeline_mode<synchronous>, transform_indices = @transform_14, window_bounds = array<i64: 3, 256>}, {pipeline_mode = #tpu.pipeline_mode<synchronous>, transform_indices = @transform_15, window_bounds = array<i64: 3, 256>}, {pipeline_mode = #tpu.pipeline_mode<synchronous>, transform_indices = @transform_16, window_bounds = array<i64: 256, 1024>}, {pipeline_mode = #tpu.pipeline_mode<synchronous>, transform_indices = @transform_17, window_bounds = array<i64: 512, 512>}, {pipeline_mode = #tpu.pipeline_mode<synchronous>, transform_indices = @transform_18, window_bounds = array<i64: 3, 512>}, {pipeline_mode = #tpu.pipeline_mode<synchronous>, transform_indices = @transform_19, window_bounds = array<i64: 3, 512>}, {pipeline_mode = #tpu.pipeline_mode<synchronous>, transform_indices = @transform_20, window_bounds = array<i64: 3, 512>}, {pipeline_mode = #tpu.pipeline_mode<synchronous>, transform_indices = @transform_21, window_bounds = array<i64: 512, 128>}, {pipeline_mode = #tpu.pipeline_mode<synchronous>, transform_indices = @transform_22, window_bounds = array<i64: 1, 128>}, {pipeline_mode = #tpu.pipeline_mode<synchronous>, transform_indices = @transform_23, window_bounds = array<i64: 128, 128>}, {pipeline_mode = #tpu.pipeline_mode<synchronous>, transform_indices = @transform_24, window_bounds = array<i64: 1, 128>}, {transform_indices = @transform_25, window_bounds = array<i64: 8, 128>}]} {
    %c0 = arith.constant 0 : index
    %c0_0 = arith.constant 0 : index
    %0 = vector.load %arg1[%c0, %c0_0] : memref<8x16xf32, #tpu.memory_space<vmem>>, vector<8x16xf32>
    %1 = arith.truncf %0 : vector<8x16xf32> to vector<8x16xbf16>
    %c0_1 = arith.constant 0 : index
    %c0_2 = arith.constant 0 : index
    %2 = vector.load %arg2[%c0_1, %c0_2] : memref<16x256xbf16, #tpu.memory_space<vmem>>, vector<16x256xbf16>
    %cst = arith.constant dense<0.000000e+00> : vector<8x256xf32>
    %3 = tpu.matmul %1, %2, %cst {dimension_numbers = #tpu.dot_dimension_numbers<[1], [0], [0], [1], [0, 0, 1, 1], [], []>} : vector<8x16xbf16>, vector<16x256xbf16>, vector<8x256xf32> -> vector<8x256xf32>
    %4 = vector.extract_strided_slice %3 {offsets = [0, 0], sizes = [8, 64], strides = [1, 1]} : vector<8x256xf32> to vector<8x64xf32>
    %c0_3 = arith.constant 0 : index
    %c0_4 = arith.constant 0 : index
    %5 = vector.load %arg4[%c0_3, %c0_4] : memref<3x64xf32, #tpu.memory_space<vmem>>, vector<1x64xf32>
    %6 = vector.broadcast %5 : vector<1x64xf32> to vector<8x64xf32>
    %7 = arith.addf %4, %6 : vector<8x64xf32>
    %8 = vector.extract_strided_slice %3 {offsets = [0, 128], sizes = [8, 64], strides = [1, 1]} : vector<8x256xf32> to vector<8x64xf32>
    %c0_5 = arith.constant 0 : index
    %c0_6 = arith.constant 0 : index
    %9 = vector.load %arg6[%c0_5, %c0_6] : memref<3x64xf32, #tpu.memory_space<vmem>>, vector<1x64xf32>
    %10 = vector.broadcast %9 : vector<1x64xf32> to vector<8x64xf32>
    %11 = arith.addf %8, %10 : vector<8x64xf32>
    %c1 = arith.constant 1 : index
    %c0_7 = arith.constant 0 : index
    %12 = vector.load %arg6[%c1, %c0_7] : memref<3x64xf32, #tpu.memory_space<vmem>>, vector<1x64xf32>
    %c2 = arith.constant 2 : index
    %c0_8 = arith.constant 0 : index
    %13 = vector.load %arg6[%c2, %c0_8] : memref<3x64xf32, #tpu.memory_space<vmem>>, vector<1x64xf32>
    %cst_9 = arith.constant dense<0.000000e+00> : vector<8xf32>
    %14 = vector.multi_reduction <add>, %11, %cst_9 [1] : vector<8x64xf32> to vector<8xf32>
    %15 = vector.shape_cast %14 : vector<8xf32> to vector<8x1xf32>
    %cst_10 = arith.constant 6.400000e+01 : f32
    %16 = vector.broadcast %cst_10 : f32 to vector<8x1xf32>
    %17 = arith.divf %15, %16 : vector<8x1xf32>
    %18 = vector.broadcast %17 : vector<8x1xf32> to vector<8x64xf32>
    %19 = arith.subf %11, %18 : vector<8x64xf32>
    %20 = arith.mulf %19, %19 : vector<8x64xf32>
    %cst_11 = arith.constant dense<0.000000e+00> : vector<8xf32>
    %21 = vector.multi_reduction <add>, %20, %cst_11 [1] : vector<8x64xf32> to vector<8xf32>
    %22 = vector.shape_cast %21 : vector<8xf32> to vector<8x1xf32>
    %cst_12 = arith.constant 6.400000e+01 : f32
    %23 = vector.broadcast %cst_12 : f32 to vector<8x1xf32>
    %24 = arith.divf %22, %23 : vector<8x1xf32>
    %cst_13 = arith.constant 9.99999974E-6 : f32
    %25 = vector.broadcast %cst_13 : f32 to vector<8x1xf32>
    %26 = arith.addf %24, %25 : vector<8x1xf32>
    %27 = math.rsqrt %26 : vector<8x1xf32>
    %28 = vector.broadcast %27 : vector<8x1xf32> to vector<8x64xf32>
    %29 = arith.mulf %19, %28 : vector<8x64xf32>
    %30 = vector.broadcast %12 : vector<1x64xf32> to vector<8x64xf32>
    %31 = arith.mulf %29, %30 : vector<8x64xf32>
    %32 = vector.broadcast %13 : vector<1x64xf32> to vector<8x64xf32>
    %33 = arith.addf %31, %32 : vector<8x64xf32>
    %c1_14 = arith.constant 1 : index
    %c0_15 = arith.constant 0 : index
    %34 = vector.load %arg4[%c1_14, %c0_15] : memref<3x64xf32, #tpu.memory_space<vmem>>, vector<1x64xf32>
    %c2_16 = arith.constant 2 : index
    %c0_17 = arith.constant 0 : index
    %35 = vector.load %arg4[%c2_16, %c0_17] : memref<3x64xf32, #tpu.memory_space<vmem>>, vector<1x64xf32>
    %cst_18 = arith.constant dense<0.000000e+00> : vector<8xf32>
    %36 = vector.multi_reduction <add>, %7, %cst_18 [1] : vector<8x64xf32> to vector<8xf32>
    %37 = vector.shape_cast %36 : vector<8xf32> to vector<8x1xf32>
    %cst_19 = arith.constant 6.400000e+01 : f32
    %38 = vector.broadcast %cst_19 : f32 to vector<8x1xf32>
    %39 = arith.divf %37, %38 : vector<8x1xf32>
    %40 = vector.broadcast %39 : vector<8x1xf32> to vector<8x64xf32>
    %41 = arith.subf %7, %40 : vector<8x64xf32>
    %42 = arith.mulf %41, %41 : vector<8x64xf32>
    %cst_20 = arith.constant dense<0.000000e+00> : vector<8xf32>
    %43 = vector.multi_reduction <add>, %42, %cst_20 [1] : vector<8x64xf32> to vector<8xf32>
    %44 = vector.shape_cast %43 : vector<8xf32> to vector<8x1xf32>
    %cst_21 = arith.constant 6.400000e+01 : f32
    %45 = vector.broadcast %cst_21 : f32 to vector<8x1xf32>
    %46 = arith.divf %44, %45 : vector<8x1xf32>
    %cst_22 = arith.constant 9.99999974E-6 : f32
    %47 = vector.broadcast %cst_22 : f32 to vector<8x1xf32>
    %48 = arith.addf %46, %47 : vector<8x1xf32>
    %49 = math.rsqrt %48 : vector<8x1xf32>
    %50 = vector.broadcast %49 : vector<8x1xf32> to vector<8x64xf32>
    %51 = arith.mulf %41, %50 : vector<8x64xf32>
    %52 = vector.broadcast %34 : vector<1x64xf32> to vector<8x64xf32>
    %53 = arith.mulf %51, %52 : vector<8x64xf32>
    %54 = vector.broadcast %35 : vector<1x64xf32> to vector<8x64xf32>
    %55 = arith.addf %53, %54 : vector<8x64xf32>
    %cst_23 = arith.constant 0.000000e+00 : f32
    %56 = vector.broadcast %cst_23 : f32 to vector<8x64xf32>
    %57 = arith.maximumf %55, %56 : vector<8x64xf32>
    %58 = arith.truncf %57 : vector<8x64xf32> to vector<8x64xbf16>
    %c0_24 = arith.constant 0 : index
    %c0_25 = arith.constant 0 : index
    %59 = vector.load %arg3[%c0_24, %c0_25] : memref<64x64xbf16, #tpu.memory_space<vmem>>, vector<64x64xbf16>
    %cst_26 = arith.constant dense<0.000000e+00> : vector<8x64xf32>
    %60 = tpu.matmul %58, %59, %cst_26 {dimension_numbers = #tpu.dot_dimension_numbers<[1], [0], [0], [1], [0, 0, 1, 1], [], []>} : vector<8x64xbf16>, vector<64x64xbf16>, vector<8x64xf32> -> vector<8x64xf32>
    %c0_27 = arith.constant 0 : index
    %c0_28 = arith.constant 0 : index
    %61 = vector.load %arg5[%c0_27, %c0_28] : memref<3x64xf32, #tpu.memory_space<vmem>>, vector<1x64xf32>
    %62 = vector.broadcast %61 : vector<1x64xf32> to vector<8x64xf32>
    %63 = arith.addf %60, %62 : vector<8x64xf32>
    %c1_29 = arith.constant 1 : index
    %c0_30 = arith.constant 0 : index
    %64 = vector.load %arg5[%c1_29, %c0_30] : memref<3x64xf32, #tpu.memory_space<vmem>>, vector<1x64xf32>
    %c2_31 = arith.constant 2 : index
    %c0_32 = arith.constant 0 : index
    %65 = vector.load %arg5[%c2_31, %c0_32] : memref<3x64xf32, #tpu.memory_space<vmem>>, vector<1x64xf32>
    %cst_33 = arith.constant dense<0.000000e+00> : vector<8xf32>
    %66 = vector.multi_reduction <add>, %63, %cst_33 [1] : vector<8x64xf32> to vector<8xf32>
    %67 = vector.shape_cast %66 : vector<8xf32> to vector<8x1xf32>
    %cst_34 = arith.constant 6.400000e+01 : f32
    %68 = vector.broadcast %cst_34 : f32 to vector<8x1xf32>
    %69 = arith.divf %67, %68 : vector<8x1xf32>
    %70 = vector.broadcast %69 : vector<8x1xf32> to vector<8x64xf32>
    %71 = arith.subf %63, %70 : vector<8x64xf32>
    %72 = arith.mulf %71, %71 : vector<8x64xf32>
    %cst_35 = arith.constant dense<0.000000e+00> : vector<8xf32>
    %73 = vector.multi_reduction <add>, %72, %cst_35 [1] : vector<8x64xf32> to vector<8xf32>
    %74 = vector.shape_cast %73 : vector<8xf32> to vector<8x1xf32>
    %cst_36 = arith.constant 6.400000e+01 : f32
    %75 = vector.broadcast %cst_36 : f32 to vector<8x1xf32>
    %76 = arith.divf %74, %75 : vector<8x1xf32>
    %cst_37 = arith.constant 9.99999974E-6 : f32
    %77 = vector.broadcast %cst_37 : f32 to vector<8x1xf32>
    %78 = arith.addf %76, %77 : vector<8x1xf32>
    %79 = math.rsqrt %78 : vector<8x1xf32>
    %80 = vector.broadcast %79 : vector<8x1xf32> to vector<8x64xf32>
    %81 = arith.mulf %71, %80 : vector<8x64xf32>
    %82 = vector.broadcast %64 : vector<1x64xf32> to vector<8x64xf32>
    %83 = arith.mulf %81, %82 : vector<8x64xf32>
    %84 = vector.broadcast %65 : vector<1x64xf32> to vector<8x64xf32>
    %85 = arith.addf %83, %84 : vector<8x64xf32>
    %86 = arith.addf %85, %33 : vector<8x64xf32>
    %cst_38 = arith.constant 0.000000e+00 : f32
    %87 = vector.broadcast %cst_38 : f32 to vector<8x64xf32>
    %88 = arith.maximumf %86, %87 : vector<8x64xf32>
    %89 = arith.truncf %88 : vector<8x64xf32> to vector<8x64xbf16>
    %c0_39 = arith.constant 0 : index
    %c0_40 = arith.constant 0 : index
    %90 = vector.load %arg7[%c0_39, %c0_40] : memref<64x256xbf16, #tpu.memory_space<vmem>>, vector<64x256xbf16>
    %cst_41 = arith.constant dense<0.000000e+00> : vector<8x256xf32>
    %91 = tpu.matmul %89, %90, %cst_41 {dimension_numbers = #tpu.dot_dimension_numbers<[1], [0], [0], [1], [0, 0, 1, 1], [], []>} : vector<8x64xbf16>, vector<64x256xbf16>, vector<8x256xf32> -> vector<8x256xf32>
    %92 = vector.extract_strided_slice %91 {offsets = [0, 0], sizes = [8, 128], strides = [1, 1]} : vector<8x256xf32> to vector<8x128xf32>
    %c0_42 = arith.constant 0 : index
    %c0_43 = arith.constant 0 : index
    %93 = vector.load %arg9[%c0_42, %c0_43] : memref<3x128xf32, #tpu.memory_space<vmem>>, vector<1x128xf32>
    %94 = vector.broadcast %93 : vector<1x128xf32> to vector<8x128xf32>
    %95 = arith.addf %92, %94 : vector<8x128xf32>
    %96 = vector.extract_strided_slice %91 {offsets = [0, 128], sizes = [8, 128], strides = [1, 1]} : vector<8x256xf32> to vector<8x128xf32>
    %c0_44 = arith.constant 0 : index
    %c0_45 = arith.constant 0 : index
    %97 = vector.load %arg11[%c0_44, %c0_45] : memref<3x128xf32, #tpu.memory_space<vmem>>, vector<1x128xf32>
    %98 = vector.broadcast %97 : vector<1x128xf32> to vector<8x128xf32>
    %99 = arith.addf %96, %98 : vector<8x128xf32>
    %c1_46 = arith.constant 1 : index
    %c0_47 = arith.constant 0 : index
    %100 = vector.load %arg11[%c1_46, %c0_47] : memref<3x128xf32, #tpu.memory_space<vmem>>, vector<1x128xf32>
    %c2_48 = arith.constant 2 : index
    %c0_49 = arith.constant 0 : index
    %101 = vector.load %arg11[%c2_48, %c0_49] : memref<3x128xf32, #tpu.memory_space<vmem>>, vector<1x128xf32>
    %cst_50 = arith.constant dense<0.000000e+00> : vector<8xf32>
    %102 = vector.multi_reduction <add>, %99, %cst_50 [1] : vector<8x128xf32> to vector<8xf32>
    %103 = vector.shape_cast %102 : vector<8xf32> to vector<8x1xf32>
    %cst_51 = arith.constant 1.280000e+02 : f32
    %104 = vector.broadcast %cst_51 : f32 to vector<8x1xf32>
    %105 = arith.divf %103, %104 : vector<8x1xf32>
    %106 = vector.broadcast %105 : vector<8x1xf32> to vector<8x128xf32>
    %107 = arith.subf %99, %106 : vector<8x128xf32>
    %108 = arith.mulf %107, %107 : vector<8x128xf32>
    %cst_52 = arith.constant dense<0.000000e+00> : vector<8xf32>
    %109 = vector.multi_reduction <add>, %108, %cst_52 [1] : vector<8x128xf32> to vector<8xf32>
    %110 = vector.shape_cast %109 : vector<8xf32> to vector<8x1xf32>
    %cst_53 = arith.constant 1.280000e+02 : f32
    %111 = vector.broadcast %cst_53 : f32 to vector<8x1xf32>
    %112 = arith.divf %110, %111 : vector<8x1xf32>
    %cst_54 = arith.constant 9.99999974E-6 : f32
    %113 = vector.broadcast %cst_54 : f32 to vector<8x1xf32>
    %114 = arith.addf %112, %113 : vector<8x1xf32>
    %115 = math.rsqrt %114 : vector<8x1xf32>
    %116 = vector.broadcast %115 : vector<8x1xf32> to vector<8x128xf32>
    %117 = arith.mulf %107, %116 : vector<8x128xf32>
    %118 = vector.broadcast %100 : vector<1x128xf32> to vector<8x128xf32>
    %119 = arith.mulf %117, %118 : vector<8x128xf32>
    %120 = vector.broadcast %101 : vector<1x128xf32> to vector<8x128xf32>
    %121 = arith.addf %119, %120 : vector<8x128xf32>
    %c1_55 = arith.constant 1 : index
    %c0_56 = arith.constant 0 : index
    %122 = vector.load %arg9[%c1_55, %c0_56] : memref<3x128xf32, #tpu.memory_space<vmem>>, vector<1x128xf32>
    %c2_57 = arith.constant 2 : index
    %c0_58 = arith.constant 0 : index
    %123 = vector.load %arg9[%c2_57, %c0_58] : memref<3x128xf32, #tpu.memory_space<vmem>>, vector<1x128xf32>
    %cst_59 = arith.constant dense<0.000000e+00> : vector<8xf32>
    %124 = vector.multi_reduction <add>, %95, %cst_59 [1] : vector<8x128xf32> to vector<8xf32>
    %125 = vector.shape_cast %124 : vector<8xf32> to vector<8x1xf32>
    %cst_60 = arith.constant 1.280000e+02 : f32
    %126 = vector.broadcast %cst_60 : f32 to vector<8x1xf32>
    %127 = arith.divf %125, %126 : vector<8x1xf32>
    %128 = vector.broadcast %127 : vector<8x1xf32> to vector<8x128xf32>
    %129 = arith.subf %95, %128 : vector<8x128xf32>
    %130 = arith.mulf %129, %129 : vector<8x128xf32>
    %cst_61 = arith.constant dense<0.000000e+00> : vector<8xf32>
    %131 = vector.multi_reduction <add>, %130, %cst_61 [1] : vector<8x128xf32> to vector<8xf32>
    %132 = vector.shape_cast %131 : vector<8xf32> to vector<8x1xf32>
    %cst_62 = arith.constant 1.280000e+02 : f32
    %133 = vector.broadcast %cst_62 : f32 to vector<8x1xf32>
    %134 = arith.divf %132, %133 : vector<8x1xf32>
    %cst_63 = arith.constant 9.99999974E-6 : f32
    %135 = vector.broadcast %cst_63 : f32 to vector<8x1xf32>
    %136 = arith.addf %134, %135 : vector<8x1xf32>
    %137 = math.rsqrt %136 : vector<8x1xf32>
    %138 = vector.broadcast %137 : vector<8x1xf32> to vector<8x128xf32>
    %139 = arith.mulf %129, %138 : vector<8x128xf32>
    %140 = vector.broadcast %122 : vector<1x128xf32> to vector<8x128xf32>
    %141 = arith.mulf %139, %140 : vector<8x128xf32>
    %142 = vector.broadcast %123 : vector<1x128xf32> to vector<8x128xf32>
    %143 = arith.addf %141, %142 : vector<8x128xf32>
    %cst_64 = arith.constant 0.000000e+00 : f32
    %144 = vector.broadcast %cst_64 : f32 to vector<8x128xf32>
    %145 = arith.maximumf %143, %144 : vector<8x128xf32>
    %146 = arith.truncf %145 : vector<8x128xf32> to vector<8x128xbf16>
    %c0_65 = arith.constant 0 : index
    %c0_66 = arith.constant 0 : index
    %147 = vector.load %arg8[%c0_65, %c0_66] : memref<128x128xbf16, #tpu.memory_space<vmem>>, vector<128x128xbf16>
    %cst_67 = arith.constant dense<0.000000e+00> : vector<8x128xf32>
    %148 = tpu.matmul %146, %147, %cst_67 {dimension_numbers = #tpu.dot_dimension_numbers<[1], [0], [0], [1], [0, 0, 1, 1], [], []>} : vector<8x128xbf16>, vector<128x128xbf16>, vector<8x128xf32> -> vector<8x128xf32>
    %c0_68 = arith.constant 0 : index
    %c0_69 = arith.constant 0 : index
    %149 = vector.load %arg10[%c0_68, %c0_69] : memref<3x128xf32, #tpu.memory_space<vmem>>, vector<1x128xf32>
    %150 = vector.broadcast %149 : vector<1x128xf32> to vector<8x128xf32>
    %151 = arith.addf %148, %150 : vector<8x128xf32>
    %c1_70 = arith.constant 1 : index
    %c0_71 = arith.constant 0 : index
    %152 = vector.load %arg10[%c1_70, %c0_71] : memref<3x128xf32, #tpu.memory_space<vmem>>, vector<1x128xf32>
    %c2_72 = arith.constant 2 : index
    %c0_73 = arith.constant 0 : index
    %153 = vector.load %arg10[%c2_72, %c0_73] : memref<3x128xf32, #tpu.memory_space<vmem>>, vector<1x128xf32>
    %cst_74 = arith.constant dense<0.000000e+00> : vector<8xf32>
    %154 = vector.multi_reduction <add>, %151, %cst_74 [1] : vector<8x128xf32> to vector<8xf32>
    %155 = vector.shape_cast %154 : vector<8xf32> to vector<8x1xf32>
    %cst_75 = arith.constant 1.280000e+02 : f32
    %156 = vector.broadcast %cst_75 : f32 to vector<8x1xf32>
    %157 = arith.divf %155, %156 : vector<8x1xf32>
    %158 = vector.broadcast %157 : vector<8x1xf32> to vector<8x128xf32>
    %159 = arith.subf %151, %158 : vector<8x128xf32>
    %160 = arith.mulf %159, %159 : vector<8x128xf32>
    %cst_76 = arith.constant dense<0.000000e+00> : vector<8xf32>
    %161 = vector.multi_reduction <add>, %160, %cst_76 [1] : vector<8x128xf32> to vector<8xf32>
    %162 = vector.shape_cast %161 : vector<8xf32> to vector<8x1xf32>
    %cst_77 = arith.constant 1.280000e+02 : f32
    %163 = vector.broadcast %cst_77 : f32 to vector<8x1xf32>
    %164 = arith.divf %162, %163 : vector<8x1xf32>
    %cst_78 = arith.constant 9.99999974E-6 : f32
    %165 = vector.broadcast %cst_78 : f32 to vector<8x1xf32>
    %166 = arith.addf %164, %165 : vector<8x1xf32>
    %167 = math.rsqrt %166 : vector<8x1xf32>
    %168 = vector.broadcast %167 : vector<8x1xf32> to vector<8x128xf32>
    %169 = arith.mulf %159, %168 : vector<8x128xf32>
    %170 = vector.broadcast %152 : vector<1x128xf32> to vector<8x128xf32>
    %171 = arith.mulf %169, %170 : vector<8x128xf32>
    %172 = vector.broadcast %153 : vector<1x128xf32> to vector<8x128xf32>
    %173 = arith.addf %171, %172 : vector<8x128xf32>
    %174 = arith.addf %173, %121 : vector<8x128xf32>
    %cst_79 = arith.constant 0.000000e+00 : f32
    %175 = vector.broadcast %cst_79 : f32 to vector<8x128xf32>
    %176 = arith.maximumf %174, %175 : vector<8x128xf32>
    %177 = arith.truncf %176 : vector<8x128xf32> to vector<8x128xbf16>
    %c0_80 = arith.constant 0 : index
    %c0_81 = arith.constant 0 : index
    %178 = vector.load %arg12[%c0_80, %c0_81] : memref<128x512xbf16, #tpu.memory_space<vmem>>, vector<128x512xbf16>
    %cst_82 = arith.constant dense<0.000000e+00> : vector<8x512xf32>
    %179 = tpu.matmul %177, %178, %cst_82 {dimension_numbers = #tpu.dot_dimension_numbers<[1], [0], [0], [1], [0, 0, 1, 1], [], []>} : vector<8x128xbf16>, vector<128x512xbf16>, vector<8x512xf32> -> vector<8x512xf32>
    %180 = vector.extract_strided_slice %179 {offsets = [0, 0], sizes = [8, 256], strides = [1, 1]} : vector<8x512xf32> to vector<8x256xf32>
    %c0_83 = arith.constant 0 : index
    %c0_84 = arith.constant 0 : index
    %181 = vector.load %arg14[%c0_83, %c0_84] : memref<3x256xf32, #tpu.memory_space<vmem>>, vector<1x256xf32>
    %182 = vector.broadcast %181 : vector<1x256xf32> to vector<8x256xf32>
    %183 = arith.addf %180, %182 : vector<8x256xf32>
    %184 = vector.extract_strided_slice %179 {offsets = [0, 256], sizes = [8, 256], strides = [1, 1]} : vector<8x512xf32> to vector<8x256xf32>
    %c0_85 = arith.constant 0 : index
    %c0_86 = arith.constant 0 : index
    %185 = vector.load %arg16[%c0_85, %c0_86] : memref<3x256xf32, #tpu.memory_space<vmem>>, vector<1x256xf32>
    %186 = vector.broadcast %185 : vector<1x256xf32> to vector<8x256xf32>
    %187 = arith.addf %184, %186 : vector<8x256xf32>
    %c1_87 = arith.constant 1 : index
    %c0_88 = arith.constant 0 : index
    %188 = vector.load %arg16[%c1_87, %c0_88] : memref<3x256xf32, #tpu.memory_space<vmem>>, vector<1x256xf32>
    %c2_89 = arith.constant 2 : index
    %c0_90 = arith.constant 0 : index
    %189 = vector.load %arg16[%c2_89, %c0_90] : memref<3x256xf32, #tpu.memory_space<vmem>>, vector<1x256xf32>
    %cst_91 = arith.constant dense<0.000000e+00> : vector<8xf32>
    %190 = vector.multi_reduction <add>, %187, %cst_91 [1] : vector<8x256xf32> to vector<8xf32>
    %191 = vector.shape_cast %190 : vector<8xf32> to vector<8x1xf32>
    %cst_92 = arith.constant 2.560000e+02 : f32
    %192 = vector.broadcast %cst_92 : f32 to vector<8x1xf32>
    %193 = arith.divf %191, %192 : vector<8x1xf32>
    %194 = vector.broadcast %193 : vector<8x1xf32> to vector<8x256xf32>
    %195 = arith.subf %187, %194 : vector<8x256xf32>
    %196 = arith.mulf %195, %195 : vector<8x256xf32>
    %cst_93 = arith.constant dense<0.000000e+00> : vector<8xf32>
    %197 = vector.multi_reduction <add>, %196, %cst_93 [1] : vector<8x256xf32> to vector<8xf32>
    %198 = vector.shape_cast %197 : vector<8xf32> to vector<8x1xf32>
    %cst_94 = arith.constant 2.560000e+02 : f32
    %199 = vector.broadcast %cst_94 : f32 to vector<8x1xf32>
    %200 = arith.divf %198, %199 : vector<8x1xf32>
    %cst_95 = arith.constant 9.99999974E-6 : f32
    %201 = vector.broadcast %cst_95 : f32 to vector<8x1xf32>
    %202 = arith.addf %200, %201 : vector<8x1xf32>
    %203 = math.rsqrt %202 : vector<8x1xf32>
    %204 = vector.broadcast %203 : vector<8x1xf32> to vector<8x256xf32>
    %205 = arith.mulf %195, %204 : vector<8x256xf32>
    %206 = vector.broadcast %188 : vector<1x256xf32> to vector<8x256xf32>
    %207 = arith.mulf %205, %206 : vector<8x256xf32>
    %208 = vector.broadcast %189 : vector<1x256xf32> to vector<8x256xf32>
    %209 = arith.addf %207, %208 : vector<8x256xf32>
    %c1_96 = arith.constant 1 : index
    %c0_97 = arith.constant 0 : index
    %210 = vector.load %arg14[%c1_96, %c0_97] : memref<3x256xf32, #tpu.memory_space<vmem>>, vector<1x256xf32>
    %c2_98 = arith.constant 2 : index
    %c0_99 = arith.constant 0 : index
    %211 = vector.load %arg14[%c2_98, %c0_99] : memref<3x256xf32, #tpu.memory_space<vmem>>, vector<1x256xf32>
    %cst_100 = arith.constant dense<0.000000e+00> : vector<8xf32>
    %212 = vector.multi_reduction <add>, %183, %cst_100 [1] : vector<8x256xf32> to vector<8xf32>
    %213 = vector.shape_cast %212 : vector<8xf32> to vector<8x1xf32>
    %cst_101 = arith.constant 2.560000e+02 : f32
    %214 = vector.broadcast %cst_101 : f32 to vector<8x1xf32>
    %215 = arith.divf %213, %214 : vector<8x1xf32>
    %216 = vector.broadcast %215 : vector<8x1xf32> to vector<8x256xf32>
    %217 = arith.subf %183, %216 : vector<8x256xf32>
    %218 = arith.mulf %217, %217 : vector<8x256xf32>
    %cst_102 = arith.constant dense<0.000000e+00> : vector<8xf32>
    %219 = vector.multi_reduction <add>, %218, %cst_102 [1] : vector<8x256xf32> to vector<8xf32>
    %220 = vector.shape_cast %219 : vector<8xf32> to vector<8x1xf32>
    %cst_103 = arith.constant 2.560000e+02 : f32
    %221 = vector.broadcast %cst_103 : f32 to vector<8x1xf32>
    %222 = arith.divf %220, %221 : vector<8x1xf32>
    %cst_104 = arith.constant 9.99999974E-6 : f32
    %223 = vector.broadcast %cst_104 : f32 to vector<8x1xf32>
    %224 = arith.addf %222, %223 : vector<8x1xf32>
    %225 = math.rsqrt %224 : vector<8x1xf32>
    %226 = vector.broadcast %225 : vector<8x1xf32> to vector<8x256xf32>
    %227 = arith.mulf %217, %226 : vector<8x256xf32>
    %228 = vector.broadcast %210 : vector<1x256xf32> to vector<8x256xf32>
    %229 = arith.mulf %227, %228 : vector<8x256xf32>
    %230 = vector.broadcast %211 : vector<1x256xf32> to vector<8x256xf32>
    %231 = arith.addf %229, %230 : vector<8x256xf32>
    %cst_105 = arith.constant 0.000000e+00 : f32
    %232 = vector.broadcast %cst_105 : f32 to vector<8x256xf32>
    %233 = arith.maximumf %231, %232 : vector<8x256xf32>
    %234 = arith.truncf %233 : vector<8x256xf32> to vector<8x256xbf16>
    %c0_106 = arith.constant 0 : index
    %c0_107 = arith.constant 0 : index
    %235 = vector.load %arg13[%c0_106, %c0_107] : memref<256x256xbf16, #tpu.memory_space<vmem>>, vector<256x256xbf16>
    %cst_108 = arith.constant dense<0.000000e+00> : vector<8x256xf32>
    %236 = tpu.matmul %234, %235, %cst_108 {dimension_numbers = #tpu.dot_dimension_numbers<[1], [0], [0], [1], [0, 0, 1, 1], [], []>} : vector<8x256xbf16>, vector<256x256xbf16>, vector<8x256xf32> -> vector<8x256xf32>
    %c0_109 = arith.constant 0 : index
    %c0_110 = arith.constant 0 : index
    %237 = vector.load %arg15[%c0_109, %c0_110] : memref<3x256xf32, #tpu.memory_space<vmem>>, vector<1x256xf32>
    %238 = vector.broadcast %237 : vector<1x256xf32> to vector<8x256xf32>
    %239 = arith.addf %236, %238 : vector<8x256xf32>
    %c1_111 = arith.constant 1 : index
    %c0_112 = arith.constant 0 : index
    %240 = vector.load %arg15[%c1_111, %c0_112] : memref<3x256xf32, #tpu.memory_space<vmem>>, vector<1x256xf32>
    %c2_113 = arith.constant 2 : index
    %c0_114 = arith.constant 0 : index
    %241 = vector.load %arg15[%c2_113, %c0_114] : memref<3x256xf32, #tpu.memory_space<vmem>>, vector<1x256xf32>
    %cst_115 = arith.constant dense<0.000000e+00> : vector<8xf32>
    %242 = vector.multi_reduction <add>, %239, %cst_115 [1] : vector<8x256xf32> to vector<8xf32>
    %243 = vector.shape_cast %242 : vector<8xf32> to vector<8x1xf32>
    %cst_116 = arith.constant 2.560000e+02 : f32
    %244 = vector.broadcast %cst_116 : f32 to vector<8x1xf32>
    %245 = arith.divf %243, %244 : vector<8x1xf32>
    %246 = vector.broadcast %245 : vector<8x1xf32> to vector<8x256xf32>
    %247 = arith.subf %239, %246 : vector<8x256xf32>
    %248 = arith.mulf %247, %247 : vector<8x256xf32>
    %cst_117 = arith.constant dense<0.000000e+00> : vector<8xf32>
    %249 = vector.multi_reduction <add>, %248, %cst_117 [1] : vector<8x256xf32> to vector<8xf32>
    %250 = vector.shape_cast %249 : vector<8xf32> to vector<8x1xf32>
    %cst_118 = arith.constant 2.560000e+02 : f32
    %251 = vector.broadcast %cst_118 : f32 to vector<8x1xf32>
    %252 = arith.divf %250, %251 : vector<8x1xf32>
    %cst_119 = arith.constant 9.99999974E-6 : f32
    %253 = vector.broadcast %cst_119 : f32 to vector<8x1xf32>
    %254 = arith.addf %252, %253 : vector<8x1xf32>
    %255 = math.rsqrt %254 : vector<8x1xf32>
    %256 = vector.broadcast %255 : vector<8x1xf32> to vector<8x256xf32>
    %257 = arith.mulf %247, %256 : vector<8x256xf32>
    %258 = vector.broadcast %240 : vector<1x256xf32> to vector<8x256xf32>
    %259 = arith.mulf %257, %258 : vector<8x256xf32>
    %260 = vector.broadcast %241 : vector<1x256xf32> to vector<8x256xf32>
    %261 = arith.addf %259, %260 : vector<8x256xf32>
    %262 = arith.addf %261, %209 : vector<8x256xf32>
    %cst_120 = arith.constant 0.000000e+00 : f32
    %263 = vector.broadcast %cst_120 : f32 to vector<8x256xf32>
    %264 = arith.maximumf %262, %263 : vector<8x256xf32>
    %265 = arith.truncf %264 : vector<8x256xf32> to vector<8x256xbf16>
    %c0_121 = arith.constant 0 : index
    %c0_122 = arith.constant 0 : index
    %266 = vector.load %arg17[%c0_121, %c0_122] : memref<256x1024xbf16, #tpu.memory_space<vmem>>, vector<256x1024xbf16>
    %cst_123 = arith.constant dense<0.000000e+00> : vector<8x1024xf32>
    %267 = tpu.matmul %265, %266, %cst_123 {dimension_numbers = #tpu.dot_dimension_numbers<[1], [0], [0], [1], [0, 0, 1, 1], [], []>} : vector<8x256xbf16>, vector<256x1024xbf16>, vector<8x1024xf32> -> vector<8x1024xf32>
    %268 = vector.extract_strided_slice %267 {offsets = [0, 0], sizes = [8, 512], strides = [1, 1]} : vector<8x1024xf32> to vector<8x512xf32>
    %c0_124 = arith.constant 0 : index
    %c0_125 = arith.constant 0 : index
    %269 = vector.load %arg19[%c0_124, %c0_125] : memref<3x512xf32, #tpu.memory_space<vmem>>, vector<1x512xf32>
    %270 = vector.broadcast %269 : vector<1x512xf32> to vector<8x512xf32>
    %271 = arith.addf %268, %270 : vector<8x512xf32>
    %272 = vector.extract_strided_slice %267 {offsets = [0, 512], sizes = [8, 512], strides = [1, 1]} : vector<8x1024xf32> to vector<8x512xf32>
    %c0_126 = arith.constant 0 : index
    %c0_127 = arith.constant 0 : index
    %273 = vector.load %arg21[%c0_126, %c0_127] : memref<3x512xf32, #tpu.memory_space<vmem>>, vector<1x512xf32>
    %274 = vector.broadcast %273 : vector<1x512xf32> to vector<8x512xf32>
    %275 = arith.addf %272, %274 : vector<8x512xf32>
    %c1_128 = arith.constant 1 : index
    %c0_129 = arith.constant 0 : index
    %276 = vector.load %arg21[%c1_128, %c0_129] : memref<3x512xf32, #tpu.memory_space<vmem>>, vector<1x512xf32>
    %c2_130 = arith.constant 2 : index
    %c0_131 = arith.constant 0 : index
    %277 = vector.load %arg21[%c2_130, %c0_131] : memref<3x512xf32, #tpu.memory_space<vmem>>, vector<1x512xf32>
    %cst_132 = arith.constant dense<0.000000e+00> : vector<8xf32>
    %278 = vector.multi_reduction <add>, %275, %cst_132 [1] : vector<8x512xf32> to vector<8xf32>
    %279 = vector.shape_cast %278 : vector<8xf32> to vector<8x1xf32>
    %cst_133 = arith.constant 5.120000e+02 : f32
    %280 = vector.broadcast %cst_133 : f32 to vector<8x1xf32>
    %281 = arith.divf %279, %280 : vector<8x1xf32>
    %282 = vector.broadcast %281 : vector<8x1xf32> to vector<8x512xf32>
    %283 = arith.subf %275, %282 : vector<8x512xf32>
    %284 = arith.mulf %283, %283 : vector<8x512xf32>
    %cst_134 = arith.constant dense<0.000000e+00> : vector<8xf32>
    %285 = vector.multi_reduction <add>, %284, %cst_134 [1] : vector<8x512xf32> to vector<8xf32>
    %286 = vector.shape_cast %285 : vector<8xf32> to vector<8x1xf32>
    %cst_135 = arith.constant 5.120000e+02 : f32
    %287 = vector.broadcast %cst_135 : f32 to vector<8x1xf32>
    %288 = arith.divf %286, %287 : vector<8x1xf32>
    %cst_136 = arith.constant 9.99999974E-6 : f32
    %289 = vector.broadcast %cst_136 : f32 to vector<8x1xf32>
    %290 = arith.addf %288, %289 : vector<8x1xf32>
    %291 = math.rsqrt %290 : vector<8x1xf32>
    %292 = vector.broadcast %291 : vector<8x1xf32> to vector<8x512xf32>
    %293 = arith.mulf %283, %292 : vector<8x512xf32>
    %294 = vector.broadcast %276 : vector<1x512xf32> to vector<8x512xf32>
    %295 = arith.mulf %293, %294 : vector<8x512xf32>
    %296 = vector.broadcast %277 : vector<1x512xf32> to vector<8x512xf32>
    %297 = arith.addf %295, %296 : vector<8x512xf32>
    %c1_137 = arith.constant 1 : index
    %c0_138 = arith.constant 0 : index
    %298 = vector.load %arg19[%c1_137, %c0_138] : memref<3x512xf32, #tpu.memory_space<vmem>>, vector<1x512xf32>
    %c2_139 = arith.constant 2 : index
    %c0_140 = arith.constant 0 : index
    %299 = vector.load %arg19[%c2_139, %c0_140] : memref<3x512xf32, #tpu.memory_space<vmem>>, vector<1x512xf32>
    %cst_141 = arith.constant dense<0.000000e+00> : vector<8xf32>
    %300 = vector.multi_reduction <add>, %271, %cst_141 [1] : vector<8x512xf32> to vector<8xf32>
    %301 = vector.shape_cast %300 : vector<8xf32> to vector<8x1xf32>
    %cst_142 = arith.constant 5.120000e+02 : f32
    %302 = vector.broadcast %cst_142 : f32 to vector<8x1xf32>
    %303 = arith.divf %301, %302 : vector<8x1xf32>
    %304 = vector.broadcast %303 : vector<8x1xf32> to vector<8x512xf32>
    %305 = arith.subf %271, %304 : vector<8x512xf32>
    %306 = arith.mulf %305, %305 : vector<8x512xf32>
    %cst_143 = arith.constant dense<0.000000e+00> : vector<8xf32>
    %307 = vector.multi_reduction <add>, %306, %cst_143 [1] : vector<8x512xf32> to vector<8xf32>
    %308 = vector.shape_cast %307 : vector<8xf32> to vector<8x1xf32>
    %cst_144 = arith.constant 5.120000e+02 : f32
    %309 = vector.broadcast %cst_144 : f32 to vector<8x1xf32>
    %310 = arith.divf %308, %309 : vector<8x1xf32>
    %cst_145 = arith.constant 9.99999974E-6 : f32
    %311 = vector.broadcast %cst_145 : f32 to vector<8x1xf32>
    %312 = arith.addf %310, %311 : vector<8x1xf32>
    %313 = math.rsqrt %312 : vector<8x1xf32>
    %314 = vector.broadcast %313 : vector<8x1xf32> to vector<8x512xf32>
    %315 = arith.mulf %305, %314 : vector<8x512xf32>
    %316 = vector.broadcast %298 : vector<1x512xf32> to vector<8x512xf32>
    %317 = arith.mulf %315, %316 : vector<8x512xf32>
    %318 = vector.broadcast %299 : vector<1x512xf32> to vector<8x512xf32>
    %319 = arith.addf %317, %318 : vector<8x512xf32>
    %cst_146 = arith.constant 0.000000e+00 : f32
    %320 = vector.broadcast %cst_146 : f32 to vector<8x512xf32>
    %321 = arith.maximumf %319, %320 : vector<8x512xf32>
    %322 = arith.truncf %321 : vector<8x512xf32> to vector<8x512xbf16>
    %c0_147 = arith.constant 0 : index
    %c0_148 = arith.constant 0 : index
    %323 = vector.load %arg18[%c0_147, %c0_148] : memref<512x512xbf16, #tpu.memory_space<vmem>>, vector<512x512xbf16>
    %cst_149 = arith.constant dense<0.000000e+00> : vector<8x512xf32>
    %324 = tpu.matmul %322, %323, %cst_149 {dimension_numbers = #tpu.dot_dimension_numbers<[1], [0], [0], [1], [0, 0, 1, 1], [], []>} : vector<8x512xbf16>, vector<512x512xbf16>, vector<8x512xf32> -> vector<8x512xf32>
    %c0_150 = arith.constant 0 : index
    %c0_151 = arith.constant 0 : index
    %325 = vector.load %arg20[%c0_150, %c0_151] : memref<3x512xf32, #tpu.memory_space<vmem>>, vector<1x512xf32>
    %326 = vector.broadcast %325 : vector<1x512xf32> to vector<8x512xf32>
    %327 = arith.addf %324, %326 : vector<8x512xf32>
    %c1_152 = arith.constant 1 : index
    %c0_153 = arith.constant 0 : index
    %328 = vector.load %arg20[%c1_152, %c0_153] : memref<3x512xf32, #tpu.memory_space<vmem>>, vector<1x512xf32>
    %c2_154 = arith.constant 2 : index
    %c0_155 = arith.constant 0 : index
    %329 = vector.load %arg20[%c2_154, %c0_155] : memref<3x512xf32, #tpu.memory_space<vmem>>, vector<1x512xf32>
    %cst_156 = arith.constant dense<0.000000e+00> : vector<8xf32>
    %330 = vector.multi_reduction <add>, %327, %cst_156 [1] : vector<8x512xf32> to vector<8xf32>
    %331 = vector.shape_cast %330 : vector<8xf32> to vector<8x1xf32>
    %cst_157 = arith.constant 5.120000e+02 : f32
    %332 = vector.broadcast %cst_157 : f32 to vector<8x1xf32>
    %333 = arith.divf %331, %332 : vector<8x1xf32>
    %334 = vector.broadcast %333 : vector<8x1xf32> to vector<8x512xf32>
    %335 = arith.subf %327, %334 : vector<8x512xf32>
    %336 = arith.mulf %335, %335 : vector<8x512xf32>
    %cst_158 = arith.constant dense<0.000000e+00> : vector<8xf32>
    %337 = vector.multi_reduction <add>, %336, %cst_158 [1] : vector<8x512xf32> to vector<8xf32>
    %338 = vector.shape_cast %337 : vector<8xf32> to vector<8x1xf32>
    %cst_159 = arith.constant 5.120000e+02 : f32
    %339 = vector.broadcast %cst_159 : f32 to vector<8x1xf32>
    %340 = arith.divf %338, %339 : vector<8x1xf32>
    %cst_160 = arith.constant 9.99999974E-6 : f32
    %341 = vector.broadcast %cst_160 : f32 to vector<8x1xf32>
    %342 = arith.addf %340, %341 : vector<8x1xf32>
    %343 = math.rsqrt %342 : vector<8x1xf32>
    %344 = vector.broadcast %343 : vector<8x1xf32> to vector<8x512xf32>
    %345 = arith.mulf %335, %344 : vector<8x512xf32>
    %346 = vector.broadcast %328 : vector<1x512xf32> to vector<8x512xf32>
    %347 = arith.mulf %345, %346 : vector<8x512xf32>
    %348 = vector.broadcast %329 : vector<1x512xf32> to vector<8x512xf32>
    %349 = arith.addf %347, %348 : vector<8x512xf32>
    %350 = arith.addf %349, %297 : vector<8x512xf32>
    %cst_161 = arith.constant 0.000000e+00 : f32
    %351 = vector.broadcast %cst_161 : f32 to vector<8x512xf32>
    %352 = arith.maximumf %350, %351 : vector<8x512xf32>
    %353 = arith.truncf %352 : vector<8x512xf32> to vector<8x512xbf16>
    %c0_162 = arith.constant 0 : index
    %c0_163 = arith.constant 0 : index
    %354 = vector.load %arg22[%c0_162, %c0_163] : memref<512x128xbf16, #tpu.memory_space<vmem>>, vector<512x128xbf16>
    %cst_164 = arith.constant dense<0.000000e+00> : vector<8x128xf32>
    %355 = tpu.matmul %353, %354, %cst_164 {dimension_numbers = #tpu.dot_dimension_numbers<[1], [0], [0], [1], [0, 0, 1, 1], [], []>} : vector<8x512xbf16>, vector<512x128xbf16>, vector<8x128xf32> -> vector<8x128xf32>
    %c0_165 = arith.constant 0 : index
    %c0_166 = arith.constant 0 : index
    %356 = vector.load %arg23[%c0_165, %c0_166] : memref<1x128xf32, #tpu.memory_space<vmem>>, vector<1x128xf32>
    %357 = vector.broadcast %356 : vector<1x128xf32> to vector<8x128xf32>
    %358 = arith.addf %355, %357 : vector<8x128xf32>
    %359 = arith.truncf %358 : vector<8x128xf32> to vector<8x128xbf16>
    %c0_167 = arith.constant 0 : index
    %c0_168 = arith.constant 0 : index
    %360 = vector.load %arg24[%c0_167, %c0_168] : memref<128x128xbf16, #tpu.memory_space<vmem>>, vector<128x128xbf16>
    %cst_169 = arith.constant dense<0.000000e+00> : vector<8x128xf32>
    %361 = tpu.matmul %359, %360, %cst_169 {dimension_numbers = #tpu.dot_dimension_numbers<[1], [0], [0], [1], [0, 0, 1, 1], [], []>} : vector<8x128xbf16>, vector<128x128xbf16>, vector<8x128xf32> -> vector<8x128xf32>
    %c0_170 = arith.constant 0 : index
    %c0_171 = arith.constant 0 : index
    %362 = vector.load %arg25[%c0_170, %c0_171] : memref<1x128xf32, #tpu.memory_space<vmem>>, vector<1x128xf32>
    %363 = vector.broadcast %362 : vector<1x128xf32> to vector<8x128xf32>
    %364 = arith.addf %361, %363 : vector<8x128xf32>
    %c0_172 = arith.constant 0 : index
    %c0_173 = arith.constant 0 : index
    %365 = vector.load %arg26[%c0_172, %c0_173] : memref<8x128xf32, #tpu.memory_space<vmem>>, vector<8x128xf32>
    tpu.vector_store %arg26[%c0_172, %c0_173], %364 {strides = array<i32>} : memref<8x128xf32, #tpu.memory_space<vmem>>, vector<8x128xf32>,
    return
  }
  func.func @transform_0(%arg0: i32) -> (i32, i32) {
    %c0_i32 = arith.constant 0 : i32
    %c0_i32_0 = arith.constant 0 : i32
    return %arg0, %c0_i32 : i32, i32
  }
  func.func @transform_1(%arg0: i32) -> (i32, i32) {
    %c0_i32 = arith.constant 0 : i32
    %c0_i32_0 = arith.constant 0 : i32
    %c0_i32_1 = arith.constant 0 : i32
    return %c0_i32, %c0_i32_0 : i32, i32
  }
  func.func @transform_2(%arg0: i32) -> (i32, i32) {
    %c0_i32 = arith.constant 0 : i32
    %c0_i32_0 = arith.constant 0 : i32
    %c0_i32_1 = arith.constant 0 : i32
    return %c0_i32, %c0_i32_0 : i32, i32
  }
  func.func @transform_3(%arg0: i32) -> (i32, i32) {
    %c0_i32 = arith.constant 0 : i32
    %c0_i32_0 = arith.constant 0 : i32
    %c0_i32_1 = arith.constant 0 : i32
    return %c0_i32, %c0_i32_0 : i32, i32
  }
  func.func @transform_4(%arg0: i32) -> (i32, i32) {
    %c0_i32 = arith.constant 0 : i32
    %c0_i32_0 = arith.constant 0 : i32
    %c0_i32_1 = arith.constant 0 : i32
    return %c0_i32, %c0_i32_0 : i32, i32
  }
  func.func @transform_5(%arg0: i32) -> (i32, i32) {
    %c0_i32 = arith.constant 0 : i32
    %c0_i32_0 = arith.constant 0 : i32
    %c0_i32_1 = arith.constant 0 : i32
    return %c0_i32, %c0_i32_0 : i32, i32
  }
  func.func @transform_6(%arg0: i32) -> (i32, i32) {
    %c0_i32 = arith.constant 0 : i32
    %c0_i32_0 = arith.constant 0 : i32
    %c0_i32_1 = arith.constant 0 : i32
    return %c0_i32, %c0_i32_0 : i32, i32
  }
  func.func @transform_7(%arg0: i32) -> (i32, i32) {
    %c0_i32 = arith.constant 0 : i32
    %c0_i32_0 = arith.constant 0 : i32
    %c0_i32_1 = arith.constant 0 : i32
    return %c0_i32, %c0_i32_0 : i32, i32
  }
  func.func @transform_8(%arg0: i32) -> (i32, i32) {
    %c0_i32 = arith.constant 0 : i32
    %c0_i32_0 = arith.constant 0 : i32
    %c0_i32_1 = arith.constant 0 : i32
    return %c0_i32, %c0_i32_0 : i32, i32
  }
  func.func @transform_9(%arg0: i32) -> (i32, i32) {
    %c0_i32 = arith.constant 0 : i32
    %c0_i32_0 = arith.constant 0 : i32
    %c0_i32_1 = arith.constant 0 : i32
    return %c0_i32, %c0_i32_0 : i32, i32
  }
  func.func @transform_10(%arg0: i32) -> (i32, i32) {
    %c0_i32 = arith.constant 0 : i32
    %c0_i32_0 = arith.constant 0 : i32
    %c0_i32_1 = arith.constant 0 : i32
    return %c0_i32, %c0_i32_0 : i32, i32
  }
  func.func @transform_11(%arg0: i32) -> (i32, i32) {
    %c0_i32 = arith.constant 0 : i32
    %c0_i32_0 = arith.constant 0 : i32
    %c0_i32_1 = arith.constant 0 : i32
    return %c0_i32, %c0_i32_0 : i32, i32
  }
  func.func @transform_12(%arg0: i32) -> (i32, i32) {
    %c0_i32 = arith.constant 0 : i32
    %c0_i32_0 = arith.constant 0 : i32
    %c0_i32_1 = arith.constant 0 : i32
    return %c0_i32, %c0_i32_0 : i32, i32
  }
  func.func @transform_13(%arg0: i32) -> (i32, i32) {
    %c0_i32 = arith.constant 0 : i32
    %c0_i32_0 = arith.constant 0 : i32
    %c0_i32_1 = arith.constant 0 : i32
    return %c0_i32, %c0_i32_0 : i32, i32
  }
  func.func @transform_14(%arg0: i32) -> (i32, i32) {
    %c0_i32 = arith.constant 0 : i32
    %c0_i32_0 = arith.constant 0 : i32
    %c0_i32_1 = arith.constant 0 : i32
    return %c0_i32, %c0_i32_0 : i32, i32
  }
  func.func @transform_15(%arg0: i32) -> (i32, i32) {
    %c0_i32 = arith.constant 0 : i32
    %c0_i32_0 = arith.constant 0 : i32
    %c0_i32_1 = arith.constant 0 : i32
    return %c0_i32, %c0_i32_0 : i32, i32
  }
  func.func @transform_16(%arg0: i32) -> (i32, i32) {
    %c0_i32 = arith.constant 0 : i32
    %c0_i32_0 = arith.constant 0 : i32
    %c0_i32_1 = arith.constant 0 : i32
    return %c0_i32, %c0_i32_0 : i32, i32
  }
  func.func @transform_17(%arg0: i32) -> (i32, i32) {
    %c0_i32 = arith.constant 0 : i32
    %c0_i32_0 = arith.constant 0 : i32
    %c0_i32_1 = arith.constant 0 : i32
    return %c0_i32, %c0_i32_0 : i32, i32
  }
  func.func @transform_18(%arg0: i32) -> (i32, i32) {
    %c0_i32 = arith.constant 0 : i32
    %c0_i32_0 = arith.constant 0 : i32
    %c0_i32_1 = arith.constant 0 : i32
    return %c0_i32, %c0_i32_0 : i32, i32
  }
  func.func @transform_19(%arg0: i32) -> (i32, i32) {
    %c0_i32 = arith.constant 0 : i32
    %c0_i32_0 = arith.constant 0 : i32
    %c0_i32_1 = arith.constant 0 : i32
    return %c0_i32, %c0_i32_0 : i32, i32
  }
  func.func @transform_20(%arg0: i32) -> (i32, i32) {
    %c0_i32 = arith.constant 0 : i32
    %c0_i32_0 = arith.constant 0 : i32
    %c0_i32_1 = arith.constant 0 : i32
    return %c0_i32, %c0_i32_0 : i32, i32
  }
  func.func @transform_21(%arg0: i32) -> (i32, i32) {
    %c0_i32 = arith.constant 0 : i32
    %c0_i32_0 = arith.constant 0 : i32
    %c0_i32_1 = arith.constant 0 : i32
    return %c0_i32, %c0_i32_0 : i32, i32
  }
  func.func @transform_22(%arg0: i32) -> (i32, i32) {
    %c0_i32 = arith.constant 0 : i32
    %c0_i32_0 = arith.constant 0 : i32
    %c0_i32_1 = arith.constant 0 : i32
    return %c0_i32, %c0_i32_0 : i32, i32
  }
  func.func @transform_23(%arg0: i32) -> (i32, i32) {
    %c0_i32 = arith.constant 0 : i32
    %c0_i32_0 = arith.constant 0 : i32
    %c0_i32_1 = arith.constant 0 : i32
    return %c0_i32, %c0_i32_0 : i32, i32
  }
  func.func @transform_24(%arg0: i32) -> (i32, i32) {
    %c0_i32 = arith.constant 0 : i32
    %c0_i32_0 = arith.constant 0 : i32
    %c0_i32_1 = arith.constant 0 : i32
    return %c0_i32, %c0_i32_0 : i32, i32
  }
  func.func @transform_25(%arg0: i32) -> (i32, i32) {
    %c0_i32 = arith.constant 0 : i32
    %c0_i32_0 = arith.constant 0 : i32
    return %arg0, %c0_i32 : i32, i32
  }
}

</mosaic_0001>

<bundles_post_ra>
// kernel: _resnet_forward_impl.1
= control target key start
LH: loop header
LB: loop body
LE: loop exit
PB: predicated region body
PF: predicated region fallthrough
CT: control target
= control target key end

     0   :  { %s6441_s0 = inlined_call_operand.hbm [shape: f32[8,16], index: 0, kind: input, shape index: {}]   ;;  %s6442_s1 = inlined_call_operand.hbm [shape: bf16[16,256], index: 1, kind: input, shape index: {}]   ;;  %s6443_s2 = inlined_call_operand.hbm [shape: bf16[64,64], index: 2, kind: input, shape index: {}]   ;;  %s6444_s3 = inlined_call_operand.vmem [shape: f32[3,64], index: 3, kind: input, shape index: {}]   ;;  %s6445_s4 = inlined_call_operand.hbm [shape: f32[3,64], index: 4, kind: input, shape index: {}]   ;;  %s6446_s5 = inlined_call_operand.hbm [shape: f32[3,64], index: 5, kind: input, shape index: {}]   ;;  %s6447_s6 = inlined_call_operand.hbm [shape: bf16[64,256], index: 6, kind: input, shape index: {}]   ;;  %s6448_s7 = inlined_call_operand.hbm [shape: bf16[128,128], index: 7, kind: input, shape index: {}]   ;;  %s6449_s8 = inlined_call_operand.hbm [shape: f32[3,128], index: 8, kind: input, shape index: {}]   ;;  %s6450_s9 = inlined_call_operand.hbm [shape: f32[3,128], index: 9, kind: input, shape index: {}]   ;;  %s6451_s10 = inlined_call_operand.hbm [shape: f32[3,128], index: 10, kind: input, shape index: {}]   ;;  %s6452_s11 = inlined_call_operand.hbm [shape: bf16[128,512], index: 11, kind: input, shape index: {}]   ;;  %s6453_s12 = inlined_call_operand.hbm [shape: bf16[256,256], index: 12, kind: input, shape index: {}]   ;;  %s6454_s13 = inlined_call_operand.hbm [shape: f32[3,256], index: 13, kind: input, shape index: {}]   ;;  %s6455_s14 = inlined_call_operand.hbm [shape: f32[3,256], index: 14, kind: input, shape index: {}]   ;;  %s6456_s15 = inlined_call_operand.hbm [shape: f32[3,256], index: 15, kind: input, shape index: {}]   ;;  %s6457_s16 = inlined_call_operand.hbm [shape: bf16[256,1024], index: 16, kind: input, shape index: {}]   ;;  %s6458_s17 = inlined_call_operand.hbm [shape: bf16[512,512], index: 17, kind: input, shape index: {}]   ;;  %s6459_s18 = inlined_call_operand.vmem [shape: f32[3,512], index: 18, kind: input, shape index: {}]   ;;  %s6460_s19 = inlined_call_operand.hbm [shape: f32[3,512], index: 19, kind: input, shape index: {}]   ;;  %s6461_s20 = inlined_call_operand.hbm [shape: f32[3,512], index: 20, kind: input, shape index: {}]   ;;  %s6462_s21 = inlined_call_operand.hbm [shape: bf16[512,128], index: 21, kind: input, shape index: {}]   ;;  %s6463_s22 = inlined_call_operand.vmem [shape: f32[1,128], index: 22, kind: input, shape index: {}]   ;;  %s6464_s23 = inlined_call_operand.vmem [shape: bf16[128,128], index: 23, kind: input, shape index: {}]   ;;  %s6465_s24 = inlined_call_operand.vmem [shape: f32[1,128], index: 24, kind: input, shape index: {}]   ;;  %s6466_s25 = inlined_call_operand.hbm [shape: f32[8,128], index: 25, kind: output, shape index: {}]  }
   0x1   :  { %6478 = sst [smem:[#allocation47_spill]] %s6441_s0 }
   0x2   :  { %6479 = sst [smem:[#allocation48_spill]] %s6442_s1 }
   0x3   :  { %6480 = sst [smem:[#allocation49_spill]] %s6443_s2 }
   0x4   :  { %6481 = sst [smem:[#allocation50_spill]] %s6444_s3 }
   0x5   :  { %6482 = sst [smem:[#allocation51_spill]] %s6445_s4 }
   0x6   :  { %6483 = sst [smem:[#allocation52_spill]] %s6446_s5 }
   0x7   :  { %6484 = sst [smem:[#allocation53_spill]] %s6447_s6 }
   0x8   :  { %6485 = sst [smem:[#allocation54_spill]] %s6448_s7 }
   0x9   :  { %6486 = sst [smem:[#allocation55_spill]] %s6449_s8 }
   0xa   :  { %6487 = sst [smem:[#allocation56_spill]] %s6450_s9 }
   0xb   :  { %6488 = sst [smem:[#allocation57_spill]] %s6463_s22 }
   0xc   :  { %6489 = sst [smem:[#allocation58_spill]] %s6465_s24 }
   0xd   :  { %6490 = sst [smem:[#allocation59_spill]] %s6466_s25 }
   0xe   :  { %30 = vsyncpa [#allocation3], 0 }
   0xf   :  { %31 = vsyncpa [#allocation6], 0 }
  0x10   :  { %32 = vsyncpa [#allocation9], 0 }
  0x11   :  { %33 = vsyncpa [#allocation12], 0 }
  0x12   :  { %34 = vsyncpa [#allocation15], 0 }
  0x13   :  { %35 = vsyncpa [#allocation18], 0 }
  0x14   :  { %36 = vsyncpa [#allocation21], 0 }
  0x15   :  { %37 = vsyncpa [#allocation24], 0 }
  0x16   :  { %38 = vsyncpa [#allocation27], 0 }
  0x17   :  { %39 = vsyncpa [#allocation30], 0 }
  0x18   :  { %40 = vsyncpa [#allocation33], 0 }
  0x19   :  { %41 = vsyncpa [#allocation4], 0  ;;  %s5663_s29 = smov [#allocation5]   ;;  %s6491_s7 = sld [smem:[#allocation48_spill]] }
  0x1a   :  { %s57_s2 = sshll.u32 %s5663_s29, 4  ;;  %s58_s2 = int_to_ptr.vmem [resolvable:$true] %s57_s2 }
  0x1f   :  { %s5177_s3 = scalar_lea.hbm %s6491_s7, 256 }
  0x20   :  { %p5178_p0 = scmp.ne.s32.totalorder %s6491_s7, %s5177_s3  ;;  %p5181_p1 = scmp.lt.u32.totalorder %s5177_s3, %s6491_s7 }
  0x22   :  { %p5183_p2 = pnand %p5181_p1, %p5178_p0 }
  0x24   :  { %5186 = shalt.err (!%p5183_p2)
}
  0x25   :  { %s5187_s4 = scalar_lea.vmem %s58_s2, 256  ;;  %p5192_p4 = scmp.lt.s32.totalorder %s58_s2, %s58_s2 }
  0x26   :  { %p5188_p3 = scmp.ne.s32.totalorder %s58_s2, %s5187_s4  ;;  %p5193_p5 = scmp.lt.s32.totalorder %s5187_s4, %s5187_s4 }
  0x28   :  { %p5194_p6 = por %p5193_p5, %p5192_p4 }
  0x2a   :  { %p5195_p7 = pnand %p5194_p6, %p5188_p3 }
  0x2c   :  { %5198 = shalt.err (!%p5195_p7)
}
  0x2d   :  { %s5664_s28 = smov 128   ;;  %s5665_s9 = smov 8  }
  0x2e   :  { %63 = dma.hbm_to_vmem [thread:$0]  %s6491_s7, 256, %s58_s2, [#allocation6], %s5664_s28, %s5664_s28, %s5665_s9  }
  0x2f   :  { %s5666_s29 = smov [#allocation8]   ;;  %s5667_s30 = smov [#allocation11]  }
  0x30   :  { %s84_s6 = sshll.u32 %s5666_s29, 4  ;;  %s103_s3 = sshll.u32 %s5667_s30, 4  ;;  %s85_s6 = int_to_ptr.vmem [resolvable:$true] %s84_s6  ;;  %s104_s3 = int_to_ptr.vmem [resolvable:$true] %s103_s3 }
  0x31   :  { %s6492_s8 = sld [smem:[#allocation51_spill]] }
  0x37   :  { %s5199_s27 = scalar_lea.hbm %s6492_s8, 64 }
  0x38   :  { %p5200_p8 = scmp.ne.s32.totalorder %s6492_s8, %s5199_s27  ;;  %p5203_p9 = scmp.lt.u32.totalorder %s5199_s27, %s6492_s8 }
  0x3a   :  { %p5205_p10 = pnand %p5203_p9, %p5200_p8 }
  0x3c   :  { %5208 = shalt.err (!%p5205_p10)
}
  0x3d   :  { %s5209_s2 = scalar_lea.vmem %s85_s6, 64  ;;  %p5214_p12 = scmp.lt.s32.totalorder %s85_s6, %s85_s6 }
  0x3e   :  { %p5210_p11 = scmp.ne.s32.totalorder %s85_s6, %s5209_s2  ;;  %p5215_p13 = scmp.lt.s32.totalorder %s5209_s2, %s5209_s2 }
  0x40   :  { %p5216_p0 = por %p5215_p13, %p5214_p12 }
  0x42   :  { %p5217_p1 = pnand %p5216_p0, %p5210_p11 }
  0x44   :  { %5220 = shalt.err (!%p5217_p1)
}
  0x45   :  { %87 = dma.hbm_to_vmem [thread:$0]  %s6492_s8, 64, %s85_s6, [#allocation9]  }
  0x46   :  { %s6493_s29 = sld [smem:[#allocation53_spill]] }
  0x4c   :  { %s5221_s30 = scalar_lea.hbm %s6493_s29, 1024 }
  0x4d   :  { %p5222_p2 = scmp.ne.s32.totalorder %s6493_s29, %s5221_s30  ;;  %p5225_p3 = scmp.lt.u32.totalorder %s5221_s30, %s6493_s29 }
  0x4f   :  { %p5227_p4 = pnand %p5225_p3, %p5222_p2 }
  0x51   :  { %5230 = shalt.err (!%p5227_p4)
}
  0x52   :  { %s5231_s27 = scalar_lea.vmem %s104_s3, 1024  ;;  %p5236_p6 = scmp.lt.s32.totalorder %s104_s3, %s104_s3 }
  0x53   :  { %p5232_p5 = scmp.ne.s32.totalorder %s104_s3, %s5231_s27  ;;  %p5237_p7 = scmp.lt.s32.totalorder %s5231_s27, %s5231_s27 }
  0x55   :  { %p5238_p8 = por %p5237_p7, %p5236_p6 }
  0x57   :  { %p5239_p9 = pnand %p5238_p8, %p5232_p5 }
  0x59   :  { %5242 = shalt.err (!%p5239_p9)
}
  0x5a   :  { %109 = dma.hbm_to_vmem [thread:$0]  %s6493_s29, 1024, %s104_s3, [#allocation12], %s5664_s28, %s5664_s28, %s5665_s9  }
  0x5b   :  { %s5668_s4 = smov [#allocation14]   ;;  %s5669_s7 = smov [#allocation17]  }
  0x5c   :  { %s128_s2 = sshll.u32 %s5668_s4, 4  ;;  %s148_s5 = sshll.u32 %s5669_s7, 4  ;;  %s129_s2 = int_to_ptr.vmem [resolvable:$true] %s128_s2  ;;  %s149_s5 = int_to_ptr.vmem [resolvable:$true] %s148_s5 }
  0x5d   :  { %s6494_s30 = sld [smem:[#allocation55_spill]] }
  0x63   :  { %s5243_s22 = scalar_lea.hbm %s6494_s30, 64 }
  0x64   :  { %p5244_p10 = scmp.ne.s32.totalorder %s6494_s30, %s5243_s22  ;;  %p5247_p11 = scmp.lt.u32.totalorder %s5243_s22, %s6494_s30 }
  0x66   :  { %p5249_p12 = pnand %p5247_p11, %p5244_p10 }
  0x68   :  { %5252 = shalt.err (!%p5249_p12)
}
  0x69   :  { %s5253_s3 = scalar_lea.vmem %s129_s2, 64  ;;  %p5258_p0 = scmp.lt.s32.totalorder %s129_s2, %s129_s2 }
  0x6a   :  { %p5254_p13 = scmp.ne.s32.totalorder %s129_s2, %s5253_s3  ;;  %p5259_p1 = scmp.lt.s32.totalorder %s5253_s3, %s5253_s3 }
  0x6c   :  { %p5260_p2 = por %p5259_p1, %p5258_p0 }
  0x6e   :  { %p5261_p3 = pnand %p5260_p2, %p5254_p13 }
  0x70   :  { %5264 = shalt.err (!%p5261_p3)
}
  0x71   :  { %131 = dma.hbm_to_vmem [thread:$0]  %s6494_s30, 64, %s129_s2, [#allocation15]  }
  0x72   :  { %s5265_s7 = scalar_lea.hbm %s6451_s10, 64 }
  0x73   :  { %p5266_p4 = scmp.ne.s32.totalorder %s6451_s10, %s5265_s7  ;;  %p5269_p5 = scmp.lt.u32.totalorder %s5265_s7, %s6451_s10 }
  0x75   :  { %p5271_p6 = pnand %p5269_p5, %p5266_p4 }
  0x77   :  { %5274 = shalt.err (!%p5271_p6)
}
  0x78   :  { %s5275_s26 = scalar_lea.vmem %s149_s5, 64  ;;  %p5280_p8 = scmp.lt.s32.totalorder %s149_s5, %s149_s5 }
  0x79   :  { %p5276_p7 = scmp.ne.s32.totalorder %s149_s5, %s5275_s26  ;;  %p5281_p9 = scmp.lt.s32.totalorder %s5275_s26, %s5275_s26 }
  0x7b   :  { %p5282_p10 = por %p5281_p9, %p5280_p8 }
  0x7d   :  { %p5283_p11 = pnand %p5282_p10, %p5276_p7 }
  0x7f   :  { %5286 = shalt.err (!%p5283_p11)
}
  0x80   :  { %151 = dma.hbm_to_vmem [thread:$0]  %s6451_s10, 64, %s149_s5, [#allocation18]  }
  0x81   :  { %s5670_s1 = smov [#allocation20]   ;;  %s5671_s3 = smov [#allocation23]  }
  0x82   :  { %s169_s27 = sshll.u32 %s5670_s1, 4  ;;  %s192_s29 = sshll.u32 %s5671_s3, 4  ;;  %s170_s27 = int_to_ptr.vmem [resolvable:$true] %s169_s27  ;;  %s193_s29 = int_to_ptr.vmem [resolvable:$true] %s192_s29 }
  0x83   :  { %s5287_s4 = scalar_lea.hbm %s6453_s12, 4096 }
  0x84   :  { %p5288_p12 = scmp.ne.s32.totalorder %s6453_s12, %s5287_s4  ;;  %p5291_p13 = scmp.lt.u32.totalorder %s5287_s4, %s6453_s12 }
  0x86   :  { %p5293_p0 = pnand %p5291_p13, %p5288_p12 }
  0x88   :  { %5296 = shalt.err (!%p5293_p0)
}
  0x89   :  { %s5297_s10 = scalar_lea.vmem %s170_s27, 4096  ;;  %p5302_p2 = scmp.lt.s32.totalorder %s170_s27, %s170_s27 }
  0x8a   :  { %p5298_p1 = scmp.ne.s32.totalorder %s170_s27, %s5297_s10  ;;  %p5303_p3 = scmp.lt.s32.totalorder %s5297_s10, %s5297_s10 }
  0x8c   :  { %p5304_p4 = por %p5303_p3, %p5302_p2 }
  0x8e   :  { %p5305_p5 = pnand %p5304_p4, %p5298_p1 }
  0x90   :  { %5308 = shalt.err (!%p5305_p5)
}
  0x91   :  { %175 = dma.hbm_to_vmem [thread:$0]  %s6453_s12, 4096, %s170_s27, [#allocation21], %s5664_s28, %s5664_s28, %s5665_s9  }
  0x92   :  { %s5309_s30 = scalar_lea.hbm %s6455_s14, 128 }
  0x93   :  { %p5310_p6 = scmp.ne.s32.totalorder %s6455_s14, %s5309_s30  ;;  %p5313_p7 = scmp.lt.u32.totalorder %s5309_s30, %s6455_s14 }
  0x95   :  { %p5315_p8 = pnand %p5313_p7, %p5310_p6 }
  0x97   :  { %5318 = shalt.err (!%p5315_p8)
}
  0x98   :  { %s5319_s4 = scalar_lea.vmem %s193_s29, 128  ;;  %p5324_p10 = scmp.lt.s32.totalorder %s193_s29, %s193_s29 }
  0x99   :  { %p5320_p9 = scmp.ne.s32.totalorder %s193_s29, %s5319_s4  ;;  %p5325_p11 = scmp.lt.s32.totalorder %s5319_s4, %s5319_s4 }
  0x9b   :  { %p5326_p12 = por %p5325_p11, %p5324_p10 }
  0x9d   :  { %p5327_p13 = pnand %p5326_p12, %p5320_p9 }
  0x9f   :  { %5330 = shalt.err (!%p5327_p13)
}
  0xa0   :  { %195 = dma.hbm_to_vmem [thread:$0]  %s6455_s14, 128, %s193_s29, [#allocation24]  }
  0xa1   :  { %s5672_s9 = smov [#allocation26]   ;;  %s5331_s0 = scalar_lea.hbm %s6457_s16, 16384 }
  0xa2   :  { %s211_s27 = sshll.u32 %s5672_s9, 4  ;;  %p5332_p0 = scmp.ne.s32.totalorder %s6457_s16, %s5331_s0  ;;  %s212_s27 = int_to_ptr.vmem [resolvable:$true] %s211_s27 }
  0xa3   :  { %p5335_p1 = scmp.lt.u32.totalorder %s5331_s0, %s6457_s16 }
  0xa5   :  { %p5337_p2 = pnand %p5335_p1, %p5332_p0 }
  0xa7   :  { %5340 = shalt.err (!%p5337_p2)
}
  0xa8   :  { %s5341_s26 = scalar_lea.vmem %s212_s27, 16384  ;;  %p5346_p4 = scmp.lt.s32.totalorder %s212_s27, %s212_s27 }
  0xa9   :  { %p5342_p3 = scmp.ne.s32.totalorder %s212_s27, %s5341_s26  ;;  %p5347_p5 = scmp.lt.s32.totalorder %s5341_s26, %s5341_s26 }
  0xab   :  { %p5348_p6 = por %p5347_p5, %p5346_p4 }
  0xad   :  { %p5349_p7 = pnand %p5348_p6, %p5342_p3 }
  0xaf   :  { %5352 = shalt.err (!%p5349_p7)
}
  0xb0   :  { %s5673_s14 = smov 512   ;;  %s5674_s29 = smov 32  }
  0xb1   :  { %217 = dma.hbm_to_vmem [thread:$0]  %s6457_s16, 16384, %s212_s27, [#allocation27], %s5673_s14, %s5673_s14, %s5674_s29  }
  0xb2   :  { %s5675_s1 = smov [#allocation29]   ;;  %s5676_s6 = smov [#allocation2]  }
  0xb3   :  { %s238_s3 = sshll.u32 %s5675_s1, 4  ;;  %s48_s8 = sshll.u32 %s5676_s6, 4  ;;  %s239_s3 = int_to_ptr.vmem [resolvable:$true] %s238_s3  ;;  %s49_s8 = int_to_ptr.vmem [resolvable:$true] %s48_s8 }
  0xb4   :  { %s5353_s28 = scalar_lea.hbm %s6460_s19, 256 }
  0xb5   :  { %p5354_p8 = scmp.ne.s32.totalorder %s6460_s19, %s5353_s28  ;;  %p5357_p9 = scmp.lt.u32.totalorder %s5353_s28, %s6460_s19 }
  0xb7   :  { %p5359_p10 = pnand %p5357_p9, %p5354_p8 }
  0xb9   :  { %5362 = shalt.err (!%p5359_p10)
}
  0xba   :  { %s5363_s16 = scalar_lea.vmem %s239_s3, 256  ;;  %p5368_p12 = scmp.lt.s32.totalorder %s239_s3, %s239_s3 }
  0xbb   :  { %p5364_p11 = scmp.ne.s32.totalorder %s239_s3, %s5363_s16  ;;  %p5369_p13 = scmp.lt.s32.totalorder %s5363_s16, %s5363_s16 }
  0xbd   :  { %p5370_p0 = por %p5369_p13, %p5368_p12 }
  0xbf   :  { %p5371_p1 = pnand %p5370_p0, %p5364_p11 }
  0xc1   :  { %5374 = shalt.err (!%p5371_p1)
}
  0xc2   :  { %241 = dma.hbm_to_vmem [thread:$0]  %s6460_s19, 256, %s239_s3, [#allocation30]  }
  0xc3   :  { %s6495_s24 = sld [smem:[#allocation47_spill]] }
  0xc9   :  { %s5375_s26 = scalar_lea.hbm %s6495_s24, 128 }
  0xca   :  { %p5376_p2 = scmp.ne.s32.totalorder %s6495_s24, %s5375_s26  ;;  %p5379_p3 = scmp.lt.u32.totalorder %s5375_s26, %s6495_s24 }
  0xcc   :  { %p5381_p4 = pnand %p5379_p3, %p5376_p2 }
  0xce   :  { %5384 = shalt.err (!%p5381_p4)
}
  0xcf   :  { %s5385_s1 = scalar_lea.vmem %s49_s8, 128  ;;  %p5390_p6 = scmp.lt.s32.totalorder %s49_s8, %s49_s8 }
  0xd0   :  { %p5386_p5 = scmp.ne.s32.totalorder %s49_s8, %s5385_s1  ;;  %p5391_p7 = scmp.lt.s32.totalorder %s5385_s1, %s5385_s1 }
  0xd2   :  { %p5392_p8 = por %p5391_p7, %p5390_p6 }
  0xd4   :  { %p5393_p9 = pnand %p5392_p8, %p5386_p5 }
  0xd6   :  { %5396 = shalt.err (!%p5393_p9)
}
  0xd7   :  { %51 = dma.hbm_to_vmem [thread:$0]  %s6495_s24, 128, %s49_s8, [#allocation3]  }
  0xd8   :  { %s5677_s6 = smov [#allocation7]   ;;  %s6496_s9 = sld [smem:[#allocation49_spill]] }
  0xd9   :  { %s69_s4 = sshll.u32 %s5677_s6, 4  ;;  %s70_s4 = int_to_ptr.vmem [resolvable:$true] %s69_s4 }
  0xde   :  { %s5397_s7 = scalar_lea.hbm %s6496_s9, 512 }
  0xdf   :  { %p5398_p10 = scmp.ne.s32.totalorder %s6496_s9, %s5397_s7  ;;  %p5401_p11 = scmp.lt.u32.totalorder %s5397_s7, %s6496_s9 }
  0xe1   :  { %p5403_p12 = pnand %p5401_p11, %p5398_p10 }
  0xe3   :  { %5406 = shalt.err (!%p5403_p12)
}
  0xe4   :  { %s5407_s22 = scalar_lea.vmem %s70_s4, 512  ;;  %p5412_p0 = scmp.lt.s32.totalorder %s70_s4, %s70_s4 }
  0xe5   :  { %p5408_p13 = scmp.ne.s32.totalorder %s70_s4, %s5407_s22  ;;  %p5413_p1 = scmp.lt.s32.totalorder %s5407_s22, %s5407_s22 }
  0xe7   :  { %p5414_p2 = por %p5413_p1, %p5412_p0 }
  0xe9   :  { %p5415_p3 = pnand %p5414_p2, %p5408_p13 }
  0xeb   :  { %5418 = shalt.err (!%p5415_p3)
}
  0xec   :  { %s5678_s8 = smov 64   ;;  %s5679_s10 = smov 4  }
  0xed   :  { %75 = dma.hbm_to_vmem [thread:$0]  %s6496_s9, 512, %s70_s4, [#allocation6], %s5678_s8, %s5678_s8, %s5679_s10  }
  0xee   :  { %s5680_s26 = smov [#allocation10]   ;;  %s5681_s29 = smov [#allocation13]  }
  0xef   :  { %s94_s14 = sshll.u32 %s5680_s26, 4  ;;  %s115_s2 = sshll.u32 %s5681_s29, 4  ;;  %s95_s14 = int_to_ptr.vmem [resolvable:$true] %s94_s14  ;;  %s116_s2 = int_to_ptr.vmem [resolvable:$true] %s115_s2 }
  0xf0   :  { %s6497_s19 = sld [smem:[#allocation52_spill]] }
  0xf6   :  { %s5419_s3 = scalar_lea.hbm %s6497_s19, 64 }
  0xf7   :  { %p5420_p4 = scmp.ne.s32.totalorder %s6497_s19, %s5419_s3  ;;  %p5423_p5 = scmp.lt.u32.totalorder %s5419_s3, %s6497_s19 }
  0xf9   :  { %p5425_p6 = pnand %p5423_p5, %p5420_p4 }
  0xfb   :  { %5428 = shalt.err (!%p5425_p6)
}
  0xfc   :  { %s5429_s4 = scalar_lea.vmem %s95_s14, 64  ;;  %p5434_p8 = scmp.lt.s32.totalorder %s95_s14, %s95_s14 }
  0xfd   :  { %p5430_p7 = scmp.ne.s32.totalorder %s95_s14, %s5429_s4  ;;  %p5435_p9 = scmp.lt.s32.totalorder %s5429_s4, %s5429_s4 }
  0xff   :  { %p5436_p10 = por %p5435_p9, %p5434_p8 }
 0x101   :  { %p5437_p11 = pnand %p5436_p10, %p5430_p7 }
 0x103   :  { %5440 = shalt.err (!%p5437_p11)
}
 0x104   :  { %97 = dma.hbm_to_vmem [thread:$0]  %s6497_s19, 64, %s95_s14, [#allocation9]  }
 0x105   :  { %s6498_s27 = sld [smem:[#allocation54_spill]] }
 0x10b   :  { %s5441_s22 = scalar_lea.hbm %s6498_s27, 1024 }
 0x10c   :  { %p5442_p12 = scmp.ne.s32.totalorder %s6498_s27, %s5441_s22  ;;  %p5445_p13 = scmp.lt.u32.totalorder %s5441_s22, %s6498_s27 }
 0x10e   :  { %p5447_p0 = pnand %p5445_p13, %p5442_p12 }
 0x110   :  { %5450 = shalt.err (!%p5447_p0)
}
 0x111   :  { %s5451_s30 = scalar_lea.vmem %s116_s2, 1024  ;;  %p5456_p2 = scmp.lt.s32.totalorder %s116_s2, %s116_s2 }
 0x112   :  { %p5452_p1 = scmp.ne.s32.totalorder %s116_s2, %s5451_s30  ;;  %p5457_p3 = scmp.lt.s32.totalorder %s5451_s30, %s5451_s30 }
 0x114   :  { %p5458_p4 = por %p5457_p3, %p5456_p2 }
 0x116   :  { %p5459_p5 = pnand %p5458_p4, %p5452_p1 }
 0x118   :  { %5462 = shalt.err (!%p5459_p5)
}
 0x119   :  { %121 = dma.hbm_to_vmem [thread:$0]  %s6498_s27, 1024, %s116_s2, [#allocation12], %s5678_s8, %s5678_s8, %s5679_s10  }
 0x11a   :  { %s5682_s19 = smov [#allocation16]   ;;  %s5683_s6 = smov [#allocation19]  }
 0x11b   :  { %s138_s3 = sshll.u32 %s5682_s19, 4  ;;  %s157_s12 = sshll.u32 %s5683_s6, 4  ;;  %s139_s3 = int_to_ptr.vmem [resolvable:$true] %s138_s3  ;;  %s158_s12 = int_to_ptr.vmem [resolvable:$true] %s157_s12 }
 0x11c   :  { %s6499_s4 = sld [smem:[#allocation56_spill]] }
 0x122   :  { %s5463_s9 = scalar_lea.hbm %s6499_s4, 64 }
 0x123   :  { %p5464_p6 = scmp.ne.s32.totalorder %s6499_s4, %s5463_s9  ;;  %p5467_p7 = scmp.lt.u32.totalorder %s5463_s9, %s6499_s4 }
 0x125   :  { %p5469_p8 = pnand %p5467_p7, %p5464_p6 }
 0x127   :  { %5472 = shalt.err (!%p5469_p8)
}
 0x128   :  { %s5473_s2 = scalar_lea.vmem %s139_s3, 64  ;;  %p5478_p10 = scmp.lt.s32.totalorder %s139_s3, %s139_s3 }
 0x129   :  { %p5474_p9 = scmp.ne.s32.totalorder %s139_s3, %s5473_s2  ;;  %p5479_p11 = scmp.lt.s32.totalorder %s5473_s2, %s5473_s2 }
 0x12b   :  { %p5480_p12 = por %p5479_p11, %p5478_p10 }
 0x12d   :  { %p5481_p13 = pnand %p5480_p12, %p5474_p9 }
 0x12f   :  { %5484 = shalt.err (!%p5481_p13)
}
 0x130   :  { %141 = dma.hbm_to_vmem [thread:$0]  %s6499_s4, 64, %s139_s3, [#allocation15]  }
 0x131   :  { %s5485_s29 = scalar_lea.hbm %s6452_s11, 4096 }
 0x132   :  { %p5486_p0 = scmp.ne.s32.totalorder %s6452_s11, %s5485_s29  ;;  %p5489_p1 = scmp.lt.u32.totalorder %s5485_s29, %s6452_s11 }
 0x134   :  { %p5491_p2 = pnand %p5489_p1, %p5486_p0 }
 0x136   :  { %5494 = shalt.err (!%p5491_p2)
}
 0x137   :  { %s5495_s6 = scalar_lea.vmem %s158_s12, 4096  ;;  %p5500_p4 = scmp.lt.s32.totalorder %s158_s12, %s158_s12 }
 0x138   :  { %p5496_p3 = scmp.ne.s32.totalorder %s158_s12, %s5495_s6  ;;  %p5501_p5 = scmp.lt.s32.totalorder %s5495_s6, %s5495_s6 }
 0x13a   :  { %p5502_p6 = por %p5501_p5, %p5500_p4 }
 0x13c   :  { %p5503_p7 = pnand %p5502_p6, %p5496_p3 }
 0x13e   :  { %5506 = shalt.err (!%p5503_p7)
}
 0x13f   :  { %s5684_s3 = smov 256   ;;  %s5685_s28 = smov 16  }
 0x140   :  { %163 = dma.hbm_to_vmem [thread:$0]  %s6452_s11, 4096, %s158_s12, [#allocation18], %s5684_s3, %s5684_s3, %s5685_s28  }
 0x141   :  { %s5686_s9 = smov [#allocation22]   ;;  %s5687_s0 = smov [#allocation25]  }
 0x142   :  { %s182_s25 = sshll.u32 %s5686_s9, 4  ;;  %s202_s16 = sshll.u32 %s5687_s0, 4  ;;  %s183_s25 = int_to_ptr.vmem [resolvable:$true] %s182_s25  ;;  %s203_s16 = int_to_ptr.vmem [resolvable:$true] %s202_s16 }
 0x143   :  { %s5507_s27 = scalar_lea.hbm %s6454_s13, 128 }
 0x144   :  { %p5508_p8 = scmp.ne.s32.totalorder %s6454_s13, %s5507_s27  ;;  %p5511_p9 = scmp.lt.u32.totalorder %s5507_s27, %s6454_s13 }
 0x146   :  { %p5513_p10 = pnand %p5511_p9, %p5508_p8 }
 0x148   :  { %5516 = shalt.err (!%p5513_p10)
}
 0x149   :  { %s5517_s11 = scalar_lea.vmem %s183_s25, 128  ;;  %p5522_p12 = scmp.lt.s32.totalorder %s183_s25, %s183_s25 }
 0x14a   :  { %p5518_p11 = scmp.ne.s32.totalorder %s183_s25, %s5517_s11  ;;  %p5523_p13 = scmp.lt.s32.totalorder %s5517_s11, %s5517_s11 }
 0x14c   :  { %p5524_p0 = por %p5523_p13, %p5522_p12 }
 0x14e   :  { %p5525_p1 = pnand %p5524_p0, %p5518_p11 }
 0x150   :  { %5528 = shalt.err (!%p5525_p1)
}
 0x151   :  { %185 = dma.hbm_to_vmem [thread:$0]  %s6454_s13, 128, %s183_s25, [#allocation21]  }
 0x152   :  { %s5529_s19 = scalar_lea.hbm %s6456_s15, 128 }
 0x153   :  { %p5530_p2 = scmp.ne.s32.totalorder %s6456_s15, %s5529_s19  ;;  %p5533_p3 = scmp.lt.u32.totalorder %s5529_s19, %s6456_s15 }
 0x155   :  { %p5535_p4 = pnand %p5533_p3, %p5530_p2 }
 0x157   :  { %5538 = shalt.err (!%p5535_p4)
}
 0x158   :  { %s5539_s0 = scalar_lea.vmem %s203_s16, 128  ;;  %p5544_p6 = scmp.lt.s32.totalorder %s203_s16, %s203_s16 }
 0x159   :  { %p5540_p5 = scmp.ne.s32.totalorder %s203_s16, %s5539_s0  ;;  %p5545_p7 = scmp.lt.s32.totalorder %s5539_s0, %s5539_s0 }
 0x15b   :  { %p5546_p8 = por %p5545_p7, %p5544_p6 }
 0x15d   :  { %p5547_p9 = pnand %p5546_p8, %p5540_p5 }
 0x15f   :  { %5550 = shalt.err (!%p5547_p9)
}
 0x160   :  { %205 = dma.hbm_to_vmem [thread:$0]  %s6456_s15, 128, %s203_s16, [#allocation24]  }
 0x161   :  { %s5688_s22 = smov [#allocation28]   ;;  %s5689_s27 = smov [#allocation31]  }
 0x162   :  { %s223_s2 = sshll.u32 %s5688_s22, 4  ;;  %s248_s5 = sshll.u32 %s5689_s27, 4  ;;  %s224_s2 = int_to_ptr.vmem [resolvable:$true] %s223_s2  ;;  %s249_s5 = int_to_ptr.vmem [resolvable:$true] %s248_s5 }
 0x163   :  { %s5551_s29 = scalar_lea.hbm %s6458_s17, 16384 }
 0x164   :  { %p5552_p10 = scmp.ne.s32.totalorder %s6458_s17, %s5551_s29  ;;  %p5555_p11 = scmp.lt.u32.totalorder %s5551_s29, %s6458_s17 }
 0x166   :  { %p5557_p12 = pnand %p5555_p11, %p5552_p10 }
 0x168   :  { %5560 = shalt.err (!%p5557_p12)
}
 0x169   :  { %s5561_s15 = scalar_lea.vmem %s224_s2, 16384  ;;  %p5566_p0 = scmp.lt.s32.totalorder %s224_s2, %s224_s2 }
 0x16a   :  { %p5562_p13 = scmp.ne.s32.totalorder %s224_s2, %s5561_s15  ;;  %p5567_p1 = scmp.lt.s32.totalorder %s5561_s15, %s5561_s15 }
 0x16c   :  { %p5568_p2 = por %p5567_p1, %p5566_p0 }
 0x16e   :  { %p5569_p3 = pnand %p5568_p2, %p5562_p13 }
 0x170   :  { %5572 = shalt.err (!%p5569_p3)
}
 0x171   :  { %229 = dma.hbm_to_vmem [thread:$0]  %s6458_s17, 16384, %s224_s2, [#allocation27], %s5684_s3, %s5684_s3, %s5685_s28  }
 0x172   :  { %s5573_s7 = scalar_lea.hbm %s6461_s20, 256 }
 0x173   :  { %p5574_p4 = scmp.ne.s32.totalorder %s6461_s20, %s5573_s7  ;;  %p5577_p5 = scmp.lt.u32.totalorder %s5573_s7, %s6461_s20 }
 0x175   :  { %p5579_p6 = pnand %p5577_p5, %p5574_p4 }
 0x177   :  { %5582 = shalt.err (!%p5579_p6)
}
 0x178   :  { %s5583_s25 = scalar_lea.vmem %s249_s5, 256  ;;  %p5588_p8 = scmp.lt.s32.totalorder %s249_s5, %s249_s5 }
 0x179   :  { %p5584_p7 = scmp.ne.s32.totalorder %s249_s5, %s5583_s25  ;;  %p5589_p9 = scmp.lt.s32.totalorder %s5583_s25, %s5583_s25 }
 0x17b   :  { %p5590_p10 = por %p5589_p9, %p5588_p8 }
 0x17d   :  { %p5591_p11 = pnand %p5590_p10, %p5584_p7 }
 0x17f   :  { %5594 = shalt.err (!%p5591_p11)
}
 0x180   :  { %251 = dma.hbm_to_vmem [thread:$0]  %s6461_s20, 256, %s249_s5, [#allocation30]  }
 0x181   :  { %s5690_s28 = smov [#allocation32]   ;;  %s5595_s24 = scalar_lea.hbm %s6462_s21, 4096 }
 0x182   :  { %s257_s22 = sshll.u32 %s5690_s28, 4  ;;  %p5596_p12 = scmp.ne.s32.totalorder %s6462_s21, %s5595_s24  ;;  %s258_s22 = int_to_ptr.vmem [resolvable:$true] %s257_s22 }
 0x183   :  { %p5599_p13 = scmp.lt.u32.totalorder %s5595_s24, %s6462_s21 }
 0x185   :  { %p5601_p0 = pnand %p5599_p13, %p5596_p12 }
 0x187   :  { %5604 = shalt.err (!%p5601_p0)
}
 0x188   :  { %s5605_s30 = scalar_lea.vmem %s258_s22, 4096  ;;  %p5610_p2 = scmp.lt.s32.totalorder %s258_s22, %s258_s22 }
 0x189   :  { %p5606_p1 = scmp.ne.s32.totalorder %s258_s22, %s5605_s30  ;;  %p5611_p3 = scmp.lt.s32.totalorder %s5605_s30, %s5605_s30 }
 0x18b   :  { %p5612_p4 = por %p5611_p3, %p5610_p2 }
 0x18d   :  { %p5613_p5 = pnand %p5612_p4, %p5606_p1 }
 0x18f   :  { %5616 = shalt.err (!%p5613_p5)
}
 0x190   :  { %263 = dma.hbm_to_vmem [thread:$0]  %s6462_s21, 4096, %s258_s22, [#allocation33], %s5678_s8, %s5678_s8, %s5679_s10  }
 0x191   :  { %5639 = dma.done.wait [#allocation3], 128  }
 0x192   :  { %5640 = vsyncadd [#allocation3], 4294967168 }
 0x193   :  { %5641 = dma.done.wait [#allocation6], 768  }
 0x194   :  { %5642 = vsyncadd [#allocation6], 4294966528 }
 0x195   :  { %5643 = dma.done.wait [#allocation9], 128  }
 0x196   :  { %5644 = vsyncadd [#allocation9], 4294967168 }
 0x197   :  { %5645 = dma.done.wait [#allocation12], 2048  }
 0x198   :  { %5646 = vsyncadd [#allocation12], 4294965248 }
 0x199   :  { %5647 = dma.done.wait [#allocation15], 128  }
 0x19a   :  { %5648 = vsyncadd [#allocation15], 4294967168 }
 0x19b   :  { %5649 = dma.done.wait [#allocation18], 4160  }
 0x19c   :  { %5650 = vsyncadd [#allocation18], 4294963136 }
 0x19d   :  { %5651 = dma.done.wait [#allocation21], 4224  }
 0x19e   :  { %5652 = vsyncadd [#allocation21], 4294963072 }
 0x19f   :  { %5653 = dma.done.wait [#allocation24], 256  }
 0x1a0   :  { %5654 = vsyncadd [#allocation24], 4294967040 }
 0x1a1   :  { %5655 = dma.done.wait [#allocation27], 32768  }
 0x1a2   :  { %5656 = vsyncadd [#allocation27], 4294934528 }
 0x1a3   :  { %5657 = dma.done.wait [#allocation30], 512  }
 0x1a4   :  { %5658 = vsyncadd [#allocation30], 4294966784 }
 0x1a5   :  { %5659 = dma.done.wait [#allocation33], 4096  }
 0x1a6   :  { %5660 = vsyncadd [#allocation33], 4294963200  ;;  %v5691_v0 = vmov 0   ;;  %v4798_v1 = vld [vmem:[#allocation5 + $0x4] ss:$8 sps:$4 sm:$0xff]   ;;  %v331_v3 = vld [vmem:[#allocation2] sm:$0xff] }
 0x1a7   :  { %381 = vmatprep.mubr.bf16.mxu0 %v5691_v0  ;;  %v4800_v2 = vld [vmem:[#allocation5] ss:$8 sps:$4 sm:$0xff]   ;;  %vm345_vm0 = vcmask 130048   ;;  %349 = vmatprep.subr.bf16.mxu0 %v4798_v1  ;;  %v332_v4 = vpack.c.bf16 %v331_v3, %v331_v3  ;;  %s6500_s10 = sld [smem:[#allocation50_spill]]  ;;  %v4232_v6 = vld [vmem:[#allocation10] ss:$0 sm:$0xff] }
 0x1a8   :  { %350 = vmatpush1.bf16.msra.mxu0 %v4800_v2  ;;  %vm404_vm1 = vcmask 523264   ;;  %v4801_v25 = vld [vmem:[#allocation7] sm:$0xff]   ;;  %v5692_v26 = vmov 0.0   ;;  %v4802_v27 = vld [vmem:[#allocation7 + $0x8] sm:$0xff]   ;;  %v4803_v28 = vld [vmem:[#allocation7 + $0x10] sm:$0xff]   ;;  %vm5693_vm2 = vmmov 0  }
 0x1a9   :  { %4702 = vmatprep.subr.bf16.mxu1 %v5692_v26  ;;  %v4804_v29 = vld [vmem:[#allocation7 + $0x18] sm:$0xff]   ;;  %4710 = vmatprep.mubr.msk.bf16.mxu1 %vm5693_vm2, %v5692_v26  ;;  %v4237_v41 = vld [vmem:[#allocation8] ss:$0 sm:$0xff]  ;;  %v4807_v53 = vld [vmem:[#allocation11 + $0x4] ss:$8 sps:$4 sm:$0xff]   ;;  %s6501_s8 = sld [smem:[#allocation57_spill]] }
 0x1aa   :  { %4703 = vmatpush3.bf16.msra.mxu1 %v4801_v25  ;;  %v4805_v54 = vld [vmem:[#allocation11] ss:$8 sps:$4 sm:$0xff]   ;;  %615 = vmatprep.subr.bf16.mxu0 %v4807_v53  ;;  %v4810_v55 = vld [vmem:[#allocation11 + $0x14] ss:$8 sps:$4 sm:$0xff]   ;;  %v4808_v56 = vld [vmem:[#allocation11 + $0x10] ss:$8 sps:$4 sm:$0xff]  }
 0x1ab   :  { %4230 = vmatmul.mubr.msk.bf16.vlgmr.msra.gmra.mrb[0].mxu0 %vm345_vm0, %v332_v4  ;;  %4704 = vmatprep.subr.bf16.mxu1 %v5692_v26  ;;  %v4811_v57 = vld [vmem:[#allocation11 + $0x20] ss:$8 sps:$4 sm:$0xff]   ;;  %v4813_v58 = vld [vmem:[#allocation11 + $0x24] ss:$8 sps:$4 sm:$0xff]   ;;  %v4816_v59 = vld [vmem:[#allocation11 + $0x34] ss:$8 sps:$4 sm:$0xff]  }
 0x1ac   :  { %647 = vmatprep.mubr.bf16.mxu0 %v5691_v0  ;;  %616 = vmatpush1.bf16.msra.mxu0 %v4805_v54  ;;  %v4814_v60 = vld [vmem:[#allocation11 + $0x30] ss:$8 sps:$4 sm:$0xff]   ;;  %s6502_s14 = sld [smem:[#allocation58_spill]]  ;;  %s5694_s15 = smov [#allocation34]  }
 0x1ad   :  { %v4231_v5 = vld [vmem:[%s6500_s10] ss:$0 sm:$0xff]  ;;  %v4235_v34 = vld [vmem:[%s6500_s10 + $0x1] ss:$0 sm:$0xff]  ;;  %v4236_v36 = vld [vmem:[%s6500_s10 + $0x2] ss:$0 sm:$0xff]  ;;  %617 = vmatprep.subr.bf16.mxu0 %v4810_v55 }
 0x1ae   :  { %4705 = vmatpush3.bf16.msra.mxu1 %v4802_v27  ;;  %v4260_v55 = vld [vmem:[#allocation16] ss:$0 sm:$0xff]  ;;  %s4209_s16 = sshll.u32 %s5694_s15, 4  ;;  %s4210_s16 = int_to_ptr.vmem [resolvable:$true] %s4209_s16 }
 0x1af   :  { %4706 = vmatprep.subr.bf16.mxu1 %v5692_v26  ;;  %s5617_s1 = scalar_lea.vmem %s4210_s16, 128  ;;  %p5622_p7 = scmp.lt.s32.totalorder %s4210_s16, %s4210_s16 }
 0x1b0   :  { %618 = vmatpush1.bf16.msra.mxu0 %v4808_v56  ;;  %p5618_p6 = scmp.ne.s32.totalorder %s4210_s16, %s5617_s1  ;;  %p5623_p8 = scmp.lt.s32.totalorder %s5617_s1, %s5617_s1 }
 0x1b1   :  { %619 = vmatprep.subr.bf16.mxu0 %v4813_v58 }
 0x1b2   :  { %4707 = vmatpush3.bf16.msra.mxu1 %v4803_v28  ;;  %v4817_v28 = vld [vmem:[#allocation13] sm:$0xff]   ;;  %p5624_p9 = por %p5623_p8, %p5622_p7 }
 0x1b3   :  { %4708 = vmatprep.subr.bf16.mxu1 %v5692_v26 }
 0x1b4   :  { %620 = vmatpush1.bf16.msra.mxu0 %v4811_v57  ;;  %p5625_p10 = pnand %p5624_p9, %p5618_p6 }
 0x1b5   :  { %621 = vmatprep.subr.bf16.mxu0 %v4816_v59 }
 0x1b6   :  { %4709 = vmatpush3.bf16.msra.mxu1 %v4804_v29  ;;  %v4818_v29 = vld [vmem:[#allocation13 + $0x8] sm:$0xff]  }
 0x1b7   :  { %4714 = vmatprep.subr.bf16.mxu1 %v5692_v26 }
 0x1b8   :  { %622 = vmatpush1.bf16.msra.mxu0 %v4814_v60 }
 0x27e   :  { %v383_v7 = vpop.f32.mrb[0].mxu0 }
 0x27f   :  { %v395_v8 = vadd.f32 %v4231_v5, %v383_v7  ;;  %v385_v9 = vpop.f32.mrb[1].mxu0 }
 0x280   :  { %v401_v10 = vadd.f32 %v4232_v6, %v385_v9  ;;  %v387_v11 = vpop.f32.mrb[2].mxu0  ;;  %v4233_v6 = vld [vmem:[#allocation10 + $0x1] ss:$0 sm:$0xff] }
 0x281   :  { %v388_v12 = vpop.f32.mrb[3].mxu0  ;;  %v431_v13 = vsel %vm404_vm1, %v395_v8, 0.0  ;;  %v4234_v11 = vld [vmem:[#allocation10 + $0x2] ss:$0 sm:$0xff] }
 0x282   :  { %432 = vadd.xlane.f32.xlu0 %v431_v13  ;;  %v405_v14 = vsel %vm404_vm1, %v401_v10, 0.0  ;;  %v4244_v12 = vld [vmem:[#allocation8 + $0x2] ss:$0 sm:$0xff] }
 0x283   :  { %406 = vadd.xlane.f32.xlu1 %v405_v14 }
 0x30f   :  { %v433_v15 = vpop.xlane.xlu0 %432 }
 0x310   :  { %v434_v16 = vmul.f32 0.015625, %v433_v15  ;;  %v407_v17 = vpop.xlane.xlu1 %406 }
 0x311   :  { %v409_v18 = vmul.f32 0.015625, %v407_v17 }
 0x312   :  { %v435_v19 = vsub.f32 %v395_v8, %v434_v16  ;;  %v4243_v8 = vld [vmem:[#allocation8 + $0x1] ss:$0 sm:$0xff] }
 0x313   :  { %v6096_v20 = vsub.f32 %v401_v10, %v409_v18 }
 0x314   :  { %v436_v21 = vmul.f32 %v435_v19, %v435_v19 }
 0x315   :  { %v411_v23 = vmul.f32 %v6096_v20, %v6096_v20 }
 0x316   :  { %v437_v22 = vsel %vm404_vm1, %v436_v21, 0.0 }
 0x317   :  { %438 = vadd.xlane.f32.xlu0 %v437_v22  ;;  %v412_v24 = vsel %vm404_vm1, %v411_v23, 0.0  ;;  %v4255_v23 = vld [vmem:[#allocation17] ss:$0 sm:$0xff] }
 0x31b   :  { %413 = vadd.xlane.f32.xlu0 %v412_v24 }
 0x3a4   :  { %v439_v30 = vpop.xlane.xlu0 %438 }
 0x3a5   :  { %v440_v31 = vmul.f32 0.015625, %v439_v30 }
 0x3a7   :  { %v441_v32 = vadd.f32 1e-05, %v440_v31 }
 0x3a8   :  { %v414_v61 = vpop.xlane.xlu0 %413 }
 0x3a9   :  { %5153 = vrsqrt.f32 %v441_v32  ;;  %v415_v62 = vmul.f32 0.015625, %v414_v61  ;;  %v4825_v61 = vld [vmem:[#allocation19] ss:$16 sps:$4 sm:$0xff]  }
 0x3ab   :  { %v416_v63 = vadd.f32 1e-05, %v415_v62  ;;  %v4827_v62 = vld [vmem:[#allocation19 + $0x4] ss:$16 sps:$4 sm:$0xff]  }
 0x3ac   :  { %1044 = vmatprep.subr.bf16.mxu0 %v4827_v62 }
 0x3ad   :  { %5155 = vrsqrt.f32 %v416_v63  ;;  %v4828_v63 = vld [vmem:[#allocation19 + $0x8] ss:$16 sps:$4 sm:$0xff]  }
 0x3b3   :  { %v5154_v33 = vpop.eup %5153 }
 0x3b4   :  { %v443_v35 = vmul.f32 %v5154_v33, %v435_v19  ;;  %v4254_v19 = vld [vmem:[#allocation14] ss:$0 sm:$0xff] }
 0x3b6   :  { %v448_v37 = vmul.f32 %v4235_v34, %v443_v35 }
 0x3b7   :  { %v5156_v4 = vpop.eup %5155 }
 0x3b8   :  { %v453_v38 = vadd.f32 %v4236_v36, %v448_v37  ;;  %v418_v5 = vmul.f32 %v5156_v4, %v6096_v20  ;;  %v4831_v4 = vld [vmem:[#allocation19 + $0x20] ss:$16 sps:$4 sm:$0xff]  }
 0x3ba   :  { %v454_v39 = vmax.f32 %v453_v38, 0.0  ;;  %v423_v9 = vmul.f32 %v4233_v6, %v418_v5  ;;  %v4819_v38 = vld [vmem:[#allocation13 + $0x10] sm:$0xff]  }
 0x3bc   :  { %v455_v40 = vpack.c.bf16 %v454_v39, %v454_v39  ;;  %v428_v14 = vadd.f32 %v4234_v11, %v423_v9  ;;  %v4820_v39 = vld [vmem:[#allocation13 + $0x18] sm:$0xff]   ;;  %v4839_v9 = vld [vmem:[#allocation19 + $0x44] ss:$16 sps:$4 sm:$0xff]  }
 0x3bd   :  { %v4837_v11 = vld [vmem:[#allocation19 + $0x40] ss:$16 sps:$4 sm:$0xff]  }
 0x3be   :  { %4711 = vmatmul.mubr.msk.bf16.vlgmr.msra.gmra.mrb[0].mxu1 %vm404_vm1, %v455_v40  ;;  %v4821_v40 = vld [vmem:[#allocation13 + $0x20] sm:$0xff]  }
 0x3bf   :  { %4730 = vmatprep.mubr.msk.bf16.mxu1 %vm5693_vm2, %v5692_v26  ;;  %4715 = vmatpush3.bf16.msra.mxu1 %v4817_v28  ;;  %v4864_v28 = vld [vmem:[#allocation19 + $0xc8] ss:$16 sps:$4 sm:$0xff]  }
 0x3c0   :  { %4716 = vmatprep.subr.bf16.mxu1 %v5692_v26 }
 0x3c3   :  { %4717 = vmatpush3.bf16.msra.mxu1 %v4818_v29  ;;  %v4866_v29 = vld [vmem:[#allocation19 + $0xcc] ss:$16 sps:$4 sm:$0xff]  }
 0x3c4   :  { %4718 = vmatprep.subr.bf16.mxu1 %v5692_v26 }
 0x3c7   :  { %4719 = vmatpush3.bf16.msra.mxu1 %v4819_v38 }
 0x3c8   :  { %4720 = vmatprep.subr.bf16.mxu1 %v5692_v26 }
 0x3cb   :  { %4721 = vmatpush3.bf16.msra.mxu1 %v4820_v39 }
 0x3cc   :  { %4722 = vmatprep.subr.bf16.mxu1 %v5692_v26 }
 0x3cf   :  { %4723 = vmatpush3.bf16.msra.mxu1 %v4821_v40 }
 0x3d0   :  { %4724 = vmatprep.subr.bf16.mxu1 %v5692_v26 }
 0x491   :  { %v530_v42 = vpop.f32.mrb[0].mxu1 }
 0x492   :  { %v531_v43 = vadd.f32 %v4237_v41, %v530_v42  ;;  %v4712_v44 = vpop.f32.mrb[1].mxu1  ;;  %v4822_v41 = vld [vmem:[#allocation13 + $0x28] sm:$0xff]   ;;  %v4823_v42 = vld [vmem:[#allocation13 + $0x30] sm:$0xff]  }
 0x493   :  { %v533_v45 = vpop.f32.mrb[2].mxu1  ;;  %4725 = vmatpush3.bf16.msra.mxu1 %v4822_v41 }
 0x494   :  { %v4713_v46 = vpop.f32.mrb[3].mxu1  ;;  %v538_v47 = vsel %vm404_vm1, %v531_v43, 0.0  ;;  %4726 = vmatprep.subr.bf16.mxu1 %v5692_v26 }
 0x495   :  { %539 = vadd.xlane.f32.xlu1 %v538_v47 }
 0x497   :  { %4727 = vmatpush3.bf16.msra.mxu1 %v4823_v42 }
 0x498   :  { %4728 = vmatprep.subr.bf16.mxu1 %v5692_v26 }
 0x522   :  { %v540_v48 = vpop.xlane.xlu1 %539 }
 0x523   :  { %v541_v49 = vmul.f32 0.015625, %v540_v48  ;;  %v4258_v48 = vld [vmem:[#allocation14 + $0x1] ss:$0 sm:$0xff] }
 0x525   :  { %v542_v50 = vsub.f32 %v531_v43, %v541_v49  ;;  %v4824_v43 = vld [vmem:[#allocation13 + $0x38] sm:$0xff]  }
 0x526   :  { %4729 = vmatpush3.bf16.msra.mxu1 %v4824_v43  ;;  %v4256_v43 = vld [vmem:[#allocation17 + $0x1] ss:$0 sm:$0xff] }
 0x527   :  { %v543_v51 = vmul.f32 %v542_v50, %v542_v50 }
 0x529   :  { %v544_v52 = vsel %vm404_vm1, %v543_v51, 0.0 }
 0x52a   :  { %545 = vadd.xlane.f32.xlu1 %v544_v52 }
 0x5b7   :  { %v546_v1 = vpop.xlane.xlu1 %545 }
 0x5b8   :  { %v547_v2 = vmul.f32 0.015625, %v546_v1  ;;  %v4830_v1 = vld [vmem:[#allocation19 + $0xc] ss:$16 sps:$4 sm:$0xff]  }
 0x5b9   :  { %1085 = vmatprep.subr.bf16.mxu1 %v4830_v1 }
 0x5ba   :  { %v548_v3 = vadd.f32 1e-05, %v547_v2  ;;  %v4833_v2 = vld [vmem:[#allocation19 + $0x24] ss:$16 sps:$4 sm:$0xff]  }
 0x5bc   :  { %5157 = vrsqrt.f32 %v548_v3  ;;  %v4836_v3 = vld [vmem:[#allocation19 + $0x2c] ss:$16 sps:$4 sm:$0xff]  }
 0x5c6   :  { %v5158_v7 = vpop.eup %5157 }
 0x5c7   :  { %v550_v10 = vmul.f32 %v5158_v7, %v542_v50  ;;  %v4259_v50 = vld [vmem:[#allocation14 + $0x2] ss:$0 sm:$0xff] }
 0x5c9   :  { %v555_v13 = vmul.f32 %v4243_v8, %v550_v10  ;;  %v4842_v10 = vld [vmem:[#allocation19 + $0x4c] ss:$16 sps:$4 sm:$0xff]  }
 0x5cb   :  { %v560_v15 = vadd.f32 %v4244_v12, %v555_v13  ;;  %v4840_v12 = vld [vmem:[#allocation19 + $0x48] ss:$16 sps:$4 sm:$0xff]   ;;  %v4845_v13 = vld [vmem:[#allocation19 + $0x64] ss:$16 sps:$4 sm:$0xff]  }
 0x5cd   :  { %v561_v16 = vadd.f32 %v560_v15, %v428_v14  ;;  %v4848_v14 = vld [vmem:[#allocation19 + $0x6c] ss:$16 sps:$4 sm:$0xff]   ;;  %v4843_v15 = vld [vmem:[#allocation19 + $0x60] ss:$16 sps:$4 sm:$0xff]  }
 0x5cf   :  { %v562_v17 = vmax.f32 %v561_v16, 0.0  ;;  %v4846_v16 = vld [vmem:[#allocation19 + $0x68] ss:$16 sps:$4 sm:$0xff]  }
 0x5d1   :  { %v563_v18 = vpack.c.bf16 %v562_v17, %v562_v17  ;;  %v4851_v17 = vld [vmem:[#allocation19 + $0x84] ss:$16 sps:$4 sm:$0xff]  }
 0x5d3   :  { %4253 = vmatmul.mubr.msk.bf16.vlgmr.msra.gmra.mrb[4].mxu0 %vm404_vm1, %v563_v18  ;;  %v4854_v18 = vld [vmem:[#allocation19 + $0x8c] ss:$16 sps:$4 sm:$0xff]  }
 0x5d4   :  { %1076 = vmatprep.mubr.bf16.mxu0 %v5691_v0  ;;  %1045 = vmatpush1.bf16.msra.mxu0 %v4825_v61  ;;  %v1140_v61 = vld [vmem:[#allocation25] ss:$4 sm:$0x3] }
 0x5d5   :  { %1046 = vmatprep.subr.bf16.mxu0 %v4833_v2 }
 0x5d8   :  { %1047 = vmatpush1.bf16.msra.mxu0 %v4831_v4 }
 0x5d9   :  { %1048 = vmatprep.subr.bf16.mxu0 %v4839_v9 }
 0x5dc   :  { %1049 = vmatpush1.bf16.msra.mxu0 %v4837_v11 }
 0x5dd   :  { %1050 = vmatprep.subr.bf16.mxu0 %v4845_v13 }
 0x5e0   :  { %1051 = vmatpush1.bf16.msra.mxu0 %v4843_v15  ;;  %v4873_v15 = vld [vmem:[#allocation20] ss:$8 sps:$4 sm:$0xff]  }
 0x5e1   :  { %1052 = vmatprep.subr.bf16.mxu0 %v4851_v17  ;;  %v4878_v17 = vld [vmem:[#allocation20 + $0x14] ss:$8 sps:$4 sm:$0xff]  }
 0x6a6   :  { %v649_v21 = vpop.f32.mrb[4].mxu0 }
 0x6a7   :  { %v661_v20 = vadd.f32 %v4254_v19, %v649_v21  ;;  %v651_v22 = vpop.f32.mrb[5].mxu0  ;;  %v4849_v19 = vld [vmem:[#allocation19 + $0x80] ss:$16 sps:$4 sm:$0xff]   ;;  %v4852_v21 = vld [vmem:[#allocation19 + $0x88] ss:$16 sps:$4 sm:$0xff]  }
 0x6a8   :  { %v653_v24 = vpop.f32.mrb[6].mxu0  ;;  %v667_v27 = vadd.f32 %v4255_v23, %v651_v22  ;;  %1053 = vmatpush1.bf16.msra.mxu0 %v4849_v19  ;;  %v4860_v22 = vld [vmem:[#allocation19 + $0xac] ss:$16 sps:$4 sm:$0xff]   ;;  %v4855_v23 = vld [vmem:[#allocation19 + $0xa0] ss:$16 sps:$4 sm:$0xff]  }
 0x6a9   :  { %694 = vadd.xlane.f32.xlu0 %v661_v20  ;;  %v654_v25 = vpop.f32.mrb[7].mxu0  ;;  %v4858_v24 = vld [vmem:[#allocation19 + $0xa8] ss:$16 sps:$4 sm:$0xff]   ;;  %v4881_v19 = vld [vmem:[#allocation20 + $0x24] ss:$8 sps:$4 sm:$0xff]  }
 0x6aa   :  { %v4863_v25 = vld [vmem:[#allocation19 + $0xc4] ss:$16 sps:$4 sm:$0xff]  }
 0x6ad   :  { %670 = vadd.xlane.f32.xlu0 %v667_v27 }
 0x736   :  { %v695_v30 = vpop.xlane.xlu0 %694 }
 0x737   :  { %v696_v31 = vmul.f32 0.0078125, %v695_v30  ;;  %v4869_v30 = vld [vmem:[#allocation19 + $0xe4] ss:$16 sps:$4 sm:$0xff]  }
 0x739   :  { %v697_v32 = vsub.f32 %v661_v20, %v696_v31  ;;  %v4857_v20 = vld [vmem:[#allocation19 + $0xa4] ss:$16 sps:$4 sm:$0xff]   ;;  %v4872_v31 = vld [vmem:[#allocation19 + $0xec] ss:$16 sps:$4 sm:$0xff]  }
 0x73a   :  { %v671_v33 = vpop.xlane.xlu0 %670  ;;  %1054 = vmatprep.subr.bf16.mxu0 %v4857_v20  ;;  %v4884_v20 = vld [vmem:[#allocation20 + $0x34] ss:$8 sps:$4 sm:$0xff]  }
 0x73b   :  { %v673_v34 = vmul.f32 0.0078125, %v671_v33  ;;  %v698_v35 = vmul.f32 %v697_v32, %v697_v32  ;;  %1055 = vmatpush1.bf16.msra.mxu0 %v4855_v23  ;;  %v4870_v33 = vld [vmem:[#allocation19 + $0xe8] ss:$16 sps:$4 sm:$0xff]   ;;  %v4887_v23 = vld [vmem:[#allocation20 + $0x44] ss:$8 sps:$4 sm:$0xff]  }
 0x73c   :  { %1056 = vmatprep.subr.bf16.mxu0 %v4863_v25  ;;  %v4890_v25 = vld [vmem:[#allocation20 + $0x54] ss:$8 sps:$4 sm:$0xff]  }
 0x73d   :  { %v6125_v36 = vsub.f32 %v667_v27, %v673_v34  ;;  %699 = vadd.xlane.f32.xlu1 %v698_v35  ;;  %v4861_v27 = vld [vmem:[#allocation19 + $0xc0] ss:$16 sps:$4 sm:$0xff]  }
 0x73f   :  { %v675_v37 = vmul.f32 %v6125_v36, %v6125_v36  ;;  %1057 = vmatpush1.bf16.msra.mxu0 %v4861_v27  ;;  %v4888_v27 = vld [vmem:[#allocation20 + $0x50] ss:$8 sps:$4 sm:$0xff]  }
 0x740   :  { %1058 = vmatprep.subr.bf16.mxu0 %v4869_v30  ;;  %v4896_v30 = vld [vmem:[#allocation20 + $0x74] ss:$8 sps:$4 sm:$0xff]  }
 0x741   :  { %676 = vadd.xlane.f32.xlu0 %v675_v37 }
 0x7ca   :  { %v700_v44 = vpop.xlane.xlu1 %699 }
 0x7cb   :  { %v701_v45 = vmul.f32 0.0078125, %v700_v44 }
 0x7cd   :  { %v702_v46 = vadd.f32 1e-05, %v701_v45  ;;  %v4269_v45 = vld [vmem:[#allocation16 + $0x1] ss:$0 sm:$0xff] }
 0x7ce   :  { %v677_v34 = vpop.xlane.xlu0 %676 }
 0x7cf   :  { %5159 = vrsqrt.f32 %v702_v46  ;;  %v678_v35 = vmul.f32 0.0078125, %v677_v34  ;;  %v4902_v34 = vld [vmem:[#allocation20 + $0x94] ss:$8 sps:$4 sm:$0xff]  }
 0x7d1   :  { %v679_v37 = vadd.f32 1e-05, %v678_v35  ;;  %v4900_v35 = vld [vmem:[#allocation20 + $0x90] ss:$8 sps:$4 sm:$0xff]  }
 0x7d3   :  { %5161 = vrsqrt.f32 %v679_v37 }
 0x7d9   :  { %v5160_v47 = vpop.eup %5159 }
 0x7da   :  { %v704_v49 = vmul.f32 %v5160_v47, %v697_v32  ;;  %v4867_v32 = vld [vmem:[#allocation19 + $0xe0] ss:$16 sps:$4 sm:$0xff]  }
 0x7db   :  { %1059 = vmatpush1.bf16.msra.mxu0 %v4867_v32  ;;  %v4899_v32 = vld [vmem:[#allocation20 + $0x84] ss:$8 sps:$4 sm:$0xff]  }
 0x7dc   :  { %v709_v51 = vmul.f32 %v4258_v48, %v704_v49  ;;  %v4257_v48 = vld [vmem:[#allocation17 + $0x2] ss:$0 sm:$0xff]  ;;  %v4270_v49 = vld [vmem:[#allocation16 + $0x2] ss:$0 sm:$0xff] }
 0x7dd   :  { %v5162_v41 = vpop.eup %5161 }
 0x7de   :  { %v714_v52 = vadd.f32 %v4259_v50, %v709_v51  ;;  %v681_v42 = vmul.f32 %v5162_v41, %v6125_v36 }
 0x7e0   :  { %v715_v53 = vmax.f32 %v714_v52, 0.0  ;;  %v686_v47 = vmul.f32 %v4256_v43, %v681_v42 }
 0x7e2   :  { %v716_v54 = vpack.c.bf16 %v715_v53, %v715_v53  ;;  %v691_v51 = vadd.f32 %v4257_v48, %v686_v47 }
 0x7e4   :  { %4731 = vmatmul.mubr.bf16.vlgmr.msra.gmra.mrb[4].mxu1 %v716_v54 }
 0x7e5   :  { %1117 = vmatprep.mubr.bf16.mxu1 %v5691_v0  ;;  %1086 = vmatpush1.bf16.msra.mxu1 %v4828_v63  ;;  %v4834_v0 = vld [vmem:[#allocation19 + $0x28] ss:$16 sps:$4 sm:$0xff]  }
 0x7e6   :  { %1087 = vmatprep.subr.bf16.mxu1 %v4836_v3 }
 0x7e9   :  { %1088 = vmatpush1.bf16.msra.mxu1 %v4834_v0 }
 0x7ea   :  { %1089 = vmatprep.subr.bf16.mxu1 %v4842_v10 }
 0x7ed   :  { %1090 = vmatpush1.bf16.msra.mxu1 %v4840_v12 }
 0x7ee   :  { %1091 = vmatprep.subr.bf16.mxu1 %v4848_v14 }
 0x7f1   :  { %1092 = vmatpush1.bf16.msra.mxu1 %v4846_v16  ;;  %v4875_v16 = vld [vmem:[#allocation20 + $0x4] ss:$8 sps:$4 sm:$0xff]  }
 0x7f2   :  { %1093 = vmatprep.subr.bf16.mxu1 %v4854_v18  ;;  %1455 = vmatprep.subr.bf16.mxu0 %v4875_v16  ;;  %v4876_v18 = vld [vmem:[#allocation20 + $0x10] ss:$8 sps:$4 sm:$0xff]  }
 0x7f5   :  { %1094 = vmatpush1.bf16.msra.mxu1 %v4852_v21  ;;  %v4879_v21 = vld [vmem:[#allocation20 + $0x20] ss:$8 sps:$4 sm:$0xff]  }
 0x7f6   :  { %1095 = vmatprep.subr.bf16.mxu1 %v4860_v22  ;;  %v4882_v22 = vld [vmem:[#allocation20 + $0x30] ss:$8 sps:$4 sm:$0xff]  }
 0x7f9   :  { %1096 = vmatpush1.bf16.msra.mxu1 %v4858_v24  ;;  %v4885_v24 = vld [vmem:[#allocation20 + $0x40] ss:$8 sps:$4 sm:$0xff]  }
 0x7fa   :  { %1097 = vmatprep.subr.bf16.mxu1 %v4866_v29  ;;  %v4891_v29 = vld [vmem:[#allocation20 + $0x60] ss:$8 sps:$4 sm:$0xff]  }
 0x7fd   :  { %1098 = vmatpush1.bf16.msra.mxu1 %v4864_v28  ;;  %v4893_v28 = vld [vmem:[#allocation20 + $0x64] ss:$8 sps:$4 sm:$0xff]  }
 0x7fe   :  { %1099 = vmatprep.subr.bf16.mxu1 %v4872_v31  ;;  %v4894_v31 = vld [vmem:[#allocation20 + $0x70] ss:$8 sps:$4 sm:$0xff]  }
 0x801   :  { %1100 = vmatpush1.bf16.msra.mxu1 %v4870_v33  ;;  %v4897_v33 = vld [vmem:[#allocation20 + $0x80] ss:$8 sps:$4 sm:$0xff]  }
 0x8b7   :  { %v820_v56 = vpop.f32.mrb[4].mxu1 }
 0x8b8   :  { %v821_v57 = vadd.f32 %v4260_v55, %v820_v56  ;;  %v4732_v58 = vpop.f32.mrb[5].mxu1  ;;  %v1128_v56 = vlaneseq }
 0x8b9   :  { %v823_v59 = vpop.f32.mrb[6].mxu1  ;;  %v1126_v58 = vld [vmem:[#allocation22] ss:$4 sm:$0x3] }
 0x8ba   :  { %828 = vadd.xlane.f32.xlu1 %v821_v57  ;;  %v4733_v60 = vpop.f32.mrb[7].mxu1 }
 0x947   :  { %v829_v5 = vpop.xlane.xlu1 %828 }
 0x948   :  { %v830_v6 = vmul.f32 0.0078125, %v829_v5 }
 0x94a   :  { %v6135_v7 = vsub.f32 %v821_v57, %v830_v6  ;;  %v6141_v57 = vshrl.u32 %v1128_v56, 7  ;;  %v4909_v56 = vld [vmem:[#allocation20 + $0xc0] ss:$8 sps:$4 sm:$0xff]  }
 0x94c   :  { %v832_v8 = vmul.f32 %v6135_v7, %v6135_v7  ;;  %v6144_v36 = vsub.s32 0, %v6141_v57  ;;  %v6147_v59 = vsub.s32 1, %v6141_v57 }
 0x94e   :  { %833 = vadd.xlane.f32.xlu1 %v832_v8  ;;  %v1131_v60 = vrot.slane %v1126_v58, %v6144_v36  ;;  %v1135_v62 = vrot.slane %v1126_v58, %v6147_v59  ;;  %v1145_v2 = vrot.slane %v1140_v61, %v6144_v36  ;;  %v1149_v3 = vrot.slane %v1140_v61, %v6147_v59  ;;  %v4914_v58 = vld [vmem:[#allocation20 + $0xd4] ss:$8 sps:$4 sm:$0xff]   ;;  %v4917_v61 = vld [vmem:[#allocation20 + $0xe4] ss:$8 sps:$4 sm:$0xff]  }
 0x9db   :  { %v834_v38 = vpop.xlane.xlu1 %833 }
 0x9dc   :  { %v835_v39 = vmul.f32 0.0078125, %v834_v38 }
 0x9de   :  { %v836_v40 = vadd.f32 1e-05, %v835_v39 }
 0x9e0   :  { %5163 = vrsqrt.f32 %v836_v40 }
 0x9ea   :  { %v5164_v44 = vpop.eup %5163 }
 0x9eb   :  { %v838_v46 = vmul.f32 %v5164_v44, %v6135_v7 }
 0x9ed   :  { %v843_v50 = vmul.f32 %v4269_v45, %v838_v46 }
 0x9ef   :  { %v848_v52 = vadd.f32 %v4270_v49, %v843_v50 }
 0x9f1   :  { %v849_v53 = vadd.f32 %v848_v52, %v691_v51  ;;  %v4905_v51 = vld [vmem:[#allocation20 + $0xa4] ss:$8 sps:$4 sm:$0xff]   ;;  %v4903_v52 = vld [vmem:[#allocation20 + $0xa0] ss:$8 sps:$4 sm:$0xff]  }
 0x9f3   :  { %v850_v54 = vmax.f32 %v849_v53, 0.0  ;;  %v4908_v53 = vld [vmem:[#allocation20 + $0xb4] ss:$8 sps:$4 sm:$0xff]  }
 0x9f5   :  { %v851_v55 = vpack.c.bf16 %v850_v54, %v850_v54  ;;  %v4906_v54 = vld [vmem:[#allocation20 + $0xb0] ss:$8 sps:$4 sm:$0xff]  }
 0x9f7   :  { %1077 = vmatmul.mubr.bf16.vlgmr.msra.gmra.mrb[8].mxu0 %v851_v55  ;;  %1118 = vmatmul.mubr.bf16.vlgmr.msra.gmra.mrb[8].mxu1 %v851_v55  ;;  %v4911_v55 = vld [vmem:[#allocation20 + $0xc4] ss:$8 sps:$4 sm:$0xff]  }
 0x9f8   :  { %1456 = vmatpush1.bf16.msra.mxu0 %v4873_v15 }
 0x9f9   :  { %1457 = vmatprep.subr.bf16.mxu0 %v4878_v17 }
 0x9fc   :  { %1458 = vmatpush1.bf16.msra.mxu0 %v4876_v18 }
 0x9fd   :  { %1459 = vmatprep.subr.bf16.mxu0 %v4881_v19 }
 0xa00   :  { %1460 = vmatpush1.bf16.msra.mxu0 %v4879_v21 }
 0xa01   :  { %1461 = vmatprep.subr.bf16.mxu0 %v4884_v20  ;;  %v1283_v20 = vld [vmem:[#allocation23] ss:$4 sm:$0x3] }
 0xa04   :  { %1462 = vmatpush1.bf16.msra.mxu0 %v4882_v22  ;;  %v1288_v22 = vrot.slane %v1283_v20, %v6144_v36 }
 0xa05   :  { %1463 = vmatprep.subr.bf16.mxu0 %v4887_v23  ;;  %v1292_v23 = vrot.slane %v1283_v20, %v6147_v59  ;;  %v1597_v20 = vld [vmem:[#allocation26 + $0x188] sm:$0xff] }
 0xa08   :  { %1464 = vmatpush1.bf16.msra.mxu0 %v4885_v24 }
 0xa09   :  { %1465 = vmatprep.subr.bf16.mxu0 %v4890_v25 }
 0xa0c   :  { %1466 = vmatpush1.bf16.msra.mxu0 %v4888_v27 }
 0xa0d   :  { %1467 = vmatprep.subr.bf16.mxu0 %v4893_v28 }
 0xa10   :  { %1468 = vmatpush1.bf16.msra.mxu0 %v4891_v29 }
 0xa11   :  { %1469 = vmatprep.subr.bf16.mxu0 %v4896_v30 }
 0xa14   :  { %1470 = vmatpush1.bf16.msra.mxu0 %v4894_v31 }
 0xa15   :  { %1471 = vmatprep.subr.bf16.mxu0 %v4899_v32  ;;  %v1548_v32 = vld [vmem:[#allocation26] sm:$0xff] }
 0xa18   :  { %1472 = vmatpush1.bf16.msra.mxu0 %v4897_v33  ;;  %v1552_v33 = vld [vmem:[#allocation26 + $0x20] sm:$0xff] }
 0xa19   :  { %1473 = vmatprep.subr.bf16.mxu0 %v4902_v34  ;;  %v1549_v34 = vld [vmem:[#allocation26 + $0x8] sm:$0xff] }
 0xa1c   :  { %1474 = vmatpush1.bf16.msra.mxu0 %v4900_v35  ;;  %v4335_v35 = vcombine.low %v1548_v32, %v1552_v33 }
 0xa1d   :  { %1475 = vmatprep.subr.bf16.mxu0 %v4905_v51  ;;  %v1565_v51 = vld [vmem:[#allocation26 + $0x88] sm:$0xff] }
 0xa20   :  { %1476 = vmatpush1.bf16.msra.mxu0 %v4903_v52  ;;  %v1569_v52 = vld [vmem:[#allocation26 + $0xa8] sm:$0xff] }
 0xa21   :  { %1477 = vmatprep.subr.bf16.mxu0 %v4908_v53 }
 0xa24   :  { %1478 = vmatpush1.bf16.msra.mxu0 %v4906_v54 }
 0xa25   :  { %1479 = vmatprep.subr.bf16.mxu0 %v4911_v55 }
 0xa28   :  { %1480 = vmatpush1.bf16.msra.mxu0 %v4909_v56  ;;  %v4354_v56 = vcombine.high %v1565_v51, %v1569_v52 }
 0xa29   :  { %1481 = vmatprep.subr.bf16.mxu0 %v4914_v58  ;;  %v1572_v58 = vld [vmem:[#allocation26 + $0xc0] sm:$0xff] }
 0xaca   :  { %v1078_v63 = vpop.f32.mrb[8].mxu0  ;;  %v1119_v1 = vpop.f32.mrb[8].mxu1 }
 0xacb   :  { %v1138_v4 = vadd.f32 %v1131_v60, %v1078_v63  ;;  %v1080_v0 = vpop.f32.mrb[9].mxu0  ;;  %v1121_v5 = vpop.f32.mrb[9].mxu1  ;;  %v1152_v11 = vadd.f32 %v1145_v2, %v1119_v1  ;;  %v4912_v60 = vld [vmem:[#allocation20 + $0xd0] ss:$8 sps:$4 sm:$0xff]   ;;  %v4920_v1 = vld [vmem:[#allocation20 + $0xf4] ss:$8 sps:$4 sm:$0xff]  }
 0xacc   :  { %v1139_v6 = vadd.f32 %v1135_v62, %v1080_v0  ;;  %v1082_v7 = vpop.f32.mrb[10].mxu0  ;;  %v1123_v8 = vpop.f32.mrb[10].mxu1  ;;  %v1153_v12 = vadd.f32 %v1149_v3, %v1121_v5  ;;  %1482 = vmatpush1.bf16.msra.mxu0 %v4912_v60  ;;  %v4915_v62 = vld [vmem:[#allocation20 + $0xe0] ss:$8 sps:$4 sm:$0xff]   ;;  %v4918_v63 = vld [vmem:[#allocation20 + $0xf0] ss:$8 sps:$4 sm:$0xff]  }
 0xacd   :  { %v1083_v9 = vpop.f32.mrb[11].mxu0  ;;  %v1124_v10 = vpop.f32.mrb[11].mxu1  ;;  %1483 = vmatprep.subr.bf16.mxu0 %v4917_v61  ;;  %v1202_v0 = vld [vmem:[#allocation22 + $0x1] ss:$4 sm:$0x3]  ;;  %v1576_v60 = vld [vmem:[#allocation26 + $0xe0] sm:$0xff] }
 0xace   :  { %v1205_v13 = vadd.f32 %v1139_v6, %v1138_v4  ;;  %v1158_v14 = vadd.f32 %v1153_v12, %v1152_v11  ;;  %v1204_v5 = vld [vmem:[#allocation22 + $0x2] ss:$4 sm:$0x3]  ;;  %v1229_v7 = vrot.slane %v1202_v0, %v6147_v59 }
 0xacf   :  { %v1238_v10 = vrot.slane %v1204_v5, %v6144_v36  ;;  %v1573_v61 = vld [vmem:[#allocation26 + $0xc8] sm:$0xff] }
 0xad0   :  { %1206 = vadd.xlane.f32.xlu0 %v1205_v13  ;;  %1484 = vmatpush1.bf16.msra.mxu0 %v4915_v62  ;;  %v1577_v62 = vld [vmem:[#allocation26 + $0xe8] sm:$0xff] }
 0xad1   :  { %1485 = vmatprep.subr.bf16.mxu0 %v4920_v1  ;;  %v4353_v1 = vcombine.low %v1565_v51, %v1569_v52  ;;  %v1621_v51 = vld [vmem:[#allocation26 + $0x248] sm:$0xff] }
 0xad2   :  { %v1625_v52 = vld [vmem:[#allocation26 + $0x268] sm:$0xff] }
 0xad4   :  { %1159 = vadd.xlane.f32.xlu0 %v1158_v14  ;;  %1486 = vmatpush1.bf16.msra.mxu0 %v4918_v63 }
 0xb5d   :  { %v1207_v37 = vpop.xlane.xlu0 %1206 }
 0xb5e   :  { %v1208_v38 = vmul.f32 0.00390625, %v1207_v37  ;;  %v4336_v37 = vcombine.high %v1548_v32, %v1552_v33  ;;  %v1605_v32 = vld [vmem:[#allocation26 + $0x1c8] sm:$0xff] }
 0xb5f   :  { %v1609_v33 = vld [vmem:[#allocation26 + $0x1e8] sm:$0xff] }
 0xb60   :  { %v1209_v39 = vsub.f32 %v1138_v4, %v1208_v38  ;;  %v1210_v40 = vsub.f32 %v1139_v6, %v1208_v38  ;;  %v1225_v6 = vrot.slane %v1202_v0, %v6144_v36  ;;  %v1553_v38 = vld [vmem:[#allocation26 + $0x28] sm:$0xff]  ;;  %2316 = vmatprep.subr.bf16.mxu1 %v4336_v37  ;;  %v1584_v0 = vld [vmem:[#allocation26 + $0x120] sm:$0xff] }
 0xb61   :  { %v1160_v41 = vpop.xlane.xlu0 %1159  ;;  %2317 = vmatpush1.bf16.msra.mxu1 %v4335_v35 }
 0xb62   :  { %v1162_v42 = vmul.f32 0.00390625, %v1160_v41  ;;  %v1211_v43 = vmul.f32 %v1209_v39, %v1209_v39  ;;  %v1212_v44 = vmul.f32 %v1210_v40, %v1210_v40  ;;  %v4337_v41 = vcombine.low %v1549_v34, %v1553_v38 }
 0xb64   :  { %v6153_v45 = vsub.f32 %v1152_v11, %v1162_v42  ;;  %v6155_v46 = vsub.f32 %v1153_v12, %v1162_v42  ;;  %v1213_v47 = vadd.f32 %v1212_v44, %v1211_v43  ;;  %v1242_v11 = vrot.slane %v1204_v5, %v6147_v59  ;;  %v1557_v44 = vld [vmem:[#allocation26 + $0x48] sm:$0xff] }
 0xb65   :  { %v4338_v42 = vcombine.high %v1549_v34, %v1553_v38  ;;  %v1581_v5 = vld [vmem:[#allocation26 + $0x108] sm:$0xff]  ;;  %v4394_v38 = vcombine.high %v1605_v32, %v1609_v33 }
 0xb66   :  { %1214 = vadd.xlane.f32.xlu1 %v1213_v47  ;;  %v1165_v48 = vmul.f32 %v6153_v45, %v6153_v45  ;;  %v1166_v49 = vmul.f32 %v6155_v46, %v6155_v46  ;;  %v1561_v47 = vld [vmem:[#allocation26 + $0x68] sm:$0xff] }
 0xb67   :  { %2357 = vmatprep.subr.bf16.mxu0 %v4338_v42  ;;  %v4345_v54 = vcombine.low %v1557_v44, %v1561_v47  ;;  %v1617_v42 = vld [vmem:[#allocation26 + $0x228] sm:$0xff] }
 0xb68   :  { %v1167_v50 = vadd.f32 %v1166_v49, %v1165_v48  ;;  %v1564_v48 = vld [vmem:[#allocation26 + $0x80] sm:$0xff]  ;;  %v4346_v49 = vcombine.high %v1557_v44, %v1561_v47  ;;  %v4393_v44 = vcombine.low %v1605_v32, %v1609_v33  ;;  %v1657_v33 = vld [vmem:[#allocation26 + $0x368] sm:$0xff] }
 0xb6a   :  { %1168 = vadd.xlane.f32.xlu0 %v1167_v50  ;;  %v1568_v50 = vld [vmem:[#allocation26 + $0xa0] sm:$0xff] }
 0xb6b   :  { %v4352_v55 = vcombine.high %v1564_v48, %v1568_v50  ;;  %v4351_v63 = vcombine.low %v1564_v48, %v1568_v50  ;;  %v1624_v50 = vld [vmem:[#allocation26 + $0x260] sm:$0xff] }
 0xbf3   :  { %v1215_v2 = vpop.xlane.xlu1 %1214 }
 0xbf4   :  { %v1216_v3 = vmul.f32 0.00390625, %v1215_v2  ;;  %v4360_v2 = vcombine.high %v1572_v58, %v1576_v60 }
 0xbf6   :  { %v1217_v4 = vadd.f32 1e-05, %v1216_v3  ;;  %v4362_v3 = vcombine.high %v1573_v61, %v1577_v62 }
 0xbf8   :  { %5165 = vrsqrt.f32 %v1217_v4  ;;  %v1580_v4 = vld [vmem:[#allocation26 + $0x100] sm:$0xff] }
 0xc02   :  { %v5166_v8 = vpop.eup %5165 }
 0xc03   :  { %v1220_v9 = vmul.f32 %v5166_v8, %v1210_v40  ;;  %v1219_v12 = vmul.f32 %v5166_v8, %v1209_v39  ;;  %v1556_v39 = vld [vmem:[#allocation26 + $0x40] sm:$0xff]  ;;  %v4361_v8 = vcombine.low %v1573_v61, %v1577_v62 }
 0xc04   :  { %v1560_v40 = vld [vmem:[#allocation26 + $0x60] sm:$0xff] }
 0xc05   :  { %v1233_v13 = vmul.f32 %v1229_v7, %v1220_v9  ;;  %v1232_v14 = vmul.f32 %v1225_v6, %v1219_v12  ;;  %v4344_v43 = vcombine.high %v1556_v39, %v1560_v40  ;;  %v4343_v53 = vcombine.low %v1556_v39, %v1560_v40  ;;  %v1585_v6 = vld [vmem:[#allocation26 + $0x128] sm:$0xff]  ;;  %v1592_v12 = vld [vmem:[#allocation26 + $0x160] sm:$0xff] }
 0xc06   :  { %v4359_v7 = vcombine.low %v1572_v58, %v1576_v60  ;;  %v4368_v9 = vcombine.high %v1580_v4, %v1584_v0  ;;  %v1612_v39 = vld [vmem:[#allocation26 + $0x200] sm:$0xff]  ;;  %v4409_v60 = vcombine.low %v1621_v51, %v1625_v52 }
 0xc07   :  { %v1246_v15 = vadd.f32 %v1242_v11, %v1233_v13  ;;  %v1245_v16 = vadd.f32 %v1238_v10, %v1232_v14  ;;  %2318 = vmatprep.subr.bf16.mxu1 %v4344_v43  ;;  %v4370_v10 = vcombine.high %v1581_v5, %v1585_v6  ;;  %v1588_v11 = vld [vmem:[#allocation26 + $0x140] sm:$0xff]  ;;  %v1589_v13 = vld [vmem:[#allocation26 + $0x148] sm:$0xff] }
 0xc08   :  { %2319 = vmatpush1.bf16.msra.mxu1 %v4343_v53  ;;  %v1593_v14 = vld [vmem:[#allocation26 + $0x168] sm:$0xff]  ;;  %v1616_v40 = vld [vmem:[#allocation26 + $0x220] sm:$0xff] }
 0xc09   :  { %v1248_v17 = vmax.f32 %v1246_v15, 0.0  ;;  %v1247_v18 = vmax.f32 %v1245_v16, 0.0  ;;  %2320 = vmatprep.subr.bf16.mxu1 %v4352_v55  ;;  %v4367_v15 = vcombine.low %v1580_v4, %v1584_v0  ;;  %v4369_v16 = vcombine.low %v1581_v5, %v1585_v6  ;;  %v1628_v0 = vld [vmem:[#allocation26 + $0x280] sm:$0xff]  ;;  %v1629_v6 = vld [vmem:[#allocation26 + $0x288] sm:$0xff] }
 0xc0a   :  { %v4400_v47 = vcombine.high %v1612_v39, %v1616_v40  ;;  %v4399_v53 = vcombine.low %v1612_v39, %v1616_v40  ;;  %v1632_v5 = vld [vmem:[#allocation26 + $0x2a0] sm:$0xff]  ;;  %v1661_v40 = vld [vmem:[#allocation26 + $0x388] sm:$0xff] }
 0xc0b   :  { %v1250_v19 = vpack.c.bf16 %v1248_v17, %v1248_v17  ;;  %v1249_v21 = vpack.c.bf16 %v1247_v18, %v1247_v18  ;;  %v4376_v17 = vcombine.high %v1588_v11, %v1592_v12  ;;  %v4378_v18 = vcombine.high %v1589_v13, %v1593_v14  ;;  %v1664_v39 = vld [vmem:[#allocation26 + $0x3a0] sm:$0xff] }
 0xc0c   :  { %2321 = vmatpush1.bf16.msra.mxu1 %v4351_v63 }
 0xc0d   :  { %1487 = vmatprep.mubr.bf16.mxu0 %v1250_v19  ;;  %2322 = vmatprep.subr.bf16.mxu1 %v4360_v2  ;;  %v1596_v19 = vld [vmem:[#allocation26 + $0x180] sm:$0xff] }
 0xc0e   :  { %1488 = vmatmul.mubr.bf16.vlgmr.msra.gmra.mrb[12].mxu0 %v1249_v21  ;;  %v1600_v21 = vld [vmem:[#allocation26 + $0x1a0] sm:$0xff] }
 0xc0f   :  { %2358 = vmatpush1.bf16.msra.mxu0 %v4337_v41  ;;  %v4383_v34 = vcombine.low %v1596_v19, %v1600_v21  ;;  %v1613_v41 = vld [vmem:[#allocation26 + $0x208] sm:$0xff] }
 0xc10   :  { %2359 = vmatprep.subr.bf16.mxu0 %v4346_v49  ;;  %2323 = vmatpush1.bf16.msra.mxu1 %v4359_v7  ;;  %v4402_v48 = vcombine.high %v1613_v41, %v1617_v42  ;;  %v1620_v49 = vld [vmem:[#allocation26 + $0x240] sm:$0xff]  ;;  %v4416_v7 = vcombine.high %v1628_v0, %v1632_v5 }
 0xc11   :  { %2324 = vmatprep.subr.bf16.mxu1 %v4368_v9  ;;  %v4408_v55 = vcombine.high %v1620_v49, %v1624_v50  ;;  %v4407_v58 = vcombine.low %v1620_v49, %v1624_v50  ;;  %v4415_v9 = vcombine.low %v1628_v0, %v1632_v5  ;;  %v1169_v0 = vpop.xlane.xlu0 %1168 }
 0xc12   :  { %v1170_v5 = vmul.f32 0.00390625, %v1169_v0  ;;  %v1582_v0 = vld [vmem:[#allocation26 + $0x110] sm:$0xff] }
 0xc13   :  { %2360 = vmatpush1.bf16.msra.mxu0 %v4345_v54  ;;  %v4401_v54 = vcombine.low %v1613_v41, %v1617_v42 }
 0xc14   :  { %2361 = vmatprep.subr.bf16.mxu0 %v4354_v56  ;;  %2325 = vmatpush1.bf16.msra.mxu1 %v4367_v15  ;;  %v4410_v56 = vcombine.high %v1621_v51, %v1625_v52  ;;  %v1669_v51 = vld [vmem:[#allocation26 + $0x3c8] sm:$0xff] }
 0xc15   :  { %2326 = vmatprep.subr.bf16.mxu1 %v4376_v17  ;;  %v1673_v52 = vld [vmem:[#allocation26 + $0x3e8] sm:$0xff] }
 0xc17   :  { %2362 = vmatpush1.bf16.msra.mxu0 %v4353_v1 }
 0xc18   :  { %2363 = vmatprep.subr.bf16.mxu0 %v4362_v3 }
 0xc1b   :  { %2364 = vmatpush1.bf16.msra.mxu0 %v4361_v8  ;;  %v1633_v8 = vld [vmem:[#allocation26 + $0x2a8] sm:$0xff] }
 0xc1c   :  { %2365 = vmatprep.subr.bf16.mxu0 %v4370_v10  ;;  %v4417_v10 = vcombine.low %v1629_v6, %v1633_v8 }
 0xc1f   :  { %2366 = vmatpush1.bf16.msra.mxu0 %v4369_v16 }
 0xc20   :  { %2367 = vmatprep.subr.bf16.mxu0 %v4378_v18  ;;  %v1644_v18 = vld [vmem:[#allocation26 + $0x300] sm:$0xff] }
 0xce1   :  { %v1489_v24 = vpop.f32.mrb[12].mxu0 }
 0xce2   :  { %v6167_v25 = vadd.f32 %v1489_v24, %v1288_v22  ;;  %v1491_v27 = vpop.f32.mrb[13].mxu0  ;;  %v1601_v22 = vld [vmem:[#allocation26 + $0x1a8] sm:$0xff]  ;;  %v4377_v24 = vcombine.low %v1589_v13, %v1593_v14 }
 0xce3   :  { %v6169_v28 = vadd.f32 %v1491_v27, %v1292_v23  ;;  %v1493_v29 = vpop.f32.mrb[14].mxu0  ;;  %v4375_v23 = vcombine.low %v1588_v11, %v1592_v12  ;;  %v4384_v27 = vcombine.high %v1596_v19, %v1600_v21  ;;  %v4385_v35 = vcombine.low %v1597_v20, %v1601_v22  ;;  %v1640_v11 = vld [vmem:[#allocation26 + $0x2e0] sm:$0xff]  ;;  %v1637_v12 = vld [vmem:[#allocation26 + $0x2c8] sm:$0xff] }
 0xce4   :  { %v1494_v30 = vpop.f32.mrb[15].mxu0  ;;  %v4386_v29 = vcombine.high %v1597_v20, %v1601_v22  ;;  %2368 = vmatpush1.bf16.msra.mxu0 %v4377_v24  ;;  %v1641_v14 = vld [vmem:[#allocation26 + $0x2e8] sm:$0xff]  ;;  %v1648_v19 = vld [vmem:[#allocation26 + $0x320] sm:$0xff] }
 0xce5   :  { %v1500_v31 = vadd.f32 %v6169_v28, %v6167_v25  ;;  %v1604_v30 = vld [vmem:[#allocation26 + $0x1c0] sm:$0xff]  ;;  %2327 = vmatpush1.bf16.msra.mxu1 %v4375_v23  ;;  %v4425_v16 = vcombine.low %v1637_v12, %v1641_v14  ;;  %v4426_v17 = vcombine.high %v1637_v12, %v1641_v14  ;;  %v1645_v21 = vld [vmem:[#allocation26 + $0x308] sm:$0xff]  ;;  %v4432_v20 = vcombine.high %v1644_v18, %v1648_v19 }
 0xce6   :  { %2328 = vmatprep.subr.bf16.mxu1 %v4384_v27  ;;  %2369 = vmatprep.subr.bf16.mxu0 %v4386_v29  ;;  %v1649_v22 = vld [vmem:[#allocation26 + $0x328] sm:$0xff]  ;;  %v4431_v23 = vcombine.low %v1644_v18, %v1648_v19  ;;  %v1652_v29 = vld [vmem:[#allocation26 + $0x340] sm:$0xff] }
 0xce7   :  { %1501 = vadd.xlane.f32.xlu1 %v1500_v31  ;;  %v1608_v31 = vld [vmem:[#allocation26 + $0x1e0] sm:$0xff]  ;;  %v4433_v24 = vcombine.low %v1645_v21, %v1649_v22  ;;  %v4434_v27 = vcombine.high %v1645_v21, %v1649_v22 }
 0xce8   :  { %v4392_v37 = vcombine.high %v1604_v30, %v1608_v31  ;;  %v4391_v43 = vcombine.low %v1604_v30, %v1608_v31  ;;  %2370 = vmatpush1.bf16.msra.mxu0 %v4385_v35  ;;  %v1656_v30 = vld [vmem:[#allocation26 + $0x360] sm:$0xff]  ;;  %v1653_v31 = vld [vmem:[#allocation26 + $0x348] sm:$0xff] }
 0xce9   :  { %2329 = vmatpush1.bf16.msra.mxu1 %v4383_v34  ;;  %2371 = vmatprep.subr.bf16.mxu0 %v4394_v38  ;;  %v4440_v32 = vcombine.high %v1652_v29, %v1656_v30  ;;  %v4439_v34 = vcombine.low %v1652_v29, %v1656_v30  ;;  %v4441_v35 = vcombine.low %v1653_v31, %v1657_v33  ;;  %v1660_v38 = vld [vmem:[#allocation26 + $0x380] sm:$0xff] }
 0xcea   :  { %2330 = vmatprep.subr.bf16.mxu1 %v4392_v37  ;;  %v4442_v37 = vcombine.high %v1653_v31, %v1657_v33  ;;  %v4447_v41 = vcombine.low %v1660_v38, %v1664_v39  ;;  %v4448_v42 = vcombine.high %v1660_v38, %v1664_v39 }
 0xcec   :  { %2372 = vmatpush1.bf16.msra.mxu0 %v4393_v44  ;;  %v1668_v44 = vld [vmem:[#allocation26 + $0x3c0] sm:$0xff] }
 0xced   :  { %2331 = vmatpush1.bf16.msra.mxu1 %v4391_v43  ;;  %2373 = vmatprep.subr.bf16.mxu0 %v4402_v48  ;;  %v1665_v43 = vld [vmem:[#allocation26 + $0x3a8] sm:$0xff] }
 0xcee   :  { %2332 = vmatprep.subr.bf16.mxu1 %v4400_v47  ;;  %v1672_v47 = vld [vmem:[#allocation26 + $0x3e0] sm:$0xff]  ;;  %v4449_v48 = vcombine.low %v1661_v40, %v1665_v43  ;;  %v4450_v49 = vcombine.high %v1661_v40, %v1665_v43  ;;  %v1558_v40 = vld [vmem:[#allocation26 + $0x50] sm:$0xff] }
 0xcef   :  { %v4456_v50 = vcombine.high %v1668_v44, %v1672_v47 }
 0xcf0   :  { %2374 = vmatpush1.bf16.msra.mxu0 %v4401_v54  ;;  %v4455_v54 = vcombine.low %v1668_v44, %v1672_v47  ;;  %v1566_v44 = vld [vmem:[#allocation26 + $0x90] sm:$0xff] }
 0xcf1   :  { %2333 = vmatpush1.bf16.msra.mxu1 %v4399_v53  ;;  %2375 = vmatprep.subr.bf16.mxu0 %v4410_v56  ;;  %v4458_v53 = vcombine.high %v1669_v51, %v1673_v52  ;;  %v6183_v56 = vld [vmem:[#allocation26 + $0x10] sm:$0xff] }
 0xcf2   :  { %2334 = vmatprep.subr.bf16.mxu1 %v4408_v55  ;;  %v4457_v55 = vcombine.low %v1669_v51, %v1673_v52  ;;  %v1571_v51 = vld [vmem:[#allocation26 + $0xb8] sm:$0xff] }
 0xcf4   :  { %2376 = vmatpush1.bf16.msra.mxu0 %v4409_v60  ;;  %v6187_v60 = vld [vmem:[#allocation26 + $0x18] sm:$0xff] }
 0xcf5   :  { %2335 = vmatpush1.bf16.msra.mxu1 %v4407_v58  ;;  %v6185_v58 = vld [vmem:[#allocation26 + $0x30] sm:$0xff] }
 0xcf6   :  { %2336 = vmatprep.subr.bf16.mxu1 %v4416_v7 }
 0xcf9   :  { %2337 = vmatpush1.bf16.msra.mxu1 %v4415_v9 }
 0xd74   :  { %v1502_v61 = vpop.xlane.xlu1 %1501 }
 0xd75   :  { %v1503_v62 = vmul.f32 0.00390625, %v1502_v61  ;;  %v4340_v61 = vcombine.high %v6183_v56, %v6185_v58 }
 0xd77   :  { %v6174_v63 = vsub.f32 %v6167_v25, %v1503_v62  ;;  %v6177_v1 = vsub.f32 %v6169_v28, %v1503_v62  ;;  %v4418_v25 = vcombine.high %v1629_v6, %v1633_v8  ;;  %v1636_v28 = vld [vmem:[#allocation26 + $0x2c0] sm:$0xff]  ;;  %v1555_v62 = vld [vmem:[#allocation26 + $0x38] sm:$0xff]  ;;  %v1171_v6 = vadd.f32 1e-05, %v1170_v5  ;;  %v1586_v5 = vld [vmem:[#allocation26 + $0x130] sm:$0xff] }
 0xd78   :  { %v4424_v13 = vcombine.high %v1636_v28, %v1640_v11  ;;  %v4423_v15 = vcombine.low %v1636_v28, %v1640_v11 }
 0xd79   :  { %v1506_v2 = vmul.f32 %v6174_v63, %v6174_v63  ;;  %v1507_v3 = vmul.f32 %v6177_v1, %v6177_v1  ;;  %2377 = vmatprep.subr.bf16.mxu0 %v4418_v25  ;;  %5167 = vrsqrt.f32 %v1171_v6  ;;  %v1155_v25 = vld [vmem:[#allocation25 + $0x1] ss:$4 sm:$0x3] }
 0xd7a   :  { %2378 = vmatpush1.bf16.msra.mxu0 %v4417_v10  ;;  %2338 = vmatprep.subr.bf16.mxu1 %v4424_v13  ;;  %v1183_v12 = vrot.slane %v1155_v25, %v6147_v59  ;;  %v1497_v13 = vld [vmem:[#allocation23 + $0x1] ss:$4 sm:$0x3]  ;;  %v1179_v14 = vrot.slane %v1155_v25, %v6144_v36  ;;  %v1583_v6 = vld [vmem:[#allocation26 + $0x118] sm:$0xff] }
 0xd7b   :  { %v1508_v4 = vadd.f32 %v1507_v3, %v1506_v2  ;;  %2379 = vmatprep.subr.bf16.mxu0 %v4426_v17  ;;  %2339 = vmatpush1.bf16.msra.mxu1 %v4423_v15  ;;  %v4339_v2 = vcombine.low %v6183_v56, %v6185_v58  ;;  %v4341_v3 = vcombine.low %v6187_v60, %v1555_v62  ;;  %v1157_v15 = vld [vmem:[#allocation25 + $0x2] ss:$4 sm:$0x3]  ;;  %v1574_v56 = vld [vmem:[#allocation26 + $0xd0] sm:$0xff] }
 0xd7c   :  { %2340 = vmatprep.subr.bf16.mxu1 %v4432_v20  ;;  %v1524_v17 = vrot.slane %v1497_v13, %v6147_v59  ;;  %v1520_v18 = vrot.slane %v1497_v13, %v6144_v36  ;;  %v1196_v20 = vrot.slane %v1157_v15, %v6147_v59  ;;  %v1578_v58 = vld [vmem:[#allocation26 + $0xf0] sm:$0xff]  ;;  %v1595_v13 = vld [vmem:[#allocation26 + $0x178] sm:$0xff] }
 0xd7d   :  { %1509 = vadd.xlane.f32.xlu1 %v1508_v4  ;;  %v4342_v4 = vcombine.high %v6187_v60, %v1555_v62  ;;  %v1575_v60 = vld [vmem:[#allocation26 + $0xd8] sm:$0xff] }
 0xd7e   :  { %2380 = vmatpush1.bf16.msra.mxu0 %v4425_v16  ;;  %v1499_v16 = vld [vmem:[#allocation23 + $0x2] ss:$4 sm:$0x3] }
 0xd7f   :  { %2381 = vmatprep.subr.bf16.mxu0 %v4434_v27  ;;  %2341 = vmatpush1.bf16.msra.mxu1 %v4431_v23  ;;  %v1533_v27 = vrot.slane %v1499_v16, %v6144_v36 }
 0xd80   :  { %2342 = vmatprep.subr.bf16.mxu1 %v4440_v32 }
 0xd82   :  { %2382 = vmatpush1.bf16.msra.mxu0 %v4433_v24  ;;  %v1537_v24 = vrot.slane %v1499_v16, %v6147_v59 }
 0xd83   :  { %2383 = vmatprep.subr.bf16.mxu0 %v4442_v37  ;;  %2343 = vmatpush1.bf16.msra.mxu1 %v4439_v34  ;;  %v5168_v10 = vpop.eup %5167 }
 0xd84   :  { %2344 = vmatprep.subr.bf16.mxu1 %v4448_v42  ;;  %v1173_v28 = vmul.f32 %v5168_v10, %v6153_v45  ;;  %v1174_v11 = vmul.f32 %v5168_v10, %v6155_v46  ;;  %v1192_v45 = vrot.slane %v1157_v15, %v6144_v36  ;;  %v1559_v42 = vld [vmem:[#allocation26 + $0x58] sm:$0xff]  ;;  %v4372_v10 = vcombine.high %v1582_v0, %v1586_v5 }
 0xd86   :  { %2384 = vmatpush1.bf16.msra.mxu0 %v4441_v35  ;;  %v1187_v21 = vmul.f32 %v1183_v12, %v1174_v11  ;;  %v1186_v22 = vmul.f32 %v1179_v14, %v1173_v28  ;;  %v1590_v28 = vld [vmem:[#allocation26 + $0x150] sm:$0xff]  ;;  %v1591_v12 = vld [vmem:[#allocation26 + $0x158] sm:$0xff]  ;;  %v4371_v14 = vcombine.low %v1582_v0, %v1586_v5 }
 0xd87   :  { %2385 = vmatprep.subr.bf16.mxu0 %v4450_v49  ;;  %2345 = vmatpush1.bf16.msra.mxu1 %v4447_v41  ;;  %v1562_v41 = vld [vmem:[#allocation26 + $0x70] sm:$0xff]  ;;  %v1643_v0 = vld [vmem:[#allocation26 + $0x2f8] sm:$0xff] }
 0xd88   :  { %2346 = vmatprep.subr.bf16.mxu1 %v4456_v50  ;;  %v1200_v31 = vadd.f32 %v1196_v20, %v1187_v21  ;;  %v1199_v33 = vadd.f32 %v1192_v45, %v1186_v22  ;;  %v4348_v47 = vcombine.high %v1558_v40, %v1562_v41  ;;  %v1570_v49 = vld [vmem:[#allocation26 + $0xb0] sm:$0xff]  ;;  %v1567_v50 = vld [vmem:[#allocation26 + $0x98] sm:$0xff]  ;;  %v4347_v52 = vcombine.low %v1558_v40, %v1562_v41 }
 0xd89   :  { %v4355_v62 = vcombine.low %v1566_v44, %v1570_v49  ;;  %v1594_v11 = vld [vmem:[#allocation26 + $0x170] sm:$0xff]  ;;  %v1599_v21 = vld [vmem:[#allocation26 + $0x198] sm:$0xff]  ;;  %v4381_v45 = vcombine.low %v1591_v12, %v1595_v13 }
 0xd8a   :  { %2386 = vmatpush1.bf16.msra.mxu0 %v4449_v48  ;;  %v4380_v16 = vcombine.high %v1590_v28, %v1594_v11  ;;  %v1603_v20 = vld [vmem:[#allocation26 + $0x1b8] sm:$0xff]  ;;  %v4379_v22 = vcombine.low %v1590_v28, %v1594_v11 }
 0xd8b   :  { %2387 = vmatprep.subr.bf16.mxu0 %v4458_v53  ;;  %2347 = vmatpush1.bf16.msra.mxu1 %v4455_v54  ;;  %v4356_v54 = vcombine.high %v1566_v44, %v1570_v49  ;;  %v1626_v44 = vld [vmem:[#allocation26 + $0x270] sm:$0xff]  ;;  %v1651_v28 = vld [vmem:[#allocation26 + $0x338] sm:$0xff] }
 0xd8c   :  { %2398 = vmatprep.subr.bf16.mxu1 %v4340_v61  ;;  %v1579_v61 = vld [vmem:[#allocation26 + $0xf8] sm:$0xff] }
 0xd8e   :  { %2388 = vmatpush1.bf16.msra.mxu0 %v4457_v55  ;;  %v4358_v55 = vcombine.high %v1567_v50, %v1571_v51 }
 0xd8f   :  { %2439 = vmatprep.subr.bf16.mxu0 %v4342_v4  ;;  %v4357_v4 = vcombine.low %v1567_v50, %v1571_v51 }
 0xe0a   :  { %v1510_v7 = vpop.xlane.xlu1 %1509 }
 0xe0b   :  { %v1511_v8 = vmul.f32 0.00390625, %v1510_v7  ;;  %v1587_v7 = vld [vmem:[#allocation26 + $0x138] sm:$0xff] }
 0xe0c   :  { %v4374_v25 = vcombine.high %v1583_v6, %v1587_v7  ;;  %v4373_v15 = vcombine.low %v1583_v6, %v1587_v7 }
 0xe0d   :  { %v1512_v9 = vadd.f32 1e-05, %v1511_v8  ;;  %v4363_v8 = vcombine.low %v1574_v56, %v1578_v58 }
 0xe0f   :  { %5169 = vrsqrt.f32 %v1512_v9  ;;  %v4365_v9 = vcombine.low %v1575_v60, %v1579_v61 }
 0xe19   :  { %v5170_v19 = vpop.eup %5169 }
 0xe1a   :  { %v1514_v46 = vmul.f32 %v5170_v19, %v6174_v63  ;;  %v1515_v23 = vmul.f32 %v5170_v19, %v6177_v1  ;;  %v1563_v63 = vld [vmem:[#allocation26 + $0x78] sm:$0xff]  ;;  %v1602_v19 = vld [vmem:[#allocation26 + $0x1b0] sm:$0xff] }
 0xe1b   :  { %v4350_v48 = vcombine.high %v1559_v42, %v1563_v63  ;;  %v4349_v53 = vcombine.low %v1559_v42, %v1563_v63 }
 0xe1c   :  { %v1528_v29 = vmul.f32 %v1524_v17, %v1515_v23  ;;  %v1527_v30 = vmul.f32 %v1520_v18, %v1514_v46  ;;  %v4382_v17 = vcombine.high %v1591_v12, %v1595_v13  ;;  %v1598_v18 = vld [vmem:[#allocation26 + $0x190] sm:$0xff]  ;;  %v4390_v23 = vcombine.high %v1599_v21, %v1603_v20 }
 0xe1d   :  { %v4388_v46 = vcombine.high %v1598_v18, %v1602_v19 }
 0xe1e   :  { %v1541_v32 = vadd.f32 %v1537_v24, %v1528_v29  ;;  %v1540_v34 = vadd.f32 %v1533_v27, %v1527_v30  ;;  %v1606_v24 = vld [vmem:[#allocation26 + $0x1d0] sm:$0xff]  ;;  %v1607_v29 = vld [vmem:[#allocation26 + $0x1d8] sm:$0xff] }
 0xe1f   :  { %v1610_v27 = vld [vmem:[#allocation26 + $0x1f0] sm:$0xff]  ;;  %v1611_v30 = vld [vmem:[#allocation26 + $0x1f8] sm:$0xff] }
 0xe20   :  { %v1543_v35 = vadd.f32 %v1541_v32, %v1200_v31  ;;  %v1542_v37 = vadd.f32 %v1540_v34, %v1199_v33  ;;  %v4387_v31 = vcombine.low %v1598_v18, %v1602_v19  ;;  %v4389_v32 = vcombine.low %v1599_v21, %v1603_v20  ;;  %v1659_v18 = vld [vmem:[#allocation26 + $0x378] sm:$0xff] }
 0xe21   :  { %v4396_v33 = vcombine.high %v1606_v24, %v1610_v27  ;;  %v4398_v34 = vcombine.high %v1607_v29, %v1611_v30  ;;  %v4395_v40 = vcombine.low %v1606_v24, %v1610_v27  ;;  %v4397_v41 = vcombine.low %v1607_v29, %v1611_v30  ;;  %v1667_v24 = vld [vmem:[#allocation26 + $0x3b8] sm:$0xff] }
 0xe22   :  { %v1545_v38 = vmax.f32 %v1543_v35, 0.0  ;;  %v1544_v39 = vmax.f32 %v1542_v37, 0.0  ;;  %v1614_v35 = vld [vmem:[#allocation26 + $0x210] sm:$0xff] }
 0xe23   :  { %v1618_v37 = vld [vmem:[#allocation26 + $0x230] sm:$0xff] }
 0xe24   :  { %v1547_v43 = vpack.c.bf16 %v1545_v38, %v1545_v38  ;;  %v6207_v1 = vpack.c.bf16 %v1544_v39, %v1544_v39  ;;  %v1615_v38 = vld [vmem:[#allocation26 + $0x218] sm:$0xff]  ;;  %v4404_v42 = vcombine.high %v1614_v35, %v1618_v37  ;;  %v4403_v49 = vcombine.low %v1614_v35, %v1618_v37 }
 0xe25   :  { %v1619_v39 = vld [vmem:[#allocation26 + $0x238] sm:$0xff] }
 0xe26   :  { %2348 = vmatprep.mubr.bf16.mxu1 %v1547_v43  ;;  %2389 = vmatprep.mubr.bf16.mxu0 %v1547_v43  ;;  %v4406_v63 = vcombine.high %v1615_v38, %v1619_v39  ;;  %v4405_v50 = vcombine.low %v1615_v38, %v1619_v39  ;;  %v1675_v35 = vld [vmem:[#allocation26 + $0x3f8] sm:$0xff] }
 0xe27   :  { %2349 = vmatmul.mubr.bf16.vlgmr.msra.gmra.mrb[12].mxu1 %v6207_v1  ;;  %2390 = vmatmul.mubr.bf16.vlgmr.msra.gmra.mrb[16].mxu0 %v6207_v1 }
 0xe28   :  { %2399 = vmatpush1.bf16.msra.mxu1 %v4339_v2  ;;  %2440 = vmatpush1.bf16.msra.mxu0 %v4341_v3  ;;  %v4364_v2 = vcombine.high %v1574_v56, %v1578_v58  ;;  %v4366_v3 = vcombine.high %v1575_v60, %v1579_v61  ;;  %v1635_v56 = vld [vmem:[#allocation26 + $0x2b8] sm:$0xff] }
 0xe29   :  { %2430 = vmatprep.mubr.bf16.mxu1 %v1547_v43  ;;  %2471 = vmatprep.mubr.bf16.mxu0 %v1547_v43  ;;  %v1622_v43 = vld [vmem:[#allocation26 + $0x250] sm:$0xff] }
 0xe2a   :  { %2400 = vmatprep.subr.bf16.mxu1 %v4348_v47  ;;  %2441 = vmatprep.subr.bf16.mxu0 %v4350_v48  ;;  %v1623_v47 = vld [vmem:[#allocation26 + $0x258] sm:$0xff]  ;;  %v4412_v51 = vcombine.high %v1622_v43, %v1626_v44  ;;  %v4411_v58 = vcombine.low %v1622_v43, %v1626_v44  ;;  %v6217_v43 = vsub.s32 2, %v6141_v57 }
 0xe2b   :  { %v1627_v48 = vld [vmem:[#allocation26 + $0x278] sm:$0xff] }
 0xe2c   :  { %2401 = vmatpush1.bf16.msra.mxu1 %v4347_v52  ;;  %2442 = vmatpush1.bf16.msra.mxu0 %v4349_v53  ;;  %v4414_v52 = vcombine.high %v1623_v47, %v1627_v48  ;;  %v1630_v53 = vld [vmem:[#allocation26 + $0x290] sm:$0xff]  ;;  %v4413_v60 = vcombine.low %v1623_v47, %v1627_v48  ;;  %v6222_v48 = vsub.s32 3, %v6141_v57 }
 0xe2d   :  { %2402 = vmatprep.subr.bf16.mxu1 %v4356_v54  ;;  %2443 = vmatprep.subr.bf16.mxu0 %v4358_v55  ;;  %v1634_v54 = vld [vmem:[#allocation26 + $0x2b0] sm:$0xff]  ;;  %v1631_v55 = vld [vmem:[#allocation26 + $0x298] sm:$0xff] }
 0xe2e   :  { %v4420_v61 = vcombine.high %v1630_v53, %v1634_v54  ;;  %v4419_v5 = vcombine.low %v1630_v53, %v1634_v54  ;;  %v4421_v6 = vcombine.low %v1631_v55, %v1635_v56 }
 0xe30   :  { %2403 = vmatpush1.bf16.msra.mxu1 %v4355_v62  ;;  %2444 = vmatpush1.bf16.msra.mxu0 %v4357_v4  ;;  %v4422_v62 = vcombine.high %v1631_v55, %v1635_v56  ;;  %v1638_v4 = vld [vmem:[#allocation26 + $0x2d0] sm:$0xff] }
 0xe31   :  { %2404 = vmatprep.subr.bf16.mxu1 %v4364_v2  ;;  %2445 = vmatprep.subr.bf16.mxu0 %v4366_v3  ;;  %v1642_v2 = vld [vmem:[#allocation26 + $0x2f0] sm:$0xff]  ;;  %v1639_v3 = vld [vmem:[#allocation26 + $0x2d8] sm:$0xff] }
 0xe32   :  { %v4428_v7 = vcombine.high %v1638_v4, %v1642_v2  ;;  %v4427_v11 = vcombine.low %v1638_v4, %v1642_v2  ;;  %v4429_v12 = vcombine.low %v1639_v3, %v1643_v0 }
 0xe34   :  { %2405 = vmatpush1.bf16.msra.mxu1 %v4363_v8  ;;  %2446 = vmatpush1.bf16.msra.mxu0 %v4365_v9  ;;  %v4430_v8 = vcombine.high %v1639_v3, %v1643_v0  ;;  %v1646_v9 = vld [vmem:[#allocation26 + $0x310] sm:$0xff] }
 0xe35   :  { %2406 = vmatprep.subr.bf16.mxu1 %v4372_v10  ;;  %2447 = vmatprep.subr.bf16.mxu0 %v4374_v25  ;;  %v1650_v10 = vld [vmem:[#allocation26 + $0x330] sm:$0xff]  ;;  %v1647_v25 = vld [vmem:[#allocation26 + $0x318] sm:$0xff] }
 0xe36   :  { %v4436_v13 = vcombine.high %v1646_v9, %v1650_v10  ;;  %v4435_v19 = vcombine.low %v1646_v9, %v1650_v10  ;;  %v4437_v21 = vcombine.low %v1647_v25, %v1651_v28  ;;  %v2506_v0 = vld [vmem:[#allocation31] ss:$4 sm:$0xf] }
 0xe37   :  { %v2519_v9 = vrot.slane %v2506_v0, %v6217_v43 }
 0xe38   :  { %2407 = vmatpush1.bf16.msra.mxu1 %v4371_v14  ;;  %2448 = vmatpush1.bf16.msra.mxu0 %v4373_v15  ;;  %v4438_v14 = vcombine.high %v1647_v25, %v1651_v28  ;;  %v1654_v15 = vld [vmem:[#allocation26 + $0x350] sm:$0xff] }
 0xe39   :  { %2408 = vmatprep.subr.bf16.mxu1 %v4380_v16  ;;  %2449 = vmatprep.subr.bf16.mxu0 %v4382_v17  ;;  %v1658_v16 = vld [vmem:[#allocation26 + $0x370] sm:$0xff]  ;;  %v1655_v17 = vld [vmem:[#allocation26 + $0x358] sm:$0xff] }
 0xe3a   :  { %v4444_v20 = vcombine.high %v1654_v15, %v1658_v16  ;;  %v4443_v27 = vcombine.low %v1654_v15, %v1658_v16  ;;  %v4445_v29 = vcombine.low %v1655_v17, %v1659_v18 }
 0xe3c   :  { %2409 = vmatpush1.bf16.msra.mxu1 %v4379_v22  ;;  %2450 = vmatpush1.bf16.msra.mxu0 %v4381_v45  ;;  %v4446_v22 = vcombine.high %v1655_v17, %v1659_v18  ;;  %v1662_v45 = vld [vmem:[#allocation26 + $0x390] sm:$0xff] }
 0xe3d   :  { %2410 = vmatprep.subr.bf16.mxu1 %v4388_v46  ;;  %2451 = vmatprep.subr.bf16.mxu0 %v4390_v23  ;;  %v1666_v46 = vld [vmem:[#allocation26 + $0x3b0] sm:$0xff]  ;;  %v1663_v23 = vld [vmem:[#allocation26 + $0x398] sm:$0xff] }
 0xe3e   :  { %v4452_v30 = vcombine.high %v1662_v45, %v1666_v46  ;;  %v4451_v37 = vcombine.low %v1662_v45, %v1666_v46  ;;  %v4453_v38 = vcombine.low %v1663_v23, %v1667_v24  ;;  %v4923_v45 = vld [vmem:[#allocation28 + $0x4] ss:$16 sps:$4 sm:$0xff]   ;;  %v4924_v46 = vld [vmem:[#allocation28 + $0x8] ss:$16 sps:$4 sm:$0xff]  }
 0xe40   :  { %2411 = vmatpush1.bf16.msra.mxu1 %v4387_v31  ;;  %2452 = vmatpush1.bf16.msra.mxu0 %v4389_v32  ;;  %v4454_v31 = vcombine.high %v1663_v23, %v1667_v24  ;;  %v1670_v32 = vld [vmem:[#allocation26 + $0x3d0] sm:$0xff]  ;;  %v4926_v23 = vld [vmem:[#allocation28 + $0xc] ss:$16 sps:$4 sm:$0xff]  }
 0xe41   :  { %2412 = vmatprep.subr.bf16.mxu1 %v4396_v33  ;;  %2453 = vmatprep.subr.bf16.mxu0 %v4398_v34  ;;  %v1674_v33 = vld [vmem:[#allocation26 + $0x3f0] sm:$0xff]  ;;  %v1671_v34 = vld [vmem:[#allocation26 + $0x3d8] sm:$0xff] }
 0xe42   :  { %v4460_v39 = vcombine.high %v1670_v32, %v1674_v33  ;;  %v4929_v24 = vld [vmem:[#allocation28 + $0x24] ss:$16 sps:$4 sm:$0xff]  }
 0xe44   :  { %2413 = vmatpush1.bf16.msra.mxu1 %v4395_v40  ;;  %2454 = vmatpush1.bf16.msra.mxu0 %v4397_v41  ;;  %v4462_v40 = vcombine.high %v1671_v34, %v1675_v35  ;;  %v4459_v41 = vcombine.low %v1670_v32, %v1674_v33  ;;  %v4938_v32 = vld [vmem:[#allocation28 + $0x4c] ss:$16 sps:$4 sm:$0xff]   ;;  %v4933_v33 = vld [vmem:[#allocation28 + $0x40] ss:$16 sps:$4 sm:$0xff]  }
 0xe45   :  { %2414 = vmatprep.subr.bf16.mxu1 %v4404_v42  ;;  %2455 = vmatprep.subr.bf16.mxu0 %v4406_v63  ;;  %v4461_v42 = vcombine.low %v1671_v34, %v1675_v35  ;;  %v2480_v63 = vld [vmem:[%s6459_s18] ss:$4 sm:$0xf] }
 0xe46   :  { %v2485_v44 = vrot.slane %v2480_v63, %v6144_v36  ;;  %v2489_v47 = vrot.slane %v2480_v63, %v6147_v59  ;;  %v2497_v55 = vrot.slane %v2480_v63, %v6222_v48  ;;  %v4936_v34 = vld [vmem:[#allocation28 + $0x48] ss:$16 sps:$4 sm:$0xff]   ;;  %v4941_v35 = vld [vmem:[#allocation28 + $0x64] ss:$16 sps:$4 sm:$0xff]  }
 0xe48   :  { %2415 = vmatpush1.bf16.msra.mxu1 %v4403_v49  ;;  %2456 = vmatpush1.bf16.msra.mxu0 %v4405_v50 }
 0xe49   :  { %2416 = vmatprep.subr.bf16.mxu1 %v4412_v51  ;;  %2457 = vmatprep.subr.bf16.mxu0 %v4414_v52  ;;  %v2493_v51 = vrot.slane %v2480_v63, %v6217_v43  ;;  %v4948_v63 = vld [vmem:[#allocation28 + $0x88] ss:$16 sps:$4 sm:$0xff]  }
 0xe4c   :  { %2417 = vmatpush1.bf16.msra.mxu1 %v4411_v58  ;;  %2458 = vmatpush1.bf16.msra.mxu0 %v4413_v60 }
 0xe4d   :  { %2418 = vmatprep.subr.bf16.mxu1 %v4420_v61  ;;  %2459 = vmatprep.subr.bf16.mxu0 %v4422_v62 }
 0xe50   :  { %2419 = vmatpush1.bf16.msra.mxu1 %v4419_v5  ;;  %2460 = vmatpush1.bf16.msra.mxu0 %v4421_v6  ;;  %v2511_v5 = vrot.slane %v2506_v0, %v6144_v36  ;;  %v2515_v6 = vrot.slane %v2506_v0, %v6147_v59 }
 0xe51   :  { %2420 = vmatprep.subr.bf16.mxu1 %v4428_v7  ;;  %2461 = vmatprep.subr.bf16.mxu0 %v4430_v8 }
 0xe54   :  { %2421 = vmatpush1.bf16.msra.mxu1 %v4427_v11  ;;  %2462 = vmatpush1.bf16.msra.mxu0 %v4429_v12  ;;  %v2523_v12 = vrot.slane %v2506_v0, %v6222_v48  ;;  %v4972_v0 = vld [vmem:[#allocation28 + $0x108] ss:$16 sps:$4 sm:$0xff]  }
 0xe55   :  { %2422 = vmatprep.subr.bf16.mxu1 %v4436_v13  ;;  %2463 = vmatprep.subr.bf16.mxu0 %v4438_v14 }
 0xe58   :  { %2423 = vmatpush1.bf16.msra.mxu1 %v4435_v19  ;;  %2464 = vmatpush1.bf16.msra.mxu0 %v4437_v21 }
 0xe59   :  { %2424 = vmatprep.subr.bf16.mxu1 %v4444_v20  ;;  %2465 = vmatprep.subr.bf16.mxu0 %v4446_v22  ;;  %v4921_v22 = vld [vmem:[#allocation28] ss:$16 sps:$4 sm:$0xff]  }
 0xe5c   :  { %2425 = vmatpush1.bf16.msra.mxu1 %v4443_v27  ;;  %2466 = vmatpush1.bf16.msra.mxu0 %v4445_v29  ;;  %v4932_v27 = vld [vmem:[#allocation28 + $0x2c] ss:$16 sps:$4 sm:$0xff]   ;;  %v4927_v29 = vld [vmem:[#allocation28 + $0x20] ss:$16 sps:$4 sm:$0xff]  }
 0xe5d   :  { %2426 = vmatprep.subr.bf16.mxu1 %v4452_v30  ;;  %2467 = vmatprep.subr.bf16.mxu0 %v4454_v31  ;;  %v4930_v30 = vld [vmem:[#allocation28 + $0x28] ss:$16 sps:$4 sm:$0xff]   ;;  %v4935_v31 = vld [vmem:[#allocation28 + $0x44] ss:$16 sps:$4 sm:$0xff]  }
 0xe60   :  { %2427 = vmatpush1.bf16.msra.mxu1 %v4451_v37  ;;  %2468 = vmatpush1.bf16.msra.mxu0 %v4453_v38  ;;  %v4944_v37 = vld [vmem:[#allocation28 + $0x6c] ss:$16 sps:$4 sm:$0xff]   ;;  %v4939_v38 = vld [vmem:[#allocation28 + $0x60] ss:$16 sps:$4 sm:$0xff]  }
 0xe61   :  { %2428 = vmatprep.subr.bf16.mxu1 %v4460_v39  ;;  %2469 = vmatprep.subr.bf16.mxu0 %v4462_v40  ;;  %v4942_v39 = vld [vmem:[#allocation28 + $0x68] ss:$16 sps:$4 sm:$0xff]   ;;  %v4947_v40 = vld [vmem:[#allocation28 + $0x84] ss:$16 sps:$4 sm:$0xff]  }
 0xe64   :  { %2429 = vmatpush1.bf16.msra.mxu1 %v4459_v41  ;;  %2470 = vmatpush1.bf16.msra.mxu0 %v4461_v42  ;;  %v4950_v41 = vld [vmem:[#allocation28 + $0x8c] ss:$16 sps:$4 sm:$0xff]   ;;  %v4945_v42 = vld [vmem:[#allocation28 + $0x80] ss:$16 sps:$4 sm:$0xff]  }
 0xe65   :  { %3491 = vmatprep.subr.bf16.mxu1 %v4923_v45  ;;  %3573 = vmatprep.subr.bf16.mxu0 %v4926_v23  ;;  %v4984_v45 = vld [vmem:[#allocation28 + $0x148] ss:$16 sps:$4 sm:$0xff]   ;;  %v4989_v23 = vld [vmem:[#allocation28 + $0x164] ss:$16 sps:$4 sm:$0xff]  }
 0xe67   :  { %2431 = vmatmul.mubr.bf16.vlgmr.msra.gmra.mrb[16].mxu1 %v6207_v1  ;;  %2472 = vmatmul.mubr.bf16.vlgmr.msra.gmra.mrb[20].mxu0 %v6207_v1 }
 0xe68   :  { %3492 = vmatpush1.bf16.msra.mxu1 %v4921_v22  ;;  %3574 = vmatpush1.bf16.msra.mxu0 %v4924_v46  ;;  %v4986_v22 = vld [vmem:[#allocation28 + $0x14c] ss:$16 sps:$4 sm:$0xff]   ;;  %v4987_v46 = vld [vmem:[#allocation28 + $0x160] ss:$16 sps:$4 sm:$0xff]  }
 0xe69   :  { %3493 = vmatprep.subr.bf16.mxu1 %v4929_v24  ;;  %3575 = vmatprep.subr.bf16.mxu0 %v4932_v27  ;;  %v4990_v24 = vld [vmem:[#allocation28 + $0x168] ss:$16 sps:$4 sm:$0xff]   ;;  %v4992_v27 = vld [vmem:[#allocation28 + $0x16c] ss:$16 sps:$4 sm:$0xff]  }
 0xe6c   :  { %3494 = vmatpush1.bf16.msra.mxu1 %v4927_v29  ;;  %3576 = vmatpush1.bf16.msra.mxu0 %v4930_v30  ;;  %v4995_v29 = vld [vmem:[#allocation28 + $0x184] ss:$16 sps:$4 sm:$0xff]   ;;  %v4998_v30 = vld [vmem:[#allocation28 + $0x18c] ss:$16 sps:$4 sm:$0xff]  }
 0xe6d   :  { %3495 = vmatprep.subr.bf16.mxu1 %v4935_v31  ;;  %3577 = vmatprep.subr.bf16.mxu0 %v4938_v32  ;;  %v4993_v31 = vld [vmem:[#allocation28 + $0x180] ss:$16 sps:$4 sm:$0xff]   ;;  %v4996_v32 = vld [vmem:[#allocation28 + $0x188] ss:$16 sps:$4 sm:$0xff]  }
 0xe70   :  { %3496 = vmatpush1.bf16.msra.mxu1 %v4933_v33  ;;  %3578 = vmatpush1.bf16.msra.mxu0 %v4936_v34  ;;  %v5001_v33 = vld [vmem:[#allocation28 + $0x1a4] ss:$16 sps:$4 sm:$0xff]   ;;  %v5004_v34 = vld [vmem:[#allocation28 + $0x1ac] ss:$16 sps:$4 sm:$0xff]  }
 0xe71   :  { %3497 = vmatprep.subr.bf16.mxu1 %v4941_v35  ;;  %3579 = vmatprep.subr.bf16.mxu0 %v4944_v37  ;;  %v4999_v35 = vld [vmem:[#allocation28 + $0x1a0] ss:$16 sps:$4 sm:$0xff]   ;;  %v5002_v37 = vld [vmem:[#allocation28 + $0x1a8] ss:$16 sps:$4 sm:$0xff]  }
 0xe74   :  { %3498 = vmatpush1.bf16.msra.mxu1 %v4939_v38  ;;  %3580 = vmatpush1.bf16.msra.mxu0 %v4942_v39  ;;  %v5007_v38 = vld [vmem:[#allocation28 + $0x1c4] ss:$16 sps:$4 sm:$0xff]   ;;  %v5010_v39 = vld [vmem:[#allocation28 + $0x1cc] ss:$16 sps:$4 sm:$0xff]  }
 0xe75   :  { %3499 = vmatprep.subr.bf16.mxu1 %v4947_v40  ;;  %3581 = vmatprep.subr.bf16.mxu0 %v4950_v41  ;;  %v5005_v40 = vld [vmem:[#allocation28 + $0x1c0] ss:$16 sps:$4 sm:$0xff]   ;;  %v5008_v41 = vld [vmem:[#allocation28 + $0x1c8] ss:$16 sps:$4 sm:$0xff]  }
 0xe78   :  { %3500 = vmatpush1.bf16.msra.mxu1 %v4945_v42  ;;  %3582 = vmatpush1.bf16.msra.mxu0 %v4948_v63  ;;  %v5013_v42 = vld [vmem:[#allocation28 + $0x1e4] ss:$16 sps:$4 sm:$0xff]   ;;  %v5016_v63 = vld [vmem:[#allocation28 + $0x1ec] ss:$16 sps:$4 sm:$0xff]  }
 0xefa   :  { %v2350_v49 = vpop.f32.mrb[12].mxu1  ;;  %v2391_v50 = vpop.f32.mrb[16].mxu0 }
 0xefb   :  { %v6225_v52 = vadd.f32 %v2485_v44, %v2350_v49  ;;  %v2352_v1 = vpop.f32.mrb[13].mxu1  ;;  %v2393_v53 = vpop.f32.mrb[17].mxu0  ;;  %v6230_v62 = vadd.f32 %v2493_v51, %v2391_v50  ;;  %v4953_v44 = vld [vmem:[#allocation28 + $0xa4] ss:$16 sps:$4 sm:$0xff]   ;;  %v4951_v49 = vld [vmem:[#allocation28 + $0xa0] ss:$16 sps:$4 sm:$0xff]  }
 0xefc   :  { %v6227_v54 = vadd.f32 %v2489_v47, %v2352_v1  ;;  %v2354_v56 = vpop.f32.mrb[14].mxu1  ;;  %v2395_v58 = vpop.f32.mrb[18].mxu0  ;;  %v6234_v4 = vadd.f32 %v2497_v55, %v2393_v53  ;;  %v4956_v47 = vld [vmem:[#allocation28 + $0xac] ss:$16 sps:$4 sm:$0xff]   ;;  %3501 = vmatprep.subr.bf16.mxu1 %v4953_v44  ;;  %v4954_v50 = vld [vmem:[#allocation28 + $0xa8] ss:$16 sps:$4 sm:$0xff]  }
 0xefd   :  { %v2355_v60 = vpop.f32.mrb[15].mxu1  ;;  %v2396_v61 = vpop.f32.mrb[19].mxu0  ;;  %v4959_v51 = vld [vmem:[#allocation28 + $0xc4] ss:$16 sps:$4 sm:$0xff]   ;;  %3583 = vmatprep.subr.bf16.mxu0 %v4956_v47  ;;  %v4962_v1 = vld [vmem:[#allocation28 + $0xcc] ss:$16 sps:$4 sm:$0xff]   ;;  %3502 = vmatpush1.bf16.msra.mxu1 %v4951_v49 }
 0xefe   :  { %v2617_v57 = vadd.f32 %v6227_v54, %v6225_v52  ;;  %v4957_v53 = vld [vmem:[#allocation28 + $0xc0] ss:$16 sps:$4 sm:$0xff]   ;;  %3584 = vmatpush1.bf16.msra.mxu0 %v4954_v50  ;;  %3503 = vmatprep.subr.bf16.mxu1 %v4959_v51  ;;  %v4960_v55 = vld [vmem:[#allocation28 + $0xc8] ss:$16 sps:$4 sm:$0xff]   ;;  %v4965_v56 = vld [vmem:[#allocation28 + $0xe4] ss:$16 sps:$4 sm:$0xff]  }
 0xeff   :  { %3585 = vmatprep.subr.bf16.mxu0 %v4962_v1  ;;  %v4968_v58 = vld [vmem:[#allocation28 + $0xec] ss:$16 sps:$4 sm:$0xff]   ;;  %v4963_v60 = vld [vmem:[#allocation28 + $0xe0] ss:$16 sps:$4 sm:$0xff]   ;;  %v4966_v61 = vld [vmem:[#allocation28 + $0xe8] ss:$16 sps:$4 sm:$0xff]  }
 0xf00   :  { %v2618_v2 = vadd.f32 %v2617_v57, %v6230_v62  ;;  %v4971_v57 = vld [vmem:[#allocation28 + $0x104] ss:$16 sps:$4 sm:$0xff]   ;;  %v5011_v44 = vld [vmem:[#allocation28 + $0x1e0] ss:$16 sps:$4 sm:$0xff]   ;;  %v5014_v47 = vld [vmem:[#allocation28 + $0x1e8] ss:$16 sps:$4 sm:$0xff]  }
 0xf01   :  { %3504 = vmatpush1.bf16.msra.mxu1 %v4957_v53  ;;  %v5019_v49 = vld [vmem:[#allocation28 + $0x204] ss:$16 sps:$4 sm:$0xff]   ;;  %v5022_v50 = vld [vmem:[#allocation28 + $0x20c] ss:$16 sps:$4 sm:$0xff]  }
 0xf02   :  { %v2619_v3 = vadd.f32 %v2618_v2, %v6234_v4  ;;  %3586 = vmatpush1.bf16.msra.mxu0 %v4960_v55  ;;  %3505 = vmatprep.subr.bf16.mxu1 %v4965_v56  ;;  %v4974_v2 = vld [vmem:[#allocation28 + $0x10c] ss:$16 sps:$4 sm:$0xff]  }
 0xf03   :  { %3587 = vmatprep.subr.bf16.mxu0 %v4968_v58 }
 0xf04   :  { %2620 = vadd.xlane.f32.xlu0 %v2619_v3  ;;  %v4969_v3 = vld [vmem:[#allocation28 + $0x100] ss:$16 sps:$4 sm:$0xff]  }
 0xf05   :  { %3506 = vmatpush1.bf16.msra.mxu1 %v4963_v60 }
 0xf06   :  { %3588 = vmatpush1.bf16.msra.mxu0 %v4966_v61  ;;  %3507 = vmatprep.subr.bf16.mxu1 %v4971_v57 }
 0xf07   :  { %3589 = vmatprep.subr.bf16.mxu0 %v4974_v2 }
 0xf09   :  { %3508 = vmatpush1.bf16.msra.mxu1 %v4969_v3 }
 0xf0a   :  { %3590 = vmatpush1.bf16.msra.mxu0 %v4972_v0 }
 0xf3a   :  { %v2432_v7 = vpop.f32.mrb[16].mxu1  ;;  %v2473_v8 = vpop.f32.mrb[20].mxu0 }
 0xf3b   :  { %v6241_v10 = vadd.f32 %v2511_v5, %v2432_v7  ;;  %v2434_v25 = vpop.f32.mrb[17].mxu1  ;;  %v2475_v28 = vpop.f32.mrb[21].mxu0  ;;  %v6246_v17 = vadd.f32 %v2519_v9, %v2473_v8  ;;  %v4977_v5 = vld [vmem:[#allocation28 + $0x124] ss:$16 sps:$4 sm:$0xff]   ;;  %v4975_v7 = vld [vmem:[#allocation28 + $0x120] ss:$16 sps:$4 sm:$0xff]  }
 0xf3c   :  { %v6243_v11 = vadd.f32 %v2515_v6, %v2434_v25  ;;  %v2436_v13 = vpop.f32.mrb[18].mxu1  ;;  %v2477_v14 = vpop.f32.mrb[22].mxu0  ;;  %v6250_v19 = vadd.f32 %v2523_v12, %v2475_v28  ;;  %v4980_v6 = vld [vmem:[#allocation28 + $0x12c] ss:$16 sps:$4 sm:$0xff]   ;;  %3509 = vmatprep.subr.bf16.mxu1 %v4977_v5  ;;  %v4978_v8 = vld [vmem:[#allocation28 + $0x128] ss:$16 sps:$4 sm:$0xff]  }
 0xf3d   :  { %v2437_v15 = vpop.f32.mrb[19].mxu1  ;;  %v2478_v16 = vpop.f32.mrb[23].mxu0  ;;  %3591 = vmatprep.subr.bf16.mxu0 %v4980_v6  ;;  %3510 = vmatpush1.bf16.msra.mxu1 %v4975_v7  ;;  %v4463_v5 = vld [vmem:[%s6459_s18 + $0x1] ss:$4 sm:$0xf] }
 0xf3e   :  { %v2536_v18 = vadd.f32 %v6243_v11, %v6241_v10  ;;  %3592 = vmatpush1.bf16.msra.mxu0 %v4978_v8  ;;  %v4464_v6 = vld [vmem:[%s6459_s18 + $0x2] ss:$4 sm:$0xf]  ;;  %v2651_v7 = vrot.slane %v4463_v5, %v6147_v59  ;;  %v2647_v8 = vrot.slane %v4463_v5, %v6144_v36 }
 0xf3f   :  { %3593 = vmatprep.subr.bf16.mxu0 %v4986_v22 }
 0xf40   :  { %v2537_v21 = vadd.f32 %v2536_v18, %v6246_v17 }
 0xf42   :  { %v2538_v20 = vadd.f32 %v2537_v21, %v6250_v19  ;;  %3594 = vmatpush1.bf16.msra.mxu0 %v4984_v45 }
 0xf43   :  { %3595 = vmatprep.subr.bf16.mxu0 %v4992_v27 }
 0xf44   :  { %2539 = vadd.xlane.f32.xlu0 %v2538_v20 }
 0xf46   :  { %3596 = vmatpush1.bf16.msra.mxu0 %v4990_v24 }
 0xf47   :  { %3597 = vmatprep.subr.bf16.mxu0 %v4998_v30 }
 0xf4a   :  { %3598 = vmatpush1.bf16.msra.mxu0 %v4996_v32 }
 0xf4b   :  { %3599 = vmatprep.subr.bf16.mxu0 %v5004_v34 }
 0xf4e   :  { %3600 = vmatpush1.bf16.msra.mxu0 %v5002_v37 }
 0xf4f   :  { %3601 = vmatprep.subr.bf16.mxu0 %v5010_v39  ;;  %v5026_v39 = vld [vmem:[#allocation28 + $0x228] ss:$16 sps:$4 sm:$0xff]  }
 0xf52   :  { %3602 = vmatpush1.bf16.msra.mxu0 %v5008_v41  ;;  %v5034_v41 = vld [vmem:[#allocation28 + $0x24c] ss:$16 sps:$4 sm:$0xff]  }
 0xf53   :  { %3603 = vmatprep.subr.bf16.mxu0 %v5016_v63  ;;  %v5032_v63 = vld [vmem:[#allocation28 + $0x248] ss:$16 sps:$4 sm:$0xff]  }
 0xf56   :  { %3604 = vmatpush1.bf16.msra.mxu0 %v5014_v47  ;;  %v5040_v47 = vld [vmem:[#allocation28 + $0x26c] ss:$16 sps:$4 sm:$0xff]  }
 0xf57   :  { %3614 = vmatprep.subr.bf16.mxu0 %v5022_v50  ;;  %v5038_v50 = vld [vmem:[#allocation28 + $0x268] ss:$16 sps:$4 sm:$0xff]  }
 0xf91   :  { %v2621_v9 = vpop.xlane.xlu0 %2620 }
 0xf92   :  { %v2622_v25 = vmul.f32 0.001953125, %v2621_v9  ;;  %v2659_v9 = vrot.slane %v4463_v5, %v6222_v48 }
 0xf94   :  { %v6255_v28 = vsub.f32 %v6225_v52, %v2622_v25  ;;  %v6258_v12 = vsub.f32 %v6227_v54, %v2622_v25  ;;  %v6261_v13 = vsub.f32 %v6230_v62, %v2622_v25  ;;  %v6264_v14 = vsub.f32 %v6234_v4, %v2622_v25  ;;  %v4983_v62 = vld [vmem:[#allocation28 + $0x144] ss:$16 sps:$4 sm:$0xff]   ;;  %v4981_v4 = vld [vmem:[#allocation28 + $0x140] ss:$16 sps:$4 sm:$0xff]  }
 0xf95   :  { %3511 = vmatprep.subr.bf16.mxu1 %v4983_v62  ;;  %v2655_v25 = vrot.slane %v4463_v5, %v6217_v43  ;;  %v5061_v5 = vld [vmem:[#allocation28 + $0x2e4] ss:$16 sps:$4 sm:$0xff]  }
 0xf96   :  { %v2627_v15 = vmul.f32 %v6255_v28, %v6255_v28  ;;  %v2628_v16 = vmul.f32 %v6258_v12, %v6258_v12  ;;  %v2629_v18 = vmul.f32 %v6261_v13, %v6261_v13  ;;  %v2630_v54 = vmul.f32 %v6264_v14, %v6264_v14  ;;  %3512 = vmatpush1.bf16.msra.mxu1 %v4981_v4 }
 0xf97   :  { %3513 = vmatprep.subr.bf16.mxu1 %v4989_v23 }
 0xf98   :  { %v2631_v52 = vadd.f32 %v2628_v16, %v2627_v15  ;;  %v2676_v16 = vrot.slane %v4464_v6, %v6147_v59 }
 0xf9a   :  { %v2632_v21 = vadd.f32 %v2631_v52, %v2629_v18  ;;  %3514 = vmatpush1.bf16.msra.mxu1 %v4987_v46  ;;  %v2672_v18 = vrot.slane %v4464_v6, %v6144_v36  ;;  %v2684_v52 = vrot.slane %v4464_v6, %v6222_v48 }
 0xf9b   :  { %3515 = vmatprep.subr.bf16.mxu1 %v4995_v29 }
 0xf9c   :  { %v2633_v20 = vadd.f32 %v2632_v21, %v2630_v54  ;;  %v2680_v54 = vrot.slane %v4464_v6, %v6217_v43  ;;  %v5064_v6 = vld [vmem:[#allocation28 + $0x2ec] ss:$16 sps:$4 sm:$0xff]  }
 0xf9e   :  { %2634 = vadd.xlane.f32.xlu1 %v2633_v20  ;;  %3516 = vmatpush1.bf16.msra.mxu1 %v4993_v31 }
 0xf9f   :  { %3517 = vmatprep.subr.bf16.mxu1 %v5001_v33 }
 0xfa2   :  { %3518 = vmatpush1.bf16.msra.mxu1 %v4999_v35  ;;  %v5020_v35 = vld [vmem:[#allocation28 + $0x208] ss:$16 sps:$4 sm:$0xff]  }
 0xfa3   :  { %3519 = vmatprep.subr.bf16.mxu1 %v5007_v38  ;;  %v5023_v38 = vld [vmem:[#allocation28 + $0x220] ss:$16 sps:$4 sm:$0xff]  }
 0xfa6   :  { %3520 = vmatpush1.bf16.msra.mxu1 %v5005_v40  ;;  %v5031_v40 = vld [vmem:[#allocation28 + $0x244] ss:$16 sps:$4 sm:$0xff]  }
 0xfa7   :  { %3521 = vmatprep.subr.bf16.mxu1 %v5013_v42  ;;  %v5029_v42 = vld [vmem:[#allocation28 + $0x240] ss:$16 sps:$4 sm:$0xff]  }
 0xfaa   :  { %3522 = vmatpush1.bf16.msra.mxu1 %v5011_v44  ;;  %v5037_v44 = vld [vmem:[#allocation28 + $0x264] ss:$16 sps:$4 sm:$0xff]  }
 0xfab   :  { %3532 = vmatprep.subr.bf16.mxu1 %v5019_v49  ;;  %v5035_v49 = vld [vmem:[#allocation28 + $0x260] ss:$16 sps:$4 sm:$0xff]  }
 0xfd1   :  { %v2540_v51 = vpop.xlane.xlu0 %2539 }
 0xfd2   :  { %v2542_v1 = vmul.f32 0.001953125, %v2540_v51  ;;  %v5043_v51 = vld [vmem:[#allocation28 + $0x284] ss:$16 sps:$4 sm:$0xff]  }
 0xfd4   :  { %v6275_v53 = vsub.f32 %v6241_v10, %v2542_v1  ;;  %v6278_v55 = vsub.f32 %v6243_v11, %v2542_v1  ;;  %v6281_v56 = vsub.f32 %v6246_v17, %v2542_v1  ;;  %v6284_v58 = vsub.f32 %v6250_v19, %v2542_v1  ;;  %v5046_v1 = vld [vmem:[#allocation28 + $0x28c] ss:$16 sps:$4 sm:$0xff]  }
 0xfd6   :  { %v2547_v60 = vmul.f32 %v6275_v53, %v6275_v53  ;;  %v2548_v61 = vmul.f32 %v6278_v55, %v6278_v55  ;;  %v2549_v57 = vmul.f32 %v6281_v56, %v6281_v56  ;;  %v2550_v11 = vmul.f32 %v6284_v58, %v6284_v58 }
 0xfd8   :  { %v2551_v10 = vadd.f32 %v2548_v61, %v2547_v60  ;;  %v5041_v60 = vld [vmem:[#allocation28 + $0x280] ss:$16 sps:$4 sm:$0xff]   ;;  %v5044_v61 = vld [vmem:[#allocation28 + $0x288] ss:$16 sps:$4 sm:$0xff]  }
 0xfda   :  { %v2552_v2 = vadd.f32 %v2551_v10, %v2549_v57  ;;  %v5049_v57 = vld [vmem:[#allocation28 + $0x2a4] ss:$16 sps:$4 sm:$0xff]   ;;  %v5052_v10 = vld [vmem:[#allocation28 + $0x2ac] ss:$16 sps:$4 sm:$0xff]  }
 0xfdc   :  { %v2553_v3 = vadd.f32 %v2552_v2, %v2550_v11  ;;  %v5047_v11 = vld [vmem:[#allocation28 + $0x2a0] ss:$16 sps:$4 sm:$0xff]   ;;  %v5050_v2 = vld [vmem:[#allocation28 + $0x2a8] ss:$16 sps:$4 sm:$0xff]  }
 0xfde   :  { %2554 = vadd.xlane.f32.xlu0 %v2553_v3  ;;  %v5055_v3 = vld [vmem:[#allocation28 + $0x2c4] ss:$16 sps:$4 sm:$0xff]  }
0x102b   :  { %v2635_v17 = vpop.xlane.xlu1 %2634 }
0x102c   :  { %v2636_v0 = vmul.f32 0.001953125, %v2635_v17  ;;  %v5058_v17 = vld [vmem:[#allocation28 + $0x2cc] ss:$16 sps:$4 sm:$0xff]  }
0x102e   :  { %v2637_v19 = vadd.f32 1e-05, %v2636_v0  ;;  %v5053_v0 = vld [vmem:[#allocation28 + $0x2c0] ss:$16 sps:$4 sm:$0xff]  }
0x1030   :  { %5171 = vrsqrt.f32 %v2637_v19  ;;  %v5056_v19 = vld [vmem:[#allocation28 + $0x2c8] ss:$16 sps:$4 sm:$0xff]  }
0x103a   :  { %v5172_v15 = vpop.eup %5171 }
0x103b   :  { %v2640_v21 = vmul.f32 %v5172_v15, %v6258_v12  ;;  %v2639_v20 = vmul.f32 %v5172_v15, %v6255_v28  ;;  %v2642_v62 = vmul.f32 %v5172_v15, %v6264_v14  ;;  %v2641_v22 = vmul.f32 %v5172_v15, %v6261_v13  ;;  %v5017_v12 = vld [vmem:[#allocation28 + $0x200] ss:$16 sps:$4 sm:$0xff]   ;;  %v5025_v14 = vld [vmem:[#allocation28 + $0x224] ss:$16 sps:$4 sm:$0xff]   ;;  %v5028_v13 = vld [vmem:[#allocation28 + $0x22c] ss:$16 sps:$4 sm:$0xff]  }
0x103c   :  { %v5065_v15 = vld [vmem:[#allocation28 + $0x300] ss:$16 sps:$4 sm:$0xff]  }
0x103d   :  { %v2665_v4 = vmul.f32 %v2651_v7, %v2640_v21  ;;  %v2664_v45 = vmul.f32 %v2647_v8, %v2639_v20  ;;  %v2667_v46 = vmul.f32 %v2659_v9, %v2642_v62  ;;  %v2666_v23 = vmul.f32 %v2655_v25, %v2641_v22  ;;  %v5059_v7 = vld [vmem:[#allocation28 + $0x2e0] ss:$16 sps:$4 sm:$0xff]   ;;  %v5062_v8 = vld [vmem:[#allocation28 + $0x2e8] ss:$16 sps:$4 sm:$0xff]   ;;  %v5067_v9 = vld [vmem:[#allocation28 + $0x304] ss:$16 sps:$4 sm:$0xff]  }
0x103e   :  { %v5070_v25 = vld [vmem:[#allocation28 + $0x30c] ss:$16 sps:$4 sm:$0xff]   ;;  %v5074_v21 = vld [vmem:[#allocation28 + $0x328] ss:$16 sps:$4 sm:$0xff]   ;;  %v5079_v20 = vld [vmem:[#allocation28 + $0x344] ss:$16 sps:$4 sm:$0xff]  }
0x103f   :  { %v2690_v24 = vadd.f32 %v2676_v16, %v2665_v4  ;;  %v2689_v27 = vadd.f32 %v2672_v18, %v2664_v45  ;;  %v2692_v29 = vadd.f32 %v2684_v52, %v2667_v46  ;;  %v6312_v30 = vadd.f32 %v2680_v54, %v2666_v23  ;;  %v5068_v16 = vld [vmem:[#allocation28 + $0x308] ss:$16 sps:$4 sm:$0xff]   ;;  %v5073_v18 = vld [vmem:[#allocation28 + $0x324] ss:$16 sps:$4 sm:$0xff]   ;;  %v5076_v52 = vld [vmem:[#allocation28 + $0x32c] ss:$16 sps:$4 sm:$0xff]  }
0x1040   :  { %v5071_v54 = vld [vmem:[#allocation28 + $0x320] ss:$16 sps:$4 sm:$0xff]   ;;  %v5082_v62 = vld [vmem:[#allocation28 + $0x34c] ss:$16 sps:$4 sm:$0xff]   ;;  %v5080_v4 = vld [vmem:[#allocation28 + $0x348] ss:$16 sps:$4 sm:$0xff]  }
0x1041   :  { %v2694_v31 = vmax.f32 %v2690_v24, 0.0  ;;  %v2693_v32 = vmax.f32 %v2689_v27, 0.0  ;;  %v2696_v33 = vmax.f32 %v2692_v29, 0.0  ;;  %v5077_v22 = vld [vmem:[#allocation28 + $0x340] ss:$16 sps:$4 sm:$0xff]  }
0x1042   :  { %v5085_v45 = vld [vmem:[#allocation28 + $0x364] ss:$16 sps:$4 sm:$0xff]   ;;  %v5088_v46 = vld [vmem:[#allocation28 + $0x36c] ss:$16 sps:$4 sm:$0xff]   ;;  %v5083_v23 = vld [vmem:[#allocation28 + $0x360] ss:$16 sps:$4 sm:$0xff]  }
0x1043   :  { %v2698_v34 = vpack.c.bf16 %v2694_v31, %v2694_v31  ;;  %v2697_v28 = vpack.c.bf16 %v2693_v32, %v2693_v32  ;;  %v2700_v37 = vpack.c.bf16 %v2696_v33, %v2696_v33  ;;  %v5086_v24 = vld [vmem:[#allocation28 + $0x368] ss:$16 sps:$4 sm:$0xff]   ;;  %v5091_v27 = vld [vmem:[#allocation28 + $0x384] ss:$16 sps:$4 sm:$0xff]   ;;  %v5094_v29 = vld [vmem:[#allocation28 + $0x38c] ss:$16 sps:$4 sm:$0xff]  }
0x1044   :  { %v5089_v31 = vld [vmem:[#allocation28 + $0x380] ss:$16 sps:$4 sm:$0xff]   ;;  %v5092_v32 = vld [vmem:[#allocation28 + $0x388] ss:$16 sps:$4 sm:$0xff]   ;;  %v5097_v33 = vld [vmem:[#allocation28 + $0x3a4] ss:$16 sps:$4 sm:$0xff]  }
0x1045   :  { %3523 = vmatprep.mubr.bf16.mxu1 %v2698_v34  ;;  %3605 = vmatprep.mubr.bf16.mxu0 %v2698_v34  ;;  %v5100_v34 = vld [vmem:[#allocation28 + $0x3ac] ss:$16 sps:$4 sm:$0xff]  }
0x1046   :  { %3524 = vmatmul.mubr.bf16.vlgmr.msra.gmra.mrb[20].mxu1 %v2697_v28  ;;  %3606 = vmatmul.mubr.bf16.vlgmr.msra.gmra.mrb[24].mxu0 %v2697_v28  ;;  %v5103_v28 = vld [vmem:[#allocation28 + $0x3c4] ss:$16 sps:$4 sm:$0xff]  }
0x1047   :  { %3533 = vmatpush1.bf16.msra.mxu1 %v5017_v12  ;;  %3615 = vmatpush1.bf16.msra.mxu0 %v5020_v35  ;;  %v5095_v12 = vld [vmem:[#allocation28 + $0x3a0] ss:$16 sps:$4 sm:$0xff]   ;;  %v5098_v35 = vld [vmem:[#allocation28 + $0x3a8] ss:$16 sps:$4 sm:$0xff]  }
0x1048   :  { %3564 = vmatprep.mubr.bf16.mxu1 %v2700_v37  ;;  %3646 = vmatprep.mubr.bf16.mxu0 %v2700_v37  ;;  %v5104_v37 = vld [vmem:[#allocation28 + $0x3c8] ss:$16 sps:$4 sm:$0xff]  }
0x1049   :  { %3534 = vmatprep.subr.bf16.mxu1 %v5025_v14  ;;  %3616 = vmatprep.subr.bf16.mxu0 %v5028_v13  ;;  %v5106_v14 = vld [vmem:[#allocation28 + $0x3cc] ss:$16 sps:$4 sm:$0xff]   ;;  %v5101_v13 = vld [vmem:[#allocation28 + $0x3c0] ss:$16 sps:$4 sm:$0xff]  }
0x104b   :  { %3535 = vmatpush1.bf16.msra.mxu1 %v5023_v38  ;;  %3617 = vmatpush1.bf16.msra.mxu0 %v5026_v39  ;;  %v5109_v38 = vld [vmem:[#allocation28 + $0x3e4] ss:$16 sps:$4 sm:$0xff]   ;;  %v5112_v39 = vld [vmem:[#allocation28 + $0x3ec] ss:$16 sps:$4 sm:$0xff]  }
0x104c   :  { %3536 = vmatprep.subr.bf16.mxu1 %v5031_v40  ;;  %3618 = vmatprep.subr.bf16.mxu0 %v5034_v41  ;;  %v5107_v40 = vld [vmem:[#allocation28 + $0x3e0] ss:$16 sps:$4 sm:$0xff]   ;;  %v5110_v41 = vld [vmem:[#allocation28 + $0x3e8] ss:$16 sps:$4 sm:$0xff]  }
0x104f   :  { %3537 = vmatpush1.bf16.msra.mxu1 %v5029_v42  ;;  %3619 = vmatpush1.bf16.msra.mxu0 %v5032_v63  ;;  %v2695_v42 = vmax.f32 %v6312_v30, 0.0 }
0x1050   :  { %3538 = vmatprep.subr.bf16.mxu1 %v5037_v44  ;;  %3620 = vmatprep.subr.bf16.mxu0 %v5040_v47  ;;  %v2829_v44 = vld [vmem:[#allocation29] ss:$4 sm:$0xf] }
0x1051   :  { %v2699_v63 = vpack.c.bf16 %v2695_v42, %v2695_v42  ;;  %v2834_v47 = vrot.slane %v2829_v44, %v6144_v36 }
0x1053   :  { %3539 = vmatpush1.bf16.msra.mxu1 %v5035_v49  ;;  %3621 = vmatpush1.bf16.msra.mxu0 %v5038_v50  ;;  %v2838_v49 = vrot.slane %v2829_v44, %v6147_v59 }
0x1054   :  { %3540 = vmatprep.subr.bf16.mxu1 %v5043_v51  ;;  %3622 = vmatprep.subr.bf16.mxu0 %v5046_v1  ;;  %v2842_v51 = vrot.slane %v2829_v44, %v6217_v43 }
0x1057   :  { %3541 = vmatpush1.bf16.msra.mxu1 %v5041_v60  ;;  %3623 = vmatpush1.bf16.msra.mxu0 %v5044_v61 }
0x1058   :  { %3542 = vmatprep.subr.bf16.mxu1 %v5049_v57  ;;  %3624 = vmatprep.subr.bf16.mxu0 %v5052_v10  ;;  %v2846_v10 = vrot.slane %v2829_v44, %v6222_v48 }
0x105b   :  { %3543 = vmatpush1.bf16.msra.mxu1 %v5047_v11  ;;  %3625 = vmatpush1.bf16.msra.mxu0 %v5050_v2 }
0x105c   :  { %3544 = vmatprep.subr.bf16.mxu1 %v5055_v3  ;;  %3626 = vmatprep.subr.bf16.mxu0 %v5058_v17 }
0x105f   :  { %3545 = vmatpush1.bf16.msra.mxu1 %v5053_v0  ;;  %3627 = vmatpush1.bf16.msra.mxu0 %v5056_v19 }
0x1060   :  { %3546 = vmatprep.subr.bf16.mxu1 %v5061_v5  ;;  %3628 = vmatprep.subr.bf16.mxu0 %v5064_v6 }
0x1063   :  { %3547 = vmatpush1.bf16.msra.mxu1 %v5059_v7  ;;  %3629 = vmatpush1.bf16.msra.mxu0 %v5062_v8  ;;  %v5113_v8 = vld [vmem:[#allocation32 + $0x40] sm:$0xff]  }
0x1064   :  { %3548 = vmatprep.subr.bf16.mxu1 %v5067_v9  ;;  %3630 = vmatprep.subr.bf16.mxu0 %v5070_v25  ;;  %v5114_v9 = vld [vmem:[#allocation32] sm:$0xff]   ;;  %v5115_v25 = vld [vmem:[#allocation32 + $0x48] sm:$0xff]  }
0x1067   :  { %3549 = vmatpush1.bf16.msra.mxu1 %v5065_v15  ;;  %3631 = vmatpush1.bf16.msra.mxu0 %v5068_v16 }
0x1068   :  { %3550 = vmatprep.subr.bf16.mxu1 %v5073_v18  ;;  %3632 = vmatprep.subr.bf16.mxu0 %v5076_v52 }
0x106b   :  { %3551 = vmatpush1.bf16.msra.mxu1 %v5071_v54  ;;  %3633 = vmatpush1.bf16.msra.mxu0 %v5074_v21 }
0x106c   :  { %3552 = vmatprep.subr.bf16.mxu1 %v5079_v20  ;;  %3634 = vmatprep.subr.bf16.mxu0 %v5082_v62 }
0x106f   :  { %3553 = vmatpush1.bf16.msra.mxu1 %v5077_v22  ;;  %3635 = vmatpush1.bf16.msra.mxu0 %v5080_v4 }
0x1070   :  { %3554 = vmatprep.subr.bf16.mxu1 %v5085_v45  ;;  %3636 = vmatprep.subr.bf16.mxu0 %v5088_v46 }
0x1073   :  { %3555 = vmatpush1.bf16.msra.mxu1 %v5083_v23  ;;  %3637 = vmatpush1.bf16.msra.mxu0 %v5086_v24  ;;  %v5116_v24 = vld [vmem:[#allocation32 + $0x8] sm:$0xff]  }
0x1074   :  { %3556 = vmatprep.subr.bf16.mxu1 %v5091_v27  ;;  %3638 = vmatprep.subr.bf16.mxu0 %v5094_v29  ;;  %v5117_v27 = vld [vmem:[#allocation32 + $0x50] sm:$0xff]  }
0x1075   :  { %v5118_v29 = vld [vmem:[#allocation32 + $0x10] sm:$0xff]  }
0x1077   :  { %3557 = vmatpush1.bf16.msra.mxu1 %v5089_v31  ;;  %3639 = vmatpush1.bf16.msra.mxu0 %v5092_v32  ;;  %v5119_v31 = vld [vmem:[#allocation32 + $0x58] sm:$0xff]  }
0x1078   :  { %3558 = vmatprep.subr.bf16.mxu1 %v5097_v33  ;;  %3640 = vmatprep.subr.bf16.mxu0 %v5100_v34  ;;  %v5120_v32 = vld [vmem:[#allocation32 + $0x18] sm:$0xff]   ;;  %v5121_v33 = vld [vmem:[#allocation32 + $0x60] sm:$0xff]  }
0x1079   :  { %v5122_v34 = vld [vmem:[#allocation32 + $0x20] sm:$0xff]  }
0x107b   :  { %3559 = vmatpush1.bf16.msra.mxu1 %v5095_v12  ;;  %3641 = vmatpush1.bf16.msra.mxu0 %v5098_v35  ;;  %v5123_v12 = vld [vmem:[#allocation32 + $0x68] sm:$0xff]  }
0x107c   :  { %3560 = vmatprep.subr.bf16.mxu1 %v5103_v28  ;;  %3642 = vmatprep.subr.bf16.mxu0 %v5106_v14  ;;  %v5124_v35 = vld [vmem:[#allocation32 + $0x28] sm:$0xff]   ;;  %v5125_v28 = vld [vmem:[#allocation32 + $0x70] sm:$0xff]  }
0x107d   :  { %v5126_v14 = vld [vmem:[#allocation32 + $0x30] sm:$0xff]  }
0x107f   :  { %3561 = vmatpush1.bf16.msra.mxu1 %v5101_v13  ;;  %3643 = vmatpush1.bf16.msra.mxu0 %v5104_v37  ;;  %v5127_v13 = vld [vmem:[#allocation32 + $0x78] sm:$0xff]  }
0x1080   :  { %3562 = vmatprep.subr.bf16.mxu1 %v5109_v38  ;;  %3644 = vmatprep.subr.bf16.mxu0 %v5112_v39  ;;  %v5128_v37 = vld [vmem:[#allocation32 + $0x38] sm:$0xff]   ;;  %v5129_v38 = vld [vmem:[#allocation32 + $0xc0] sm:$0xff]   ;;  %v2555_v39 = vpop.xlane.xlu0 %2554 }
0x1083   :  { %3563 = vmatpush1.bf16.msra.mxu1 %v5107_v40  ;;  %3645 = vmatpush1.bf16.msra.mxu0 %v5110_v41  ;;  %v2556_v40 = vmul.f32 0.001953125, %v2555_v39 }
0x1084   :  { %4734 = vmatprep.subr.bf16.mxu0 %v5692_v26  ;;  %4649 = vmatprep.subr.bf16.mxu1 %v5113_v8 }
0x1085   :  { %v2557_v41 = vadd.f32 1e-05, %v2556_v40 }
0x1086   :  { %3565 = vmatmul.mubr.bf16.vlgmr.msra.gmra.mrb[20].mxu1 %v2699_v63  ;;  %3647 = vmatmul.mubr.bf16.vlgmr.msra.gmra.mrb[24].mxu0 %v2699_v63 }
0x1087   :  { %4750 = vmatprep.mubr.msk.bf16.mxu0 %vm5693_vm2, %v5692_v26  ;;  %4650 = vmatpush3.bf16.msra.mxu1 %v5114_v9  ;;  %5173 = vrsqrt.f32 %v2557_v41 }
0x1088   :  { %4651 = vmatprep.subr.bf16.mxu1 %v5115_v25 }
0x108b   :  { %4652 = vmatpush3.bf16.msra.mxu1 %v5116_v24 }
0x108c   :  { %4653 = vmatprep.subr.bf16.mxu1 %v5117_v27 }
0x108f   :  { %4654 = vmatpush3.bf16.msra.mxu1 %v5118_v29 }
0x1090   :  { %4655 = vmatprep.subr.bf16.mxu1 %v5119_v31 }
0x1093   :  { %4656 = vmatpush3.bf16.msra.mxu1 %v5120_v32 }
0x1094   :  { %4657 = vmatprep.subr.bf16.mxu1 %v5121_v33  ;;  %v5130_v33 = vld [vmem:[#allocation32 + $0x80] sm:$0xff]  }
0x1097   :  { %4658 = vmatpush3.bf16.msra.mxu1 %v5122_v34  ;;  %v5131_v34 = vld [vmem:[#allocation32 + $0xc8] sm:$0xff]  }
0x1098   :  { %4659 = vmatprep.subr.bf16.mxu1 %v5123_v12  ;;  %v5132_v12 = vld [vmem:[#allocation32 + $0x88] sm:$0xff]  }
0x109b   :  { %4660 = vmatpush3.bf16.msra.mxu1 %v5124_v35  ;;  %v5133_v35 = vld [vmem:[#allocation32 + $0xd0] sm:$0xff]  }
0x109c   :  { %4661 = vmatprep.subr.bf16.mxu1 %v5125_v28  ;;  %v5134_v28 = vld [vmem:[#allocation32 + $0x90] sm:$0xff]  }
0x109f   :  { %4662 = vmatpush3.bf16.msra.mxu1 %v5126_v14  ;;  %v5135_v14 = vld [vmem:[#allocation32 + $0xd8] sm:$0xff]  }
0x10a0   :  { %4663 = vmatprep.subr.bf16.mxu1 %v5127_v13  ;;  %v5136_v13 = vld [vmem:[#allocation32 + $0x98] sm:$0xff]  }
0x10a3   :  { %4664 = vmatpush3.bf16.msra.mxu1 %v5128_v37  ;;  %v5137_v37 = vld [vmem:[#allocation32 + $0xe0] sm:$0xff]  }
0x10a4   :  { %4671 = vmatprep.subr.bf16.mxu1 %v5129_v38 }
0x1159   :  { %v3566_v50 = vpop.f32.mrb[20].mxu1  ;;  %v3648_v1 = vpop.f32.mrb[24].mxu0 }
0x115a   :  { %v4754_v30 = vadd.f32 %v3566_v50, %v2834_v47  ;;  %v3568_v60 = vpop.f32.mrb[21].mxu1  ;;  %v3650_v61 = vpop.f32.mrb[25].mxu0  ;;  %v4756_v0 = vadd.f32 %v3648_v1, %v2842_v51  ;;  %v6342_v50 = vld [vmem:[#allocation31 + $0x2] ss:$4 sm:$0xf] }
0x115b   :  { %v4755_v57 = vadd.f32 %v3568_v60, %v2838_v49  ;;  %v3570_v11 = vpop.f32.mrb[22].mxu1  ;;  %v3652_v2 = vpop.f32.mrb[26].mxu0  ;;  %v4757_v5 = vadd.f32 %v3650_v61, %v2846_v10  ;;  %v6340_v49 = vld [vmem:[#allocation31 + $0x1] ss:$4 sm:$0xf] }
0x115c   :  { %v3571_v3 = vpop.f32.mrb[23].mxu1  ;;  %v3653_v17 = vpop.f32.mrb[27].mxu0  ;;  %v2571_v1 = vrot.slane %v6340_v49, %v6147_v59  ;;  %v2567_v61 = vrot.slane %v6340_v49, %v6144_v36  ;;  %v2579_v10 = vrot.slane %v6340_v49, %v6222_v48  ;;  %v6358_v11 = vld [vmem:[#allocation29 + $0x2] ss:$4 sm:$0xf]  ;;  %v2592_v2 = vrot.slane %v6342_v50, %v6144_v36 }
0x115d   :  { %v3659_v19 = vadd.f32 %v4755_v57, %v4754_v30  ;;  %v6338_v47 = vpop.eup %5173  ;;  %v2575_v41 = vrot.slane %v6340_v49, %v6217_v43  ;;  %v5142_v49 = vld [vmem:[#allocation32 + $0xb0] sm:$0xff]  }
0x115e   :  { %v2560_v51 = vmul.f32 %v6338_v47, %v6278_v55  ;;  %v2559_v60 = vmul.f32 %v6338_v47, %v6275_v53  ;;  %v2596_v55 = vrot.slane %v6342_v50, %v6147_v59  ;;  %v2604_v53 = vrot.slane %v6342_v50, %v6222_v48 }
0x115f   :  { %v3660_v6 = vadd.f32 %v4756_v0, %v3659_v19  ;;  %v2561_v40 = vmul.f32 %v6338_v47, %v6281_v56 }
0x1160   :  { %v2585_v3 = vmul.f32 %v2571_v1, %v2560_v51  ;;  %v3722_v51 = vrot.slane %v6358_v11, %v6217_v43 }
0x1161   :  { %v3661_v7 = vadd.f32 %v4757_v5, %v3660_v6  ;;  %v2584_v6 = vmul.f32 %v2567_v61, %v2559_v60  ;;  %v2586_v1 = vmul.f32 %v2575_v41, %v2561_v40  ;;  %v5141_v60 = vld [vmem:[#allocation32 + $0xf0] sm:$0xff]   ;;  %v5143_v61 = vld [vmem:[#allocation32 + $0xf8] sm:$0xff]  }
0x1163   :  { %3662 = vadd.xlane.f32.xlu1 %v3661_v7  ;;  %v3714_v7 = vrot.slane %v6358_v11, %v6144_v36 }
0x11f0   :  { %v3663_v15 = vpop.xlane.xlu1 %3662 }
0x11f1   :  { %v3664_v16 = vmul.f32 0.001953125, %v3663_v15 }
0x11f3   :  { %v6322_v18 = vsub.f32 %v4754_v30, %v3664_v16  ;;  %v6324_v52 = vsub.f32 %v4755_v57, %v3664_v16  ;;  %v6326_v54 = vsub.f32 %v4756_v0, %v3664_v16  ;;  %v6328_v21 = vsub.f32 %v4757_v5, %v3664_v16  ;;  %v6348_v30 = vld [vmem:[#allocation29 + $0x1] ss:$4 sm:$0xf] }
0x11f4   :  { %v2562_v57 = vmul.f32 %v6338_v47, %v6284_v58  ;;  %v3693_v17 = vrot.slane %v6348_v30, %v6147_v59  ;;  %v3689_v58 = vrot.slane %v6348_v30, %v6144_v36  ;;  %v3701_v0 = vrot.slane %v6348_v30, %v6222_v48 }
0x11f5   :  { %v3669_v20 = vmul.f32 %v6322_v18, %v6322_v18  ;;  %v3670_v62 = vmul.f32 %v6324_v52, %v6324_v52  ;;  %v3671_v22 = vmul.f32 %v6326_v54, %v6326_v54  ;;  %v3672_v45 = vmul.f32 %v6328_v21, %v6328_v21 }
0x11f6   :  { %v3718_v5 = vrot.slane %v6358_v11, %v6147_v59  ;;  %v2587_v8 = vmul.f32 %v2579_v10, %v2562_v57  ;;  %v3726_v16 = vrot.slane %v6358_v11, %v6222_v48  ;;  %v3697_v39 = vrot.slane %v6348_v30, %v6217_v43  ;;  %v5140_v30 = vld [vmem:[#allocation32 + $0xa8] sm:$0xff]   ;;  %v5144_v10 = vld [vmem:[#allocation32 + $0xb8] sm:$0xff]  }
0x11f7   :  { %v3673_v4 = vadd.f32 %v3670_v62, %v3669_v20 }
0x11f9   :  { %v3674_v46 = vadd.f32 %v3673_v4, %v3671_v22  ;;  %v2610_v4 = vadd.f32 %v2596_v55, %v2585_v3  ;;  %v5149_v3 = vld [vmem:[%s6464_s23 + $0x20] sm:$0xff]  }
0x11fb   :  { %v3675_v23 = vadd.f32 %v3674_v46, %v3672_v45  ;;  %v2609_v45 = vadd.f32 %v2592_v2, %v2584_v6  ;;  %v5147_v2 = vld [vmem:[%s6464_s23 + $0x10] sm:$0xff]  }
0x11fd   :  { %3676 = vadd.xlane.f32.xlu1 %v3675_v23  ;;  %v2612_v23 = vadd.f32 %v2604_v53, %v2587_v8  ;;  %v5148_v53 = vld [vmem:[%s6464_s23 + $0x18] sm:$0xff]  }
0x128a   :  { %v3677_v42 = vpop.xlane.xlu1 %3676 }
0x128b   :  { %v3678_v63 = vmul.f32 0.001953125, %v3677_v42  ;;  %v5138_v42 = vld [vmem:[#allocation32 + $0xa0] sm:$0xff]  }
0x128d   :  { %v3679_v44 = vadd.f32 1e-05, %v3678_v63  ;;  %v5139_v63 = vld [vmem:[#allocation32 + $0xe8] sm:$0xff]  }
0x128f   :  { %5175 = vrsqrt.f32 %v3679_v44 }
0x1299   :  { %v5176_v19 = vpop.eup %5175 }
0x129a   :  { %v3682_v9 = vmul.f32 %v5176_v19, %v6324_v52  ;;  %v3681_v25 = vmul.f32 %v5176_v19, %v6322_v18  ;;  %v3684_v15 = vmul.f32 %v5176_v19, %v6328_v21  ;;  %v3683_v38 = vmul.f32 %v5176_v19, %v6326_v54 }
0x129b   :  { %v2600_v54 = vrot.slane %v6342_v50, %v6217_v43  ;;  %v5145_v43 = vld [vmem:[%s6464_s23] sm:$0xff]   ;;  %v5146_v50 = vld [vmem:[%s6464_s23 + $0x8] sm:$0xff]  }
0x129c   :  { %v3707_v20 = vmul.f32 %v3693_v17, %v3682_v9  ;;  %v3706_v62 = vmul.f32 %v3689_v58, %v3681_v25  ;;  %v3709_v22 = vmul.f32 %v3701_v0, %v3684_v15  ;;  %v3708_v44 = vmul.f32 %v3697_v39, %v3683_v38  ;;  %4735 = vmatpush3.bf16.msra.mxu0 %v5145_v43  ;;  %v5150_v17 = vld [vmem:[%s6464_s23 + $0x28] sm:$0xff]   ;;  %v5151_v58 = vld [vmem:[%s6464_s23 + $0x30] sm:$0xff]   ;;  %v5152_v0 = vld [vmem:[%s6464_s23 + $0x38] sm:$0xff]  }
0x129d   :  { %v2611_v47 = vadd.f32 %v2600_v54, %v2586_v1  ;;  %4736 = vmatprep.subr.bf16.mxu0 %v5692_v26  ;;  %v4593_v9 = vld [vmem:[%s6501_s8] ss:$0 sm:$0xff] }
0x129e   :  { %v3732_v59 = vadd.f32 %v3718_v5, %v3707_v20  ;;  %v3731_v46 = vadd.f32 %v3714_v7, %v3706_v62  ;;  %v3734_v24 = vadd.f32 %v3726_v16, %v3709_v22  ;;  %v3733_v56 = vadd.f32 %v3722_v51, %v3708_v44 }
0x12a0   :  { %v3736_v36 = vadd.f32 %v3732_v59, %v2610_v4  ;;  %v3735_v27 = vadd.f32 %v3731_v46, %v2609_v45  ;;  %v3738_v29 = vadd.f32 %v3734_v24, %v2612_v23  ;;  %v3737_v57 = vadd.f32 %v3733_v56, %v2611_v47  ;;  %4737 = vmatpush3.bf16.msra.mxu0 %v5146_v50  ;;  %v4626_v45 = vld [vmem:[%s6502_s14] ss:$0 sm:$0xff] }
0x12a1   :  { %4738 = vmatprep.subr.bf16.mxu0 %v5692_v26 }
0x12a2   :  { %v3740_v52 = vmax.f32 %v3736_v36, 0.0  ;;  %v3739_v31 = vmax.f32 %v3735_v27, 0.0  ;;  %v3742_v18 = vmax.f32 %v3738_v29, 0.0  ;;  %v3741_v55 = vmax.f32 %v3737_v57, 0.0 }
0x12a4   :  { %v3744_v32 = vpack.c.bf16 %v3740_v52, %v3740_v52  ;;  %v3743_v21 = vpack.c.bf16 %v3739_v31, %v3739_v31  ;;  %v3746_v48 = vpack.c.bf16 %v3742_v18, %v3742_v18  ;;  %v3745_v11 = vpack.c.bf16 %v3741_v55, %v3741_v55  ;;  %4739 = vmatpush3.bf16.msra.mxu0 %v5147_v2 }
0x12a5   :  { %4740 = vmatprep.subr.bf16.mxu0 %v5692_v26 }
0x12a6   :  { %4042 = vmatprep.mubr.bf16.mxu1 %v3744_v32 }
0x12a7   :  { %4043 = vmatmul.mubr.bf16.vlgmr.msra.gmra.mrb[24].mxu1 %v3743_v21 }
0x12a8   :  { %4672 = vmatpush3.bf16.msra.mxu1 %v5130_v33  ;;  %4082 = vmatprep.mubr.bf16.mxu1 %v3746_v48 }
0x12a9   :  { %4673 = vmatprep.subr.bf16.mxu1 %v5131_v34  ;;  %4741 = vmatpush3.bf16.msra.mxu0 %v5148_v53 }
0x12aa   :  { %4742 = vmatprep.subr.bf16.mxu0 %v5692_v26 }
0x12ac   :  { %4674 = vmatpush3.bf16.msra.mxu1 %v5132_v12 }
0x12ad   :  { %4675 = vmatprep.subr.bf16.mxu1 %v5133_v35  ;;  %4743 = vmatpush3.bf16.msra.mxu0 %v5149_v3 }
0x12ae   :  { %4744 = vmatprep.subr.bf16.mxu0 %v5692_v26 }
0x12b0   :  { %4676 = vmatpush3.bf16.msra.mxu1 %v5134_v28 }
0x12b1   :  { %4677 = vmatprep.subr.bf16.mxu1 %v5135_v14  ;;  %4745 = vmatpush3.bf16.msra.mxu0 %v5150_v17 }
0x12b2   :  { %4746 = vmatprep.subr.bf16.mxu0 %v5692_v26 }
0x12b4   :  { %4678 = vmatpush3.bf16.msra.mxu1 %v5136_v13 }
0x12b5   :  { %4679 = vmatprep.subr.bf16.mxu1 %v5137_v37  ;;  %4747 = vmatpush3.bf16.msra.mxu0 %v5151_v58 }
0x12b6   :  { %4748 = vmatprep.subr.bf16.mxu0 %v5692_v26 }
0x12b8   :  { %4680 = vmatpush3.bf16.msra.mxu1 %v5138_v42 }
0x12b9   :  { %4681 = vmatprep.subr.bf16.mxu1 %v5139_v63  ;;  %4749 = vmatpush3.bf16.msra.mxu0 %v5152_v0 }
0x12bc   :  { %4682 = vmatpush3.bf16.msra.mxu1 %v5140_v30 }
0x12bd   :  { %4683 = vmatprep.subr.bf16.mxu1 %v5141_v60 }
0x12c0   :  { %4684 = vmatpush3.bf16.msra.mxu1 %v5142_v49 }
0x12c1   :  { %4685 = vmatprep.subr.bf16.mxu1 %v5143_v61 }
0x12c4   :  { %4686 = vmatpush3.bf16.msra.mxu1 %v5144_v10 }
0x12c7   :  { %4083 = vmatmul.mubr.bf16.vlgmr.msra.gmra.mrb[28].mxu1 %v3745_v11 }
0x137a   :  { %v4665_v19 = vpop.f32.mrb[24].mxu1 }
0x137b   :  { %v4666_v5 = vpop.f32.mrb[25].mxu1 }
0x137c   :  { %v4667_v6 = vadd.f32 %v4666_v5, %v4665_v19  ;;  %v4668_v7 = vpop.f32.mrb[26].mxu1 }
0x137d   :  { %v4669_v8 = vpop.f32.mrb[27].mxu1 }
0x137e   :  { %v4045_v16 = vadd.f32 %v4667_v6, %v4593_v9 }
0x139a   :  { %v4687_v25 = vpop.f32.mrb[28].mxu1 }
0x139b   :  { %v4688_v15 = vpop.f32.mrb[29].mxu1 }
0x139c   :  { %v4689_v20 = vadd.f32 %v4688_v15, %v4687_v25  ;;  %v4690_v62 = vpop.f32.mrb[30].mxu1 }
0x139d   :  { %v4691_v26 = vpop.f32.mrb[31].mxu1 }
0x139e   :  { %v4085_v22 = vadd.f32 %v4689_v20, %v4045_v16 }
0x13a0   :  { %v4090_v4 = vpack.c.bf16 %v4085_v22, %v4085_v22 }
0x13a2   :  { %4751 = vmatmul.mubr.bf16.vlgmr.msra.gmra.mrb[28].mxu0 %v4090_v4 }
0x1475   :  { %v4196_v59 = vpop.f32.mrb[28].mxu0 }
0x1476   :  { %v4197_v46 = vadd.f32 %v4626_v45, %v4196_v59  ;;  %v4752_v23 = vpop.f32.mrb[29].mxu0 }
0x1477   :  { %v4199_v24 = vpop.f32.mrb[30].mxu0 }
0x1478   :  { %4202 = vst [vmem:[#allocation34] sm:$0xff] %v4197_v46  ;;  %v4753_v36 = vpop.f32.mrb[31].mxu0 }
0x1479   :  { %5628 = shalt.err (!%p5625_p10)
}
0x147a   :  { %s6503_s7 = sld [smem:[#allocation59_spill]] }
0x1480   :  { %s5629_s4 = scalar_lea.hbm %s6503_s7, 128 }
0x1481   :  { %p5630_p11 = scmp.ne.s32.totalorder %s6503_s7, %s5629_s4  ;;  %p5633_p12 = scmp.lt.u32.totalorder %s5629_s4, %s6503_s7 }
0x1483   :  { %p5635_p13 = pnand %p5633_p12, %p5630_p11 }
0x1485   :  { %5638 = shalt.err (!%p5635_p13)
}
0x1486   :  { %4212 = dma.vmem_to_hbm [thread:$0]  %s4210_s16, 128, %s6503_s7, [#allocation4]  }
0x1487   :  { %5661 = dma.done.wait [#allocation4], 128  }
0x1488   :  { %5662 = vsyncadd [#allocation4], 4294967168 }
0x1489   :  { %4216 = vsyncpa [#allocation3], 1 }
0x148a   :  { %4217 = vsyncpa [#allocation6], 1 }
0x148b   :  { %4218 = vsyncpa [#allocation9], 1 }
0x148c   :  { %4219 = vsyncpa [#allocation12], 1 }
0x148d   :  { %4220 = vsyncpa [#allocation15], 1 }
0x148e   :  { %4221 = vsyncpa [#allocation18], 1 }
0x148f   :  { %4222 = vsyncpa [#allocation21], 1 }
0x1490   :  { %4223 = vsyncpa [#allocation24], 1 }
0x1491   :  { %4224 = vsyncpa [#allocation27], 1 }
0x1492   :  { %4225 = vsyncpa [#allocation30], 1 }
0x1493   :  { %4226 = vsyncpa [#allocation33], 1 }
0x1494   :  { %4227 = vsyncpa [#allocation4], 1 }

</bundles_post_ra>
